<compile_context>
chip_gen: v7x
topology: tpu7x:2x2x1
jax: 0.10.0
libtpu: 0.0.40
codegen_flags: <defaults>
</compile_context>

<pallas_src>
import functools

import jax
import jax.numpy as jnp
from jax.experimental import pallas as pl
from jax.experimental.pallas import tpu as pltpu


STREAM_KS = (3, 7, 11)          # kernel sizes of stream A / B / C


# ----------------------------- fused Pallas kernel ---------------------------

def _msnet_block2_kernel(*refs, Ks, H, W, Ci, Cout, Pmax):
    """One grid step == one image.  For each stream (static K in Ks):
       conv0+BN+ReLU -> conv1+BN+ReLU -> 2x2 maxpool, entirely in VMEM.

    Ref layout (inputs, outputs, scratch):
      refs[0]              x_ref  (H+2*Pmax, W*Ci)  bf16  height/channel padded input
      refs[1+4s .. 4+4s]   w0 (K*W*Ci, W*Cout) bf16, s0 (1, W*Cout) f32,
                           w1 (K*W*Cout, W*Cout) bf16, s1 (1, W*Cout) f32
      refs[13]             csel (2, W*Cout, (W//2)*Cout) f32  width-pool selectors
      refs[14+s]           o_ref (H//2, (W//2)*Cout) f32      per-stream pooled output
      refs[17]             hp_ref (Hs, W*Cout) bf16   conv0 output + height halo
      refs[18]             y_ref  (H,  W*Cout) f32    conv1 output (for strided row pool)
    """
    x_ref = refs[0]
    csel_ref = refs[13]
    hp_ref, y_ref = refs[17], refs[18]

    Wci = W * Ci
    Wc = W * Cout
    Ho = H // 2
    Kmax = 2 * Pmax + 1

    # Tap-folded conv0 LHS, built once from Kmax shifted row slices (vreg-aligned
    # 128-lane pieces).  Each stream's LHS is a static lane-aligned slice of it.
    lhs_full = jnp.concatenate(
        [x_ref[dy:dy + H, :] for dy in range(Kmax)], axis=1)          # (H, Kmax*Wci) bf16

    for si, K in enumerate(Ks):
        P = (K - 1) // 2
        off = Pmax - P
        w0_ref, s0_ref, w1_ref, s1_ref = refs[1 + 4 * si: 5 + 4 * si]
        o_ref = refs[14 + si]

        # ---- conv0 (BN scale folded into weights) + shift + ReLU: ONE matmul ----
        lhs0 = lhs_full[:, off * Wci:(off + K) * Wci]                 # (H, K*Wci)
        h0 = jnp.dot(lhs0, w0_ref[...],
                     preferred_element_type=jnp.float32) + s0_ref[...]
        h0 = jnp.maximum(h0, 0.0)                                     # (H, Wc) f32

        # Conv0 output -> height-padded scratch; zero ONLY the 2*P halo rows.
        hp_ref[0:P, :] = jnp.zeros((P, Wc), hp_ref.dtype)
        hp_ref[P:P + H, :] = h0.astype(hp_ref.dtype)
        hp_ref[P + H:2 * P + H, :] = jnp.zeros((P, Wc), hp_ref.dtype)

        # ---- conv1 + shift + ReLU: ONE matmul on the tap-folded LHS ----
        lhs1 = jnp.concatenate(
            [hp_ref[dy:dy + H, :] for dy in range(K)], axis=1)        # (H, K*Wc) bf16
        y = jnp.dot(lhs1, w1_ref[...],
                    preferred_element_type=jnp.float32) + s1_ref[...]
        y_ref[...] = jnp.maximum(y, 0.0)                              # (H, Wc) f32

        # ---- 2x2 max-pool: rows via strided sublane max, width via 0/1 matmuls ----
        rp = jnp.maximum(y_ref[pl.ds(0, Ho, stride=2), :],
                         y_ref[pl.ds(1, Ho, stride=2), :])            # (Ho, Wc)
        pooled = jnp.maximum(
            jnp.dot(rp, csel_ref[0], preferred_element_type=jnp.float32),
            jnp.dot(rp, csel_ref[1], preferred_element_type=jnp.float32))
        o_ref[...] = pooled                                           # (Ho, Wo*Cout)


# ----------------------------- host-side weight prep -------------------------

def _fold_bn(p, eps=1e-5):
    """Fold conv bias + eval-mode BatchNorm into (scaled filter, shift)."""
    inv_std = p["gamma"] / jnp.sqrt(p["var"] + eps)
    w = jnp.transpose(p["w"], (2, 3, 1, 0)) * inv_std        # OIHW -> (kh,kw,Cin,Cout)
    shift = (p["b"] - p["mean"]) * inv_std + p["beta"]       # (Cout,)
    return w, shift


def _banded_cat(w_hwio, W, cin_pad):
    """(k,k,Cin,Cout) SAME-conv filter -> (k*W*Cin_pad, W*Cout) tap-folded band matrix.

    Width zero-padding is encoded by clipping the eye-bands at the matrix edges,
    so activations never need width halos.  Extra input channels (cin_pad > Cin)
    get zero weights (they carry the zero-padded lanes of the activations)."""
    k, _, Cin, Cout = w_hwio.shape
    P = (k - 1) // 2
    if cin_pad > Cin:
        w_hwio = jnp.pad(w_hwio, ((0, 0), (0, 0), (0, cin_pad - Cin), (0, 0)))
    bands = jnp.stack([jnp.eye(W, W, k=P - dx, dtype=w_hwio.dtype) for dx in range(k)])
    wm = jnp.einsum("xpw,yxio->ypiwo", bands, w_hwio)        # (k, W, Cin_pad, W, Cout)
    return wm.reshape(k * W * cin_pad, W * Cout)


def _width_pool_selectors(W, Cout):
    """0/1 matrices implementing the width half of the 2x2 max-pool as two matmuls."""
    Wo = W // 2
    eye_c = jnp.eye(Cout, dtype=jnp.float32)
    return jnp.stack([
        jnp.einsum("ab,cd->acbd",
                   (jnp.arange(W)[:, None] == (2 * jnp.arange(Wo)[None, :] + r)
                    ).astype(jnp.float32), eye_c
                   ).reshape(W * Cout, Wo * Cout)
        for r in (0, 1)])                                    # (2, W*Cout, Wo*Cout)


def _padded_cin(Cin, W):
    """Smallest Cin' >= Cin with W*Cin' a multiple of 128 (lane/vreg aligned)."""
    if (W * Cin) % 128 == 0:
        return Cin
    for c in range(Cin + 1, Cin + 129):
        if (W * c) % 128 == 0:
            return c
    return Cin


def prepare_params(params, W, in_channel):
    """One-time parameter prep (hoisted out of the per-call forward):
    BN folding, bf16 tap-folded banded weights, shifts and pool selectors."""
    Cout = params["A0"]["w"].shape[0]
    ci = _padded_cin(in_channel, W)
    streams = []
    for name in ("A", "B", "C"):
        w0, s0 = _fold_bn(params[f"{name}0"])
        w1, s1 = _fold_bn(params[f"{name}1"])
        streams.append(dict(
            w0=_banded_cat(w0, W, ci).astype(jnp.bfloat16),
            s0=jnp.tile(s0, W)[None, :].astype(jnp.float32),
            w1=_banded_cat(w1, W, Cout).astype(jnp.bfloat16),
            s1=jnp.tile(s1, W)[None, :].astype(jnp.float32),
        ))
    return {"streams": streams, "csel": _width_pool_selectors(W, Cout)}


# --------------------------------- forward -----------------------------------

def msnet_basic_block_2(prepped, x_nchw, asc_part=None):
    """attention_setting == -1 -> attn_* are identity; ASC_part is unused."""
    del asc_part
    N, Cin, H, W = x_nchw.shape
    assert H % 2 == 0 and W % 2 == 0
    streams, csel = prepped["streams"], prepped["csel"]

    Wc = streams[0]["w0"].shape[1]                     # W * Cout
    Cout = Wc // W
    Ci = streams[0]["w0"].shape[0] // (STREAM_KS[0] * W)
    Pmax = (max(STREAM_KS) - 1) // 2
    Ho, Wo = H // 2, W // 2
    Hin = H + 2 * Pmax

    # NCHW -> (N, H+2*Pmax, W*Ci) bf16: zero height halo, channels padded to Ci
    # (lane index = w*Ci + c, so every conv tap piece is 128-lane aligned).
    x = jnp.transpose(x_nchw, (0, 2, 3, 1))
    x = jnp.pad(x, ((0, 0), (Pmax, Pmax), (0, 0), (0, Ci - Cin)))
    x = x.reshape(N, Hin, W * Ci).astype(jnp.bfloat16)

    kernel = functools.partial(_msnet_block2_kernel, Ks=STREAM_KS, H=H, W=W,
                               Ci=Ci, Cout=Cout, Pmax=Pmax)

    in_specs = [pl.BlockSpec((None, Hin, W * Ci), lambda n: (n, 0, 0))]
    args = [x]
    for s in streams:
        for key in ("w0", "s0", "w1", "s1"):
            in_specs.append(pl.BlockSpec(s[key].shape, lambda n: (0, 0)))
            args.append(s[key])
    in_specs.append(pl.BlockSpec(csel.shape, lambda n: (0, 0, 0)))
    args.append(csel)

    Hs = ((H + 2 * Pmax + 7) // 8) * 8                 # shared conv0-output scratch rows

    outs = pl.pallas_call(
        kernel,
        out_shape=tuple(jax.ShapeDtypeStruct((N, Ho, Wo * Cout), jnp.float32)
                        for _ in range(3)),
        grid=(N,),                                     # one grid step per image
        in_specs=in_specs,
        out_specs=tuple(pl.BlockSpec((None, Ho, Wo * Cout), lambda n: (n, 0, 0))
                        for _ in range(3)),
        scratch_shapes=[pltpu.VMEM((Hs, Wc), jnp.bfloat16),   # conv0 out + height halo
                        pltpu.VMEM((H, Wc), jnp.float32)],    # conv1 out (row pool src)
        compiler_params=pltpu.CompilerParams(
            dimension_semantics=("parallel",)),        # images -> megacore shards
    )(*args)

    # 3 x (N, Ho, Wo*Cout) -> (N, 3*Cout, Ho, Wo): channel concat A|B|C like torch.cat.
    out = jnp.stack(outs, axis=0).reshape(3, N, Ho, Wo, Cout)
    return jnp.transpose(out, (1, 0, 4, 2, 3)).reshape(N, 3 * Cout, Ho, Wo)


# --------------------------- parameters & reference ---------------------------

def init_params(key, in_channel, out_channel):
    """Deterministic synthetic parameters for the 3 streams (k = 3, 7, 11)."""
    params = {}
    for name, k in zip(("A", "B", "C"), STREAM_KS):
        for li, cin in enumerate((in_channel, out_channel)):
            key, kw, kb, kg, kbe, km, kv = jax.random.split(key, 7)
            params[f"{name}{li}"] = dict(
                w=0.05 * jax.random.normal(kw, (out_channel, cin, k, k), jnp.float32),
                b=0.05 * jax.random.normal(kb, (out_channel,), jnp.float32),
                gamma=1.0 + 0.1 * jax.random.normal(kg, (out_channel,), jnp.float32),
                beta=0.1 * jax.random.normal(kbe, (out_channel,), jnp.float32),
                mean=0.1 * jax.random.normal(km, (out_channel,), jnp.float32),
                var=1.0 + 0.1 * jnp.abs(jax.random.normal(kv, (out_channel,), jnp.float32)),
            )
    return params


def _ref_conv_bn_relu(x_nhwc, p, eps=1e-5):
    w = jnp.transpose(p["w"], (2, 3, 1, 0))  # OIHW -> HWIO
    y = jax.lax.conv_general_dilated(
        x_nhwc, w, window_strides=(1, 1), padding="SAME",
        dimension_numbers=("NHWC", "HWIO", "NHWC"))
    y = y + p["b"]
    y = (y - p["mean"]) * (p["gamma"] / jnp.sqrt(p["var"] + eps)) + p["beta"]
    return jnp.maximum(y, 0.0)


def _ref_forward(params, x_nchw):
    x = jnp.transpose(x_nchw, (0, 2, 3, 1))
    outs = []
    for name in ("A", "B", "C"):
        h = _ref_conv_bn_relu(x, params[f"{name}0"])
        h = _ref_conv_bn_relu(h, params[f"{name}1"])
        N, H, W, C = h.shape
        h = jnp.max(h.reshape(N, H // 2, 2, W // 2, 2, C), axis=(2, 4))
        outs.append(h)
    return jnp.transpose(jnp.concatenate(outs, axis=-1), (0, 3, 1, 2))


# ----------------------------------- main -------------------------------------

if __name__ == "__main__":
    in_channel, out_channel, part_num, down_rate = 4, 8, 4, 2
    N, H, W = 2, 16, 16

    key = jax.random.PRNGKey(0)
    kp, kx, ka = jax.random.split(key, 3)
    params = init_params(kp, in_channel, out_channel)
    x = jax.random.normal(kx, (N, in_channel, H, W), jnp.float32)
    asc_part = jax.random.normal(ka, (N, part_num, H, W), jnp.float32)  # unused (identity attn)

    prepped = prepare_params(params, W, in_channel)   # one-time, hoisted out of forward
    fwd = jax.jit(msnet_basic_block_2)
    out = jax.block_until_ready(fwd(prepped, x, asc_part))

    assert out.shape == (N, 3 * out_channel, H // 2, W // 2), out.shape

    ref = jax.block_until_ready(_ref_forward(params, x))
    max_err = float(jnp.max(jnp.abs(out - ref)))
    # bf16 conv operands (f32 accumulation) -> allow ~bf16-level tolerance vs f32 reference.
    assert jnp.allclose(out, ref, atol=5e-2, rtol=5e-2), max_err

    print("KERNEL_OK")
</pallas_src>

<mosaic_0001>
module attributes {stable_mosaic.version = 11 : i64} {
  func.func @_msnet_block2_kernel(%arg0: i32, %arg1: memref<1x26x128xbf16, #tpu.memory_space<vmem>>, %arg2: memref<384x128xbf16, #tpu.memory_space<vmem>>, %arg3: memref<1x128xf32, #tpu.memory_space<vmem>>, %arg4: memref<384x128xbf16, #tpu.memory_space<vmem>>, %arg5: memref<1x128xf32, #tpu.memory_space<vmem>>, %arg6: memref<896x128xbf16, #tpu.memory_space<vmem>>, %arg7: memref<1x128xf32, #tpu.memory_space<vmem>>, %arg8: memref<896x128xbf16, #tpu.memory_space<vmem>>, %arg9: memref<1x128xf32, #tpu.memory_space<vmem>>, %arg10: memref<1408x128xbf16, #tpu.memory_space<vmem>>, %arg11: memref<1x128xf32, #tpu.memory_space<vmem>>, %arg12: memref<1408x128xbf16, #tpu.memory_space<vmem>>, %arg13: memref<1x128xf32, #tpu.memory_space<vmem>>, %arg14: memref<2x128x64xf32, #tpu.memory_space<vmem>>, %arg15: memref<1x8x64xf32, #tpu.memory_space<vmem>>, %arg16: memref<1x8x64xf32, #tpu.memory_space<vmem>>, %arg17: memref<1x8x64xf32, #tpu.memory_space<vmem>>, %arg18: memref<32x128xbf16, #tpu.memory_space<vmem>>, %arg19: memref<16x128xf32, #tpu.memory_space<vmem>>) attributes {dimension_semantics = [#tpu.dimension_semantics<parallel>], iteration_bounds = array<i64: 2>, scalar_prefetch = 0 : i64, scratch_operands = 2 : i64, tpu.core_type = #tpu.core_type<tc>, window_params = [{transform_indices = @transform_0, window_bounds = array<i64: 1, 26, 128>}, {pipeline_mode = #tpu.pipeline_mode<synchronous>, transform_indices = @transform_1, window_bounds = array<i64: 384, 128>}, {pipeline_mode = #tpu.pipeline_mode<synchronous>, transform_indices = @transform_2, window_bounds = array<i64: 1, 128>}, {pipeline_mode = #tpu.pipeline_mode<synchronous>, transform_indices = @transform_3, window_bounds = array<i64: 384, 128>}, {pipeline_mode = #tpu.pipeline_mode<synchronous>, transform_indices = @transform_4, window_bounds = array<i64: 1, 128>}, {pipeline_mode = #tpu.pipeline_mode<synchronous>, transform_indices = @transform_5, window_bounds = array<i64: 896, 128>}, {pipeline_mode = #tpu.pipeline_mode<synchronous>, transform_indices = @transform_6, window_bounds = array<i64: 1, 128>}, {pipeline_mode = #tpu.pipeline_mode<synchronous>, transform_indices = @transform_7, window_bounds = array<i64: 896, 128>}, {pipeline_mode = #tpu.pipeline_mode<synchronous>, transform_indices = @transform_8, window_bounds = array<i64: 1, 128>}, {pipeline_mode = #tpu.pipeline_mode<synchronous>, transform_indices = @transform_9, window_bounds = array<i64: 1408, 128>}, {pipeline_mode = #tpu.pipeline_mode<synchronous>, transform_indices = @transform_10, window_bounds = array<i64: 1, 128>}, {pipeline_mode = #tpu.pipeline_mode<synchronous>, transform_indices = @transform_11, window_bounds = array<i64: 1408, 128>}, {pipeline_mode = #tpu.pipeline_mode<synchronous>, transform_indices = @transform_12, window_bounds = array<i64: 1, 128>}, {pipeline_mode = #tpu.pipeline_mode<synchronous>, transform_indices = @transform_13, window_bounds = array<i64: 2, 128, 64>}, {transform_indices = @transform_14, window_bounds = array<i64: 1, 8, 64>}, {transform_indices = @transform_15, window_bounds = array<i64: 1, 8, 64>}, {transform_indices = @transform_16, window_bounds = array<i64: 1, 8, 64>}]} {
    %c0 = arith.constant 0 : index
    %c0_0 = arith.constant 0 : index
    %c0_1 = arith.constant 0 : index
    %0 = vector.load %arg1[%c0, %c0_0, %c0_1] : memref<1x26x128xbf16, #tpu.memory_space<vmem>>, vector<1x16x128xbf16>
    %1 = vector.shape_cast %0 : vector<1x16x128xbf16> to vector<16x128xbf16>
    %c0_2 = arith.constant 0 : index
    %c1 = arith.constant 1 : index
    %c0_3 = arith.constant 0 : index
    %2 = vector.load %arg1[%c0_2, %c1, %c0_3] : memref<1x26x128xbf16, #tpu.memory_space<vmem>>, vector<1x16x128xbf16>
    %3 = vector.shape_cast %2 : vector<1x16x128xbf16> to vector<16x128xbf16>
    %c0_4 = arith.constant 0 : index
    %c2 = arith.constant 2 : index
    %c0_5 = arith.constant 0 : index
    %4 = vector.load %arg1[%c0_4, %c2, %c0_5] : memref<1x26x128xbf16, #tpu.memory_space<vmem>>, vector<1x16x128xbf16>
    %5 = vector.shape_cast %4 : vector<1x16x128xbf16> to vector<16x128xbf16>
    %c0_6 = arith.constant 0 : index
    %c3 = arith.constant 3 : index
    %c0_7 = arith.constant 0 : index
    %6 = vector.load %arg1[%c0_6, %c3, %c0_7] : memref<1x26x128xbf16, #tpu.memory_space<vmem>>, vector<1x16x128xbf16>
    %7 = vector.shape_cast %6 : vector<1x16x128xbf16> to vector<16x128xbf16>
    %c0_8 = arith.constant 0 : index
    %c4 = arith.constant 4 : index
    %c0_9 = arith.constant 0 : index
    %8 = vector.load %arg1[%c0_8, %c4, %c0_9] : memref<1x26x128xbf16, #tpu.memory_space<vmem>>, vector<1x16x128xbf16>
    %9 = vector.shape_cast %8 : vector<1x16x128xbf16> to vector<16x128xbf16>
    %c0_10 = arith.constant 0 : index
    %c5 = arith.constant 5 : index
    %c0_11 = arith.constant 0 : index
    %10 = vector.load %arg1[%c0_10, %c5, %c0_11] : memref<1x26x128xbf16, #tpu.memory_space<vmem>>, vector<1x16x128xbf16>
    %11 = vector.shape_cast %10 : vector<1x16x128xbf16> to vector<16x128xbf16>
    %c0_12 = arith.constant 0 : index
    %c6 = arith.constant 6 : index
    %c0_13 = arith.constant 0 : index
    %12 = vector.load %arg1[%c0_12, %c6, %c0_13] : memref<1x26x128xbf16, #tpu.memory_space<vmem>>, vector<1x16x128xbf16>
    %13 = vector.shape_cast %12 : vector<1x16x128xbf16> to vector<16x128xbf16>
    %c0_14 = arith.constant 0 : index
    %c7 = arith.constant 7 : index
    %c0_15 = arith.constant 0 : index
    %14 = vector.load %arg1[%c0_14, %c7, %c0_15] : memref<1x26x128xbf16, #tpu.memory_space<vmem>>, vector<1x16x128xbf16>
    %15 = vector.shape_cast %14 : vector<1x16x128xbf16> to vector<16x128xbf16>
    %c0_16 = arith.constant 0 : index
    %c8 = arith.constant 8 : index
    %c0_17 = arith.constant 0 : index
    %16 = vector.load %arg1[%c0_16, %c8, %c0_17] : memref<1x26x128xbf16, #tpu.memory_space<vmem>>, vector<1x16x128xbf16>
    %17 = vector.shape_cast %16 : vector<1x16x128xbf16> to vector<16x128xbf16>
    %c0_18 = arith.constant 0 : index
    %c9 = arith.constant 9 : index
    %c0_19 = arith.constant 0 : index
    %18 = vector.load %arg1[%c0_18, %c9, %c0_19] : memref<1x26x128xbf16, #tpu.memory_space<vmem>>, vector<1x16x128xbf16>
    %19 = vector.shape_cast %18 : vector<1x16x128xbf16> to vector<16x128xbf16>
    %c0_20 = arith.constant 0 : index
    %c10 = arith.constant 10 : index
    %c0_21 = arith.constant 0 : index
    %20 = vector.load %arg1[%c0_20, %c10, %c0_21] : memref<1x26x128xbf16, #tpu.memory_space<vmem>>, vector<1x16x128xbf16>
    %21 = vector.shape_cast %20 : vector<1x16x128xbf16> to vector<16x128xbf16>
    %22 = tpu.concatenate %1, %3, %5, %7, %9, %11, %13, %15, %17, %19, %21 in 1 : vector<16x128xbf16>, vector<16x128xbf16>, vector<16x128xbf16>, vector<16x128xbf16>, vector<16x128xbf16>, vector<16x128xbf16>, vector<16x128xbf16>, vector<16x128xbf16>, vector<16x128xbf16>, vector<16x128xbf16>, vector<16x128xbf16> -> vector<16x1408xbf16>
    %23 = vector.extract_strided_slice %22 {offsets = [0, 512], sizes = [16, 384], strides = [1, 1]} : vector<16x1408xbf16> to vector<16x384xbf16>
    %c0_22 = arith.constant 0 : index
    %c0_23 = arith.constant 0 : index
    %24 = vector.load %arg2[%c0_22, %c0_23] : memref<384x128xbf16, #tpu.memory_space<vmem>>, vector<384x128xbf16>
    %cst = arith.constant dense<0.000000e+00> : vector<16x128xf32>
    %25 = tpu.matmul %23, %24, %cst {dimension_numbers = #tpu.dot_dimension_numbers<[1], [0], [0], [1], [0, 0, 1, 1], [], []>} : vector<16x384xbf16>, vector<384x128xbf16>, vector<16x128xf32> -> vector<16x128xf32>
    %c0_24 = arith.constant 0 : index
    %c0_25 = arith.constant 0 : index
    %26 = vector.load %arg3[%c0_24, %c0_25] : memref<1x128xf32, #tpu.memory_space<vmem>>, vector<1x128xf32>
    %27 = vector.broadcast %26 : vector<1x128xf32> to vector<16x128xf32>
    %28 = arith.addf %25, %27 : vector<16x128xf32>
    %cst_26 = arith.constant 0.000000e+00 : f32
    %29 = vector.broadcast %cst_26 : f32 to vector<16x128xf32>
    %30 = arith.maximumf %28, %29 : vector<16x128xf32>
    %cst_27 = arith.constant 0.000000e+00 : bf16
    %31 = vector.broadcast %cst_27 : bf16 to vector<1x128xbf16>
    %c0_28 = arith.constant 0 : index
    %c0_29 = arith.constant 0 : index
    %32 = vector.load %arg18[%c0_28, %c0_29] : memref<32x128xbf16, #tpu.memory_space<vmem>>, vector<1x128xbf16>
    tpu.vector_store %arg18[%c0_28, %c0_29], %31 {strides = array<i32>} : memref<32x128xbf16, #tpu.memory_space<vmem>>, vector<1x128xbf16>,
    %33 = arith.truncf %30 : vector<16x128xf32> to vector<16x128xbf16>
    %c1_30 = arith.constant 1 : index
    %c0_31 = arith.constant 0 : index
    %34 = vector.load %arg18[%c1_30, %c0_31] : memref<32x128xbf16, #tpu.memory_space<vmem>>, vector<16x128xbf16>
    tpu.vector_store %arg18[%c1_30, %c0_31], %33 {strides = array<i32>} : memref<32x128xbf16, #tpu.memory_space<vmem>>, vector<16x128xbf16>,
    %cst_32 = arith.constant 0.000000e+00 : bf16
    %35 = vector.broadcast %cst_32 : bf16 to vector<1x128xbf16>
    %c17 = arith.constant 17 : index
    %c0_33 = arith.constant 0 : index
    %36 = vector.load %arg18[%c17, %c0_33] : memref<32x128xbf16, #tpu.memory_space<vmem>>, vector<1x128xbf16>
    tpu.vector_store %arg18[%c17, %c0_33], %35 {strides = array<i32>} : memref<32x128xbf16, #tpu.memory_space<vmem>>, vector<1x128xbf16>,
    %c0_34 = arith.constant 0 : index
    %c0_35 = arith.constant 0 : index
    %37 = vector.load %arg18[%c0_34, %c0_35] : memref<32x128xbf16, #tpu.memory_space<vmem>>, vector<16x128xbf16>
    %c1_36 = arith.constant 1 : index
    %c0_37 = arith.constant 0 : index
    %38 = vector.load %arg18[%c1_36, %c0_37] : memref<32x128xbf16, #tpu.memory_space<vmem>>, vector<16x128xbf16>
    %c2_38 = arith.constant 2 : index
    %c0_39 = arith.constant 0 : index
    %39 = vector.load %arg18[%c2_38, %c0_39] : memref<32x128xbf16, #tpu.memory_space<vmem>>, vector<16x128xbf16>
    %40 = tpu.concatenate %37, %38, %39 in 1 : vector<16x128xbf16>, vector<16x128xbf16>, vector<16x128xbf16> -> vector<16x384xbf16>
    %c0_40 = arith.constant 0 : index
    %c0_41 = arith.constant 0 : index
    %41 = vector.load %arg4[%c0_40, %c0_41] : memref<384x128xbf16, #tpu.memory_space<vmem>>, vector<384x128xbf16>
    %cst_42 = arith.constant dense<0.000000e+00> : vector<16x128xf32>
    %42 = tpu.matmul %40, %41, %cst_42 {dimension_numbers = #tpu.dot_dimension_numbers<[1], [0], [0], [1], [0, 0, 1, 1], [], []>} : vector<16x384xbf16>, vector<384x128xbf16>, vector<16x128xf32> -> vector<16x128xf32>
    %c0_43 = arith.constant 0 : index
    %c0_44 = arith.constant 0 : index
    %43 = vector.load %arg5[%c0_43, %c0_44] : memref<1x128xf32, #tpu.memory_space<vmem>>, vector<1x128xf32>
    %44 = vector.broadcast %43 : vector<1x128xf32> to vector<16x128xf32>
    %45 = arith.addf %42, %44 : vector<16x128xf32>
    %cst_45 = arith.constant 0.000000e+00 : f32
    %46 = vector.broadcast %cst_45 : f32 to vector<16x128xf32>
    %47 = arith.maximumf %45, %46 : vector<16x128xf32>
    %c0_46 = arith.constant 0 : index
    %c0_47 = arith.constant 0 : index
    %48 = vector.load %arg19[%c0_46, %c0_47] : memref<16x128xf32, #tpu.memory_space<vmem>>, vector<16x128xf32>
    tpu.vector_store %arg19[%c0_46, %c0_47], %47 {strides = array<i32>} : memref<16x128xf32, #tpu.memory_space<vmem>>, vector<16x128xf32>,
    %c0_48 = arith.constant 0 : index
    %c0_49 = arith.constant 0 : index
    %49 = tpu.strided_load %arg19[%c0_48, %c0_49] {strides = array<i32: 2, 1>} : memref<16x128xf32, #tpu.memory_space<vmem>>, vector<8x128xf32>
    %c1_50 = arith.constant 1 : index
    %c0_51 = arith.constant 0 : index
    %50 = tpu.strided_load %arg19[%c1_50, %c0_51] {strides = array<i32: 2, 1>} : memref<16x128xf32, #tpu.memory_space<vmem>>, vector<8x128xf32>
    %51 = arith.maximumf %49, %50 : vector<8x128xf32>
    %c0_52 = arith.constant 0 : index
    %c0_53 = arith.constant 0 : index
    %c0_54 = arith.constant 0 : index
    %52 = vector.load %arg14[%c0_52, %c0_53, %c0_54] : memref<2x128x64xf32, #tpu.memory_space<vmem>>, vector<1x128x64xf32>
    %53 = vector.shape_cast %52 : vector<1x128x64xf32> to vector<128x64xf32>
    %cst_55 = arith.constant dense<0.000000e+00> : vector<8x64xf32>
    %54 = tpu.matmul %51, %53, %cst_55 {dimension_numbers = #tpu.dot_dimension_numbers<[1], [0], [0], [1], [0, 0, 1, 1], [], []>} : vector<8x128xf32>, vector<128x64xf32>, vector<8x64xf32> -> vector<8x64xf32>
    %c1_56 = arith.constant 1 : index
    %c0_57 = arith.constant 0 : index
    %c0_58 = arith.constant 0 : index
    %55 = vector.load %arg14[%c1_56, %c0_57, %c0_58] : memref<2x128x64xf32, #tpu.memory_space<vmem>>, vector<1x128x64xf32>
    %56 = vector.shape_cast %55 : vector<1x128x64xf32> to vector<128x64xf32>
    %cst_59 = arith.constant dense<0.000000e+00> : vector<8x64xf32>
    %57 = tpu.matmul %51, %56, %cst_59 {dimension_numbers = #tpu.dot_dimension_numbers<[1], [0], [0], [1], [0, 0, 1, 1], [], []>} : vector<8x128xf32>, vector<128x64xf32>, vector<8x64xf32> -> vector<8x64xf32>
    %58 = arith.maximumf %54, %57 : vector<8x64xf32>
    %c0_60 = arith.constant 0 : index
    %c0_61 = arith.constant 0 : index
    %c0_62 = arith.constant 0 : index
    %59 = vector.load %arg15[%c0_60, %c0_61, %c0_62] : memref<1x8x64xf32, #tpu.memory_space<vmem>>, vector<1x8x64xf32>
    %60 = vector.shape_cast %59 : vector<1x8x64xf32> to vector<8x64xf32>
    %61 = vector.shape_cast %58 : vector<8x64xf32> to vector<1x8x64xf32>
    tpu.vector_store %arg15[%c0_60, %c0_61, %c0_62], %61 {strides = array<i32>} : memref<1x8x64xf32, #tpu.memory_space<vmem>>, vector<1x8x64xf32>,
    %62 = vector.extract_strided_slice %22 {offsets = [0, 256], sizes = [16, 896], strides = [1, 1]} : vector<16x1408xbf16> to vector<16x896xbf16>
    %c0_63 = arith.constant 0 : index
    %c0_64 = arith.constant 0 : index
    %63 = vector.load %arg6[%c0_63, %c0_64] : memref<896x128xbf16, #tpu.memory_space<vmem>>, vector<896x128xbf16>
    %cst_65 = arith.constant dense<0.000000e+00> : vector<16x128xf32>
    %64 = tpu.matmul %62, %63, %cst_65 {dimension_numbers = #tpu.dot_dimension_numbers<[1], [0], [0], [1], [0, 0, 1, 1], [], []>} : vector<16x896xbf16>, vector<896x128xbf16>, vector<16x128xf32> -> vector<16x128xf32>
    %c0_66 = arith.constant 0 : index
    %c0_67 = arith.constant 0 : index
    %65 = vector.load %arg7[%c0_66, %c0_67] : memref<1x128xf32, #tpu.memory_space<vmem>>, vector<1x128xf32>
    %66 = vector.broadcast %65 : vector<1x128xf32> to vector<16x128xf32>
    %67 = arith.addf %64, %66 : vector<16x128xf32>
    %cst_68 = arith.constant 0.000000e+00 : f32
    %68 = vector.broadcast %cst_68 : f32 to vector<16x128xf32>
    %69 = arith.maximumf %67, %68 : vector<16x128xf32>
    %cst_69 = arith.constant 0.000000e+00 : bf16
    %70 = vector.broadcast %cst_69 : bf16 to vector<3x128xbf16>
    %c0_70 = arith.constant 0 : index
    %c0_71 = arith.constant 0 : index
    %71 = vector.load %arg18[%c0_70, %c0_71] : memref<32x128xbf16, #tpu.memory_space<vmem>>, vector<3x128xbf16>
    tpu.vector_store %arg18[%c0_70, %c0_71], %70 {strides = array<i32>} : memref<32x128xbf16, #tpu.memory_space<vmem>>, vector<3x128xbf16>,
    %72 = arith.truncf %69 : vector<16x128xf32> to vector<16x128xbf16>
    %c3_72 = arith.constant 3 : index
    %c0_73 = arith.constant 0 : index
    %73 = vector.load %arg18[%c3_72, %c0_73] : memref<32x128xbf16, #tpu.memory_space<vmem>>, vector<16x128xbf16>
    tpu.vector_store %arg18[%c3_72, %c0_73], %72 {strides = array<i32>} : memref<32x128xbf16, #tpu.memory_space<vmem>>, vector<16x128xbf16>,
    %cst_74 = arith.constant 0.000000e+00 : bf16
    %74 = vector.broadcast %cst_74 : bf16 to vector<3x128xbf16>
    %c19 = arith.constant 19 : index
    %c0_75 = arith.constant 0 : index
    %75 = vector.load %arg18[%c19, %c0_75] : memref<32x128xbf16, #tpu.memory_space<vmem>>, vector<3x128xbf16>
    tpu.vector_store %arg18[%c19, %c0_75], %74 {strides = array<i32>} : memref<32x128xbf16, #tpu.memory_space<vmem>>, vector<3x128xbf16>,
    %c0_76 = arith.constant 0 : index
    %c0_77 = arith.constant 0 : index
    %76 = vector.load %arg18[%c0_76, %c0_77] : memref<32x128xbf16, #tpu.memory_space<vmem>>, vector<16x128xbf16>
    %c1_78 = arith.constant 1 : index
    %c0_79 = arith.constant 0 : index
    %77 = vector.load %arg18[%c1_78, %c0_79] : memref<32x128xbf16, #tpu.memory_space<vmem>>, vector<16x128xbf16>
    %c2_80 = arith.constant 2 : index
    %c0_81 = arith.constant 0 : index
    %78 = vector.load %arg18[%c2_80, %c0_81] : memref<32x128xbf16, #tpu.memory_space<vmem>>, vector<16x128xbf16>
    %c3_82 = arith.constant 3 : index
    %c0_83 = arith.constant 0 : index
    %79 = vector.load %arg18[%c3_82, %c0_83] : memref<32x128xbf16, #tpu.memory_space<vmem>>, vector<16x128xbf16>
    %c4_84 = arith.constant 4 : index
    %c0_85 = arith.constant 0 : index
    %80 = vector.load %arg18[%c4_84, %c0_85] : memref<32x128xbf16, #tpu.memory_space<vmem>>, vector<16x128xbf16>
    %c5_86 = arith.constant 5 : index
    %c0_87 = arith.constant 0 : index
    %81 = vector.load %arg18[%c5_86, %c0_87] : memref<32x128xbf16, #tpu.memory_space<vmem>>, vector<16x128xbf16>
    %c6_88 = arith.constant 6 : index
    %c0_89 = arith.constant 0 : index
    %82 = vector.load %arg18[%c6_88, %c0_89] : memref<32x128xbf16, #tpu.memory_space<vmem>>, vector<16x128xbf16>
    %83 = tpu.concatenate %76, %77, %78, %79, %80, %81, %82 in 1 : vector<16x128xbf16>, vector<16x128xbf16>, vector<16x128xbf16>, vector<16x128xbf16>, vector<16x128xbf16>, vector<16x128xbf16>, vector<16x128xbf16> -> vector<16x896xbf16>
    %c0_90 = arith.constant 0 : index
    %c0_91 = arith.constant 0 : index
    %84 = vector.load %arg8[%c0_90, %c0_91] : memref<896x128xbf16, #tpu.memory_space<vmem>>, vector<896x128xbf16>
    %cst_92 = arith.constant dense<0.000000e+00> : vector<16x128xf32>
    %85 = tpu.matmul %83, %84, %cst_92 {dimension_numbers = #tpu.dot_dimension_numbers<[1], [0], [0], [1], [0, 0, 1, 1], [], []>} : vector<16x896xbf16>, vector<896x128xbf16>, vector<16x128xf32> -> vector<16x128xf32>
    %c0_93 = arith.constant 0 : index
    %c0_94 = arith.constant 0 : index
    %86 = vector.load %arg9[%c0_93, %c0_94] : memref<1x128xf32, #tpu.memory_space<vmem>>, vector<1x128xf32>
    %87 = vector.broadcast %86 : vector<1x128xf32> to vector<16x128xf32>
    %88 = arith.addf %85, %87 : vector<16x128xf32>
    %cst_95 = arith.constant 0.000000e+00 : f32
    %89 = vector.broadcast %cst_95 : f32 to vector<16x128xf32>
    %90 = arith.maximumf %88, %89 : vector<16x128xf32>
    %c0_96 = arith.constant 0 : index
    %c0_97 = arith.constant 0 : index
    %91 = vector.load %arg19[%c0_96, %c0_97] : memref<16x128xf32, #tpu.memory_space<vmem>>, vector<16x128xf32>
    tpu.vector_store %arg19[%c0_96, %c0_97], %90 {strides = array<i32>} : memref<16x128xf32, #tpu.memory_space<vmem>>, vector<16x128xf32>,
    %c0_98 = arith.constant 0 : index
    %c0_99 = arith.constant 0 : index
    %92 = tpu.strided_load %arg19[%c0_98, %c0_99] {strides = array<i32: 2, 1>} : memref<16x128xf32, #tpu.memory_space<vmem>>, vector<8x128xf32>
    %c1_100 = arith.constant 1 : index
    %c0_101 = arith.constant 0 : index
    %93 = tpu.strided_load %arg19[%c1_100, %c0_101] {strides = array<i32: 2, 1>} : memref<16x128xf32, #tpu.memory_space<vmem>>, vector<8x128xf32>
    %94 = arith.maximumf %92, %93 : vector<8x128xf32>
    %c0_102 = arith.constant 0 : index
    %c0_103 = arith.constant 0 : index
    %c0_104 = arith.constant 0 : index
    %95 = vector.load %arg14[%c0_102, %c0_103, %c0_104] : memref<2x128x64xf32, #tpu.memory_space<vmem>>, vector<1x128x64xf32>
    %96 = vector.shape_cast %95 : vector<1x128x64xf32> to vector<128x64xf32>
    %cst_105 = arith.constant dense<0.000000e+00> : vector<8x64xf32>
    %97 = tpu.matmul %94, %96, %cst_105 {dimension_numbers = #tpu.dot_dimension_numbers<[1], [0], [0], [1], [0, 0, 1, 1], [], []>} : vector<8x128xf32>, vector<128x64xf32>, vector<8x64xf32> -> vector<8x64xf32>
    %c1_106 = arith.constant 1 : index
    %c0_107 = arith.constant 0 : index
    %c0_108 = arith.constant 0 : index
    %98 = vector.load %arg14[%c1_106, %c0_107, %c0_108] : memref<2x128x64xf32, #tpu.memory_space<vmem>>, vector<1x128x64xf32>
    %99 = vector.shape_cast %98 : vector<1x128x64xf32> to vector<128x64xf32>
    %cst_109 = arith.constant dense<0.000000e+00> : vector<8x64xf32>
    %100 = tpu.matmul %94, %99, %cst_109 {dimension_numbers = #tpu.dot_dimension_numbers<[1], [0], [0], [1], [0, 0, 1, 1], [], []>} : vector<8x128xf32>, vector<128x64xf32>, vector<8x64xf32> -> vector<8x64xf32>
    %101 = arith.maximumf %97, %100 : vector<8x64xf32>
    %c0_110 = arith.constant 0 : index
    %c0_111 = arith.constant 0 : index
    %c0_112 = arith.constant 0 : index
    %102 = vector.load %arg16[%c0_110, %c0_111, %c0_112] : memref<1x8x64xf32, #tpu.memory_space<vmem>>, vector<1x8x64xf32>
    %103 = vector.shape_cast %102 : vector<1x8x64xf32> to vector<8x64xf32>
    %104 = vector.shape_cast %101 : vector<8x64xf32> to vector<1x8x64xf32>
    tpu.vector_store %arg16[%c0_110, %c0_111, %c0_112], %104 {strides = array<i32>} : memref<1x8x64xf32, #tpu.memory_space<vmem>>, vector<1x8x64xf32>,
    %c0_113 = arith.constant 0 : index
    %c0_114 = arith.constant 0 : index
    %105 = vector.load %arg10[%c0_113, %c0_114] : memref<1408x128xbf16, #tpu.memory_space<vmem>>, vector<1408x128xbf16>
    %cst_115 = arith.constant dense<0.000000e+00> : vector<16x128xf32>
    %106 = tpu.matmul %22, %105, %cst_115 {dimension_numbers = #tpu.dot_dimension_numbers<[1], [0], [0], [1], [0, 0, 1, 1], [], []>} : vector<16x1408xbf16>, vector<1408x128xbf16>, vector<16x128xf32> -> vector<16x128xf32>
    %c0_116 = arith.constant 0 : index
    %c0_117 = arith.constant 0 : index
    %107 = vector.load %arg11[%c0_116, %c0_117] : memref<1x128xf32, #tpu.memory_space<vmem>>, vector<1x128xf32>
    %108 = vector.broadcast %107 : vector<1x128xf32> to vector<16x128xf32>
    %109 = arith.addf %106, %108 : vector<16x128xf32>
    %cst_118 = arith.constant 0.000000e+00 : f32
    %110 = vector.broadcast %cst_118 : f32 to vector<16x128xf32>
    %111 = arith.maximumf %109, %110 : vector<16x128xf32>
    %cst_119 = arith.constant 0.000000e+00 : bf16
    %112 = vector.broadcast %cst_119 : bf16 to vector<5x128xbf16>
    %c0_120 = arith.constant 0 : index
    %c0_121 = arith.constant 0 : index
    %113 = vector.load %arg18[%c0_120, %c0_121] : memref<32x128xbf16, #tpu.memory_space<vmem>>, vector<5x128xbf16>
    tpu.vector_store %arg18[%c0_120, %c0_121], %112 {strides = array<i32>} : memref<32x128xbf16, #tpu.memory_space<vmem>>, vector<5x128xbf16>,
    %114 = arith.truncf %111 : vector<16x128xf32> to vector<16x128xbf16>
    %c5_122 = arith.constant 5 : index
    %c0_123 = arith.constant 0 : index
    %115 = vector.load %arg18[%c5_122, %c0_123] : memref<32x128xbf16, #tpu.memory_space<vmem>>, vector<16x128xbf16>
    tpu.vector_store %arg18[%c5_122, %c0_123], %114 {strides = array<i32>} : memref<32x128xbf16, #tpu.memory_space<vmem>>, vector<16x128xbf16>,
    %cst_124 = arith.constant 0.000000e+00 : bf16
    %116 = vector.broadcast %cst_124 : bf16 to vector<5x128xbf16>
    %c21 = arith.constant 21 : index
    %c0_125 = arith.constant 0 : index
    %117 = vector.load %arg18[%c21, %c0_125] : memref<32x128xbf16, #tpu.memory_space<vmem>>, vector<5x128xbf16>
    tpu.vector_store %arg18[%c21, %c0_125], %116 {strides = array<i32>} : memref<32x128xbf16, #tpu.memory_space<vmem>>, vector<5x128xbf16>,
    %c0_126 = arith.constant 0 : index
    %c0_127 = arith.constant 0 : index
    %118 = vector.load %arg18[%c0_126, %c0_127] : memref<32x128xbf16, #tpu.memory_space<vmem>>, vector<16x128xbf16>
    %c1_128 = arith.constant 1 : index
    %c0_129 = arith.constant 0 : index
    %119 = vector.load %arg18[%c1_128, %c0_129] : memref<32x128xbf16, #tpu.memory_space<vmem>>, vector<16x128xbf16>
    %c2_130 = arith.constant 2 : index
    %c0_131 = arith.constant 0 : index
    %120 = vector.load %arg18[%c2_130, %c0_131] : memref<32x128xbf16, #tpu.memory_space<vmem>>, vector<16x128xbf16>
    %c3_132 = arith.constant 3 : index
    %c0_133 = arith.constant 0 : index
    %121 = vector.load %arg18[%c3_132, %c0_133] : memref<32x128xbf16, #tpu.memory_space<vmem>>, vector<16x128xbf16>
    %c4_134 = arith.constant 4 : index
    %c0_135 = arith.constant 0 : index
    %122 = vector.load %arg18[%c4_134, %c0_135] : memref<32x128xbf16, #tpu.memory_space<vmem>>, vector<16x128xbf16>
    %c5_136 = arith.constant 5 : index
    %c0_137 = arith.constant 0 : index
    %123 = vector.load %arg18[%c5_136, %c0_137] : memref<32x128xbf16, #tpu.memory_space<vmem>>, vector<16x128xbf16>
    %c6_138 = arith.constant 6 : index
    %c0_139 = arith.constant 0 : index
    %124 = vector.load %arg18[%c6_138, %c0_139] : memref<32x128xbf16, #tpu.memory_space<vmem>>, vector<16x128xbf16>
    %c7_140 = arith.constant 7 : index
    %c0_141 = arith.constant 0 : index
    %125 = vector.load %arg18[%c7_140, %c0_141] : memref<32x128xbf16, #tpu.memory_space<vmem>>, vector<16x128xbf16>
    %c8_142 = arith.constant 8 : index
    %c0_143 = arith.constant 0 : index
    %126 = vector.load %arg18[%c8_142, %c0_143] : memref<32x128xbf16, #tpu.memory_space<vmem>>, vector<16x128xbf16>
    %c9_144 = arith.constant 9 : index
    %c0_145 = arith.constant 0 : index
    %127 = vector.load %arg18[%c9_144, %c0_145] : memref<32x128xbf16, #tpu.memory_space<vmem>>, vector<16x128xbf16>
    %c10_146 = arith.constant 10 : index
    %c0_147 = arith.constant 0 : index
    %128 = vector.load %arg18[%c10_146, %c0_147] : memref<32x128xbf16, #tpu.memory_space<vmem>>, vector<16x128xbf16>
    %129 = tpu.concatenate %118, %119, %120, %121, %122, %123, %124, %125, %126, %127, %128 in 1 : vector<16x128xbf16>, vector<16x128xbf16>, vector<16x128xbf16>, vector<16x128xbf16>, vector<16x128xbf16>, vector<16x128xbf16>, vector<16x128xbf16>, vector<16x128xbf16>, vector<16x128xbf16>, vector<16x128xbf16>, vector<16x128xbf16> -> vector<16x1408xbf16>
    %c0_148 = arith.constant 0 : index
    %c0_149 = arith.constant 0 : index
    %130 = vector.load %arg12[%c0_148, %c0_149] : memref<1408x128xbf16, #tpu.memory_space<vmem>>, vector<1408x128xbf16>
    %cst_150 = arith.constant dense<0.000000e+00> : vector<16x128xf32>
    %131 = tpu.matmul %129, %130, %cst_150 {dimension_numbers = #tpu.dot_dimension_numbers<[1], [0], [0], [1], [0, 0, 1, 1], [], []>} : vector<16x1408xbf16>, vector<1408x128xbf16>, vector<16x128xf32> -> vector<16x128xf32>
    %c0_151 = arith.constant 0 : index
    %c0_152 = arith.constant 0 : index
    %132 = vector.load %arg13[%c0_151, %c0_152] : memref<1x128xf32, #tpu.memory_space<vmem>>, vector<1x128xf32>
    %133 = vector.broadcast %132 : vector<1x128xf32> to vector<16x128xf32>
    %134 = arith.addf %131, %133 : vector<16x128xf32>
    %cst_153 = arith.constant 0.000000e+00 : f32
    %135 = vector.broadcast %cst_153 : f32 to vector<16x128xf32>
    %136 = arith.maximumf %134, %135 : vector<16x128xf32>
    %c0_154 = arith.constant 0 : index
    %c0_155 = arith.constant 0 : index
    %137 = vector.load %arg19[%c0_154, %c0_155] : memref<16x128xf32, #tpu.memory_space<vmem>>, vector<16x128xf32>
    tpu.vector_store %arg19[%c0_154, %c0_155], %136 {strides = array<i32>} : memref<16x128xf32, #tpu.memory_space<vmem>>, vector<16x128xf32>,
    %c0_156 = arith.constant 0 : index
    %c0_157 = arith.constant 0 : index
    %138 = tpu.strided_load %arg19[%c0_156, %c0_157] {strides = array<i32: 2, 1>} : memref<16x128xf32, #tpu.memory_space<vmem>>, vector<8x128xf32>
    %c1_158 = arith.constant 1 : index
    %c0_159 = arith.constant 0 : index
    %139 = tpu.strided_load %arg19[%c1_158, %c0_159] {strides = array<i32: 2, 1>} : memref<16x128xf32, #tpu.memory_space<vmem>>, vector<8x128xf32>
    %140 = arith.maximumf %138, %139 : vector<8x128xf32>
    %c0_160 = arith.constant 0 : index
    %c0_161 = arith.constant 0 : index
    %c0_162 = arith.constant 0 : index
    %141 = vector.load %arg14[%c0_160, %c0_161, %c0_162] : memref<2x128x64xf32, #tpu.memory_space<vmem>>, vector<1x128x64xf32>
    %142 = vector.shape_cast %141 : vector<1x128x64xf32> to vector<128x64xf32>
    %cst_163 = arith.constant dense<0.000000e+00> : vector<8x64xf32>
    %143 = tpu.matmul %140, %142, %cst_163 {dimension_numbers = #tpu.dot_dimension_numbers<[1], [0], [0], [1], [0, 0, 1, 1], [], []>} : vector<8x128xf32>, vector<128x64xf32>, vector<8x64xf32> -> vector<8x64xf32>
    %c1_164 = arith.constant 1 : index
    %c0_165 = arith.constant 0 : index
    %c0_166 = arith.constant 0 : index
    %144 = vector.load %arg14[%c1_164, %c0_165, %c0_166] : memref<2x128x64xf32, #tpu.memory_space<vmem>>, vector<1x128x64xf32>
    %145 = vector.shape_cast %144 : vector<1x128x64xf32> to vector<128x64xf32>
    %cst_167 = arith.constant dense<0.000000e+00> : vector<8x64xf32>
    %146 = tpu.matmul %140, %145, %cst_167 {dimension_numbers = #tpu.dot_dimension_numbers<[1], [0], [0], [1], [0, 0, 1, 1], [], []>} : vector<8x128xf32>, vector<128x64xf32>, vector<8x64xf32> -> vector<8x64xf32>
    %147 = arith.maximumf %143, %146 : vector<8x64xf32>
    %c0_168 = arith.constant 0 : index
    %c0_169 = arith.constant 0 : index
    %c0_170 = arith.constant 0 : index
    %148 = vector.load %arg17[%c0_168, %c0_169, %c0_170] : memref<1x8x64xf32, #tpu.memory_space<vmem>>, vector<1x8x64xf32>
    %149 = vector.shape_cast %148 : vector<1x8x64xf32> to vector<8x64xf32>
    %150 = vector.shape_cast %147 : vector<8x64xf32> to vector<1x8x64xf32>
    tpu.vector_store %arg17[%c0_168, %c0_169, %c0_170], %150 {strides = array<i32>} : memref<1x8x64xf32, #tpu.memory_space<vmem>>, vector<1x8x64xf32>,
    return
  }
  func.func @transform_0(%arg0: i32) -> (i32, i32, i32) {
    %c0_i32 = arith.constant 0 : i32
    %c0_i32_0 = arith.constant 0 : i32
    %c0_i32_1 = arith.constant 0 : i32
    return %arg0, %c0_i32, %c0_i32_0 : i32, i32, i32
  }
  func.func @transform_1(%arg0: i32) -> (i32, i32) {
    %c0_i32 = arith.constant 0 : i32
    %c0_i32_0 = arith.constant 0 : i32
    %c0_i32_1 = arith.constant 0 : i32
    return %c0_i32, %c0_i32_0 : i32, i32
  }
  func.func @transform_2(%arg0: i32) -> (i32, i32) {
    %c0_i32 = arith.constant 0 : i32
    %c0_i32_0 = arith.constant 0 : i32
    %c0_i32_1 = arith.constant 0 : i32
    return %c0_i32, %c0_i32_0 : i32, i32
  }
  func.func @transform_3(%arg0: i32) -> (i32, i32) {
    %c0_i32 = arith.constant 0 : i32
    %c0_i32_0 = arith.constant 0 : i32
    %c0_i32_1 = arith.constant 0 : i32
    return %c0_i32, %c0_i32_0 : i32, i32
  }
  func.func @transform_4(%arg0: i32) -> (i32, i32) {
    %c0_i32 = arith.constant 0 : i32
    %c0_i32_0 = arith.constant 0 : i32
    %c0_i32_1 = arith.constant 0 : i32
    return %c0_i32, %c0_i32_0 : i32, i32
  }
  func.func @transform_5(%arg0: i32) -> (i32, i32) {
    %c0_i32 = arith.constant 0 : i32
    %c0_i32_0 = arith.constant 0 : i32
    %c0_i32_1 = arith.constant 0 : i32
    return %c0_i32, %c0_i32_0 : i32, i32
  }
  func.func @transform_6(%arg0: i32) -> (i32, i32) {
    %c0_i32 = arith.constant 0 : i32
    %c0_i32_0 = arith.constant 0 : i32
    %c0_i32_1 = arith.constant 0 : i32
    return %c0_i32, %c0_i32_0 : i32, i32
  }
  func.func @transform_7(%arg0: i32) -> (i32, i32) {
    %c0_i32 = arith.constant 0 : i32
    %c0_i32_0 = arith.constant 0 : i32
    %c0_i32_1 = arith.constant 0 : i32
    return %c0_i32, %c0_i32_0 : i32, i32
  }
  func.func @transform_8(%arg0: i32) -> (i32, i32) {
    %c0_i32 = arith.constant 0 : i32
    %c0_i32_0 = arith.constant 0 : i32
    %c0_i32_1 = arith.constant 0 : i32
    return %c0_i32, %c0_i32_0 : i32, i32
  }
  func.func @transform_9(%arg0: i32) -> (i32, i32) {
    %c0_i32 = arith.constant 0 : i32
    %c0_i32_0 = arith.constant 0 : i32
    %c0_i32_1 = arith.constant 0 : i32
    return %c0_i32, %c0_i32_0 : i32, i32
  }
  func.func @transform_10(%arg0: i32) -> (i32, i32) {
    %c0_i32 = arith.constant 0 : i32
    %c0_i32_0 = arith.constant 0 : i32
    %c0_i32_1 = arith.constant 0 : i32
    return %c0_i32, %c0_i32_0 : i32, i32
  }
  func.func @transform_11(%arg0: i32) -> (i32, i32) {
    %c0_i32 = arith.constant 0 : i32
    %c0_i32_0 = arith.constant 0 : i32
    %c0_i32_1 = arith.constant 0 : i32
    return %c0_i32, %c0_i32_0 : i32, i32
  }
  func.func @transform_12(%arg0: i32) -> (i32, i32) {
    %c0_i32 = arith.constant 0 : i32
    %c0_i32_0 = arith.constant 0 : i32
    %c0_i32_1 = arith.constant 0 : i32
    return %c0_i32, %c0_i32_0 : i32, i32
  }
  func.func @transform_13(%arg0: i32) -> (i32, i32, i32) {
    %c0_i32 = arith.constant 0 : i32
    %c0_i32_0 = arith.constant 0 : i32
    %c0_i32_1 = arith.constant 0 : i32
    %c0_i32_2 = arith.constant 0 : i32
    return %c0_i32, %c0_i32_0, %c0_i32_1 : i32, i32, i32
  }
  func.func @transform_14(%arg0: i32) -> (i32, i32, i32) {
    %c0_i32 = arith.constant 0 : i32
    %c0_i32_0 = arith.constant 0 : i32
    %c0_i32_1 = arith.constant 0 : i32
    return %arg0, %c0_i32, %c0_i32_0 : i32, i32, i32
  }
  func.func @transform_15(%arg0: i32) -> (i32, i32, i32) {
    %c0_i32 = arith.constant 0 : i32
    %c0_i32_0 = arith.constant 0 : i32
    %c0_i32_1 = arith.constant 0 : i32
    return %arg0, %c0_i32, %c0_i32_0 : i32, i32, i32
  }
  func.func @transform_16(%arg0: i32) -> (i32, i32, i32) {
    %c0_i32 = arith.constant 0 : i32
    %c0_i32_0 = arith.constant 0 : i32
    %c0_i32_1 = arith.constant 0 : i32
    return %arg0, %c0_i32, %c0_i32_0 : i32, i32, i32
  }
}

</mosaic_0001>

<bundles_post_ra>
// kernel: msnet_basic_block_2.1
= control target key start
LH: loop header
LB: loop body
LE: loop exit
PB: predicated region body
PF: predicated region fallthrough
CT: control target
= control target key end

     0   :  { %s8658_s0 = inlined_call_operand.vmem [shape: bf16[2,26,128], index: 0, kind: input, shape index: {}]   ;;  %s8659_s1 = inlined_call_operand.vmem [shape: bf16[384,128], index: 1, kind: input, shape index: {}]   ;;  %s8660_s2 = inlined_call_operand.vmem [shape: f32[1,128], index: 2, kind: input, shape index: {}]   ;;  %s8661_s3 = inlined_call_operand.vmem [shape: bf16[384,128], index: 3, kind: input, shape index: {}]   ;;  %s8662_s4 = inlined_call_operand.vmem [shape: f32[1,128], index: 4, kind: input, shape index: {}]   ;;  %s8663_s5 = inlined_call_operand.hbm [shape: bf16[896,128], index: 5, kind: input, shape index: {}]   ;;  %s8664_s6 = inlined_call_operand.vmem [shape: f32[1,128], index: 6, kind: input, shape index: {}]   ;;  %s8665_s7 = inlined_call_operand.hbm [shape: bf16[896,128], index: 7, kind: input, shape index: {}]   ;;  %s8666_s8 = inlined_call_operand.vmem [shape: f32[1,128], index: 8, kind: input, shape index: {}]   ;;  %s8667_s9 = inlined_call_operand.vmem [shape: bf16[1408,128], index: 9, kind: input, shape index: {}]   ;;  %s8668_s10 = inlined_call_operand.vmem [shape: f32[1,128], index: 10, kind: input, shape index: {}]   ;;  %s8669_s11 = inlined_call_operand.hbm [shape: bf16[1408,128], index: 11, kind: input, shape index: {}]   ;;  %s8670_s12 = inlined_call_operand.vmem [shape: f32[1,128], index: 12, kind: input, shape index: {}]   ;;  %s8671_s13 = inlined_call_operand.vmem [shape: f32[2,128,64], index: 13, kind: input, shape index: {}]   ;;  %s8672_s14 = inlined_call_operand.vmem [shape: f32[2,8,64], index: 14, kind: output, shape index: {0}]   ;;  %s8673_s15 = inlined_call_operand.vmem [shape: f32[2,8,64], index: 15, kind: output, shape index: {1}]   ;;  %s8674_s16 = inlined_call_operand.vmem [shape: f32[2,8,64], index: 16, kind: output, shape index: {2}]  }
   0x1   :  { %8679 = sst [smem:[#allocation12_spill]] %s8658_s0 }
   0x2   :  { %8680 = sst [smem:[#allocation13_spill]] %s8668_s10 }
   0x3   :  { %8681 = sst [smem:[#allocation14_spill]] %s8670_s12 }
   0x4   :  { %8682 = sst [smem:[#allocation15_spill]] %s8674_s16 }
   0x5   :  { %22 = vsyncpa [#allocation5], 0 }
   0x6   :  { %23 = vsyncpa [#allocation7], 0  ;;  %s7495_s21 = smov 0  }
   0x7 LB: > { %8683 = sst [smem:[#allocation11_spill]] %s7400_s21  ;;  %s7501_s22 = sadd.s32 4294967295, %s7400_s21   ;;  %s7400_s21 = sphi %s7495_s21, %s29_s21  }
   0x8   : > { %p5465_p0 = scmp.ge.s32.totalorder %s7400_s21, 1  ;;  %p411_p1 = scmp.lt.s32.totalorder %s7400_s21, 3 }
   0x9   : > { %p8675_p2 = scmp.eq.s32.totalorder %s7501_s22, 0  ;;  %s7402_s24 = smov [#allocation6]  }
   0xa   : > { %p7506_p3 = pnand %p5465_p0, %p411_p1  ;;  %s451_s25 = sshll.u32 %s7402_s24, 4  ;;  %s452_s25 = int_to_ptr.vmem [resolvable:$true] %s451_s25 }
   0xb   : > { %s7403_s26 = smov [#allocation4]   ;;  %s7404_s29 = smov [#allocation8]  }
   0xc   : > { %s8684_s23 = scalar_select %p7506_p3, 1, 0 }
   0xd   : > { %p6921_p4 = pneg %p7506_p3  ;;  %s435_s27 = sshll.u32 %s7403_s26, 4  ;;  %s7518_s27 = int_to_ptr.vmem [resolvable:$true] %s435_s27 }
   0xe   : > { %s473_s30 = sshll.u32 %s7404_s29, 4  ;;  %s7302_s18 = scalar_lea.hbm %s8665_s7, 7168  ;;  %s7520_s30 = int_to_ptr.vmem [resolvable:$true] %s473_s30 }
   0xf   : > { %p7514_p5 = pnand %p8675_p2, %p6921_p4  ;;  %p7303_p6 = scmp.ne.s32.totalorder %s8665_s7, %s7302_s18 }
  0x10   : > { %p7309_p10 = scmp.lt.u32.totalorder %s7302_s18, %s8665_s7 }
  0x11   : > { %p7530_p7 = pneg %p7514_p5 }
  0x13   : > { %p7305_p8 = pnand %p7530_p7, %p7303_p6 }
  0x15   : > { %p7306_p9 = pneg %p7305_p8 }
  0x17   : > { %p7311_p11 = pnand %p7309_p10, %p7306_p9 }
  0x19   : > { %7314 = shalt.err (!%p7311_p11)
}
  0x1a   : > { %s7315_s0 = scalar_lea.vmem %s452_s25, 7168  ;;  %p7323_p1 = scmp.lt.s32.totalorder %s452_s25, %s452_s25 }
  0x1b   : > { %p7316_p12 = scmp.ne.s32.totalorder %s452_s25, %s7315_s0  ;;  %p7324_p4 = scmp.lt.s32.totalorder %s7315_s0, %s7315_s0 }
  0x1d   : > { %p7318_p13 = pnand %p7316_p12, %p7530_p7  ;;  %p7325_p2 = por %p7324_p4, %p7323_p1 }
  0x1f   : > { %p7319_p0 = pneg %p7318_p13 }
  0x21   : > { %p7326_p3 = pnand %p7325_p2, %p7319_p0 }
  0x23   : > { %7329 = shalt.err (!%p7326_p3)
}
  0x24   : > { %s7405_s17 = smov 64   ;;  %s7406_s19 = smov 4  }
  0x25   : > { %6927 = dma.hbm_to_vmem [thread:$0]  (!%p7514_p5), %s8665_s7, 7168, %s452_s25, [#allocation7], %s7405_s17, %s7405_s17, %s7406_s19  }
  0x26   : > { %s7330_s21 = scalar_lea.hbm %s8663_s5, 7168 }
  0x27   : > { %p7331_p2 = scmp.ne.s32.totalorder %s8663_s5, %s7330_s21  ;;  %p7337_p8 = scmp.lt.u32.totalorder %s7330_s21, %s8663_s5 }
  0x29   : > { %p7333_p3 = pnand %p7331_p2, %p7530_p7 }
  0x2b   : > { %p7334_p6 = pneg %p7333_p3 }
  0x2d   : > { %p7339_p9 = pnand %p7337_p8, %p7334_p6 }
  0x2f   : > { %7342 = shalt.err (!%p7339_p9)
}
  0x30   : > { %s7343_s25 = scalar_lea.vmem %s7518_s27, 7168  ;;  %p7351_p13 = scmp.lt.s32.totalorder %s7518_s27, %s7518_s27 }
  0x31   : > { %p7344_p10 = scmp.ne.s32.totalorder %s7518_s27, %s7343_s25  ;;  %p7352_p0 = scmp.lt.s32.totalorder %s7343_s25, %s7343_s25 }
  0x33   : > { %p7346_p11 = pnand %p7344_p10, %p7530_p7  ;;  %p7353_p1 = por %p7352_p0, %p7351_p13 }
  0x35   : > { %p7347_p12 = pneg %p7346_p11 }
  0x37   : > { %p7354_p4 = pnand %p7353_p1, %p7347_p12 }
  0x39   : > { %7357 = shalt.err (!%p7354_p4)
}
  0x3a   : > { %6924 = dma.hbm_to_vmem [thread:$0]  (!%p7514_p5), %s8663_s5, 7168, %s7518_s27, [#allocation5], %s7405_s17, %s7405_s17, %s7406_s19  }
  0x3b   : > { %s7358_s18 = scalar_lea.hbm %s8669_s11, 11264 }
  0x3c   : > { %p7359_p2 = scmp.ne.s32.totalorder %s8669_s11, %s7358_s18  ;;  %p7365_p8 = scmp.lt.u32.totalorder %s7358_s18, %s8669_s11 }
  0x3e   : > { %p7361_p3 = pnand %p7359_p2, %p7530_p7 }
  0x40   : > { %p7362_p6 = pneg %p7361_p3 }
  0x42   : > { %p7367_p9 = pnand %p7365_p8, %p7362_p6 }
  0x44   : > { %7370 = shalt.err (!%p7367_p9)
}
  0x45   : > { %s7371_s27 = scalar_lea.vmem %s7520_s30, 11264  ;;  %p7379_p13 = scmp.lt.s32.totalorder %s7520_s30, %s7520_s30 }
  0x46   : > { %p7372_p10 = scmp.ne.s32.totalorder %s7520_s30, %s7371_s27  ;;  %p7380_p0 = scmp.lt.s32.totalorder %s7371_s27, %s7371_s27 }
  0x48   : > { %p7374_p11 = pnand %p7372_p10, %p7530_p7  ;;  %p7381_p1 = por %p7380_p0, %p7379_p13 }
  0x4a   : > { %p7375_p12 = pneg %p7374_p11 }
  0x4c   : > { %p7382_p4 = pnand %p7381_p1, %p7375_p12 }
  0x4e   : > { %7385 = shalt.err (!%p7382_p4)
}
  0x4f   : > { %6930 = dma.hbm_to_vmem [thread:$0]  (!%p7514_p5), %s8669_s11, 11264, %s7520_s30, [#allocation7], %s7405_s17, %s7405_s17, %s7406_s19  }
  0x50   : > { %p8687_p2 = scmp.ne.s32.totalorder %s8684_s23, 0 }
  0x51   : > { %p8688_p7 = scmp.eq.s32.totalorder (!%p8687_p2), %s7501_s22, 0 }
  0x52   : > { %503 = sbr.rel (%p8687_p2) target bundleno = 2052 (0x804), region = 76 }
  0x59   : > { %7391 = dma.done.wait (%p8688_p7), [#allocation5], 7168   ;;  %p8689_p3 = pmov %p8688_p7 }
  0x5b   : > { %7393 = vsyncadd (%p8689_p3), [#allocation5], 4294960128  ;;  %p8690_p6 = pmov %p8689_p3 }
  0x5c   : > { %p8691_p8 = pmov %p8689_p3 }
  0x5d   : > { %7395 = dma.done.wait (%p8690_p6), [#allocation7], 18432  }
  0x5e   : > { %7397 = vsyncadd (%p8691_p8), [#allocation7], 4294948864  ;;  %v7407_v0 = vmov 0.0   ;;  %vm7408_vm0 = vmmov 0   ;;  %v6953_v1 = vld [vmem:[%s8659_s1 + $0x40] sm:$0xff]   ;;  %v6956_v4 = vld [vmem:[%s8659_s1 + $0x48] sm:$0xff]  }
  0x5f   : > { %6435 = vmatprep.subr.bf16.mxu1 %v7407_v0  ;;  %6451 = vmatprep.mubr.msk.bf16.mxu1 %vm7408_vm0, %v7407_v0  ;;  %v6954_v2 = vld [vmem:[%s8659_s1] sm:$0xff]   ;;  %v6957_v5 = vld [vmem:[%s8659_s1 + $0x8] sm:$0xff]   ;;  %v6959_v7 = vld [vmem:[%s8659_s1 + $0x50] sm:$0xff]   ;;  %p568_p5 = scmp.lt.s32.totalorder %s7501_s22, 1  ;;  %s8692_s16 = sld [smem:[#allocation12_spill]]  ;;  %vm653_vm2 = vcmask 1045504  }
  0x60   : > { %5883 = vmatprep.subr.bf16.mxu0 %v6953_v1  ;;  %v6955_v3 = vld [vmem:[%s8659_s1 + $0x80] sm:$0xff]   ;;  %v6958_v6 = vld [vmem:[%s8659_s1 + $0x88] sm:$0xff]   ;;  %v6960_v8 = vld [vmem:[%s8659_s1 + $0x10] sm:$0xff]   ;;  %vm661_vm1 = vsmask.f32 5376  ;;  %vm683_vm3 = vcmask 1044480  }
  0x61   : > { %5884 = vmatpush3.bf16.msra.mxu0 %v6954_v2  ;;  %6436 = vmatpush3.bf16.msra.mxu1 %v6955_v3  ;;  %v6961_v9 = vld [vmem:[%s8659_s1 + $0x90] sm:$0xff]   ;;  %v6962_v10 = vld [vmem:[%s8659_s1 + $0x58] sm:$0xff]   ;;  %v6965_v13 = vld [vmem:[%s8659_s1 + $0x60] sm:$0xff]   ;;  %s8705_s22 = smov (!%p568_p5, %s7501_s22), 1  ;;  %vm1018_vm4 = vcmask 1040384   ;;  %vm1034_vm7 = vcmask 1047552  }
  0x62   : > { %5885 = vmatprep.subr.bf16.mxu0 %v6956_v4  ;;  %6437 = vmatprep.subr.bf16.mxu1 %v7407_v0  ;;  %v6963_v11 = vld [vmem:[%s8659_s1 + $0x18] sm:$0xff]   ;;  %v6966_v14 = vld [vmem:[%s8659_s1 + $0x20] sm:$0xff]   ;;  %v6968_v16 = vld [vmem:[%s8659_s1 + $0x68] sm:$0xff]   ;;  %s5882_s25 = sshll.u32 %s8705_s22, 4  ;;  %vm1019_vm5 = vsmask.f32 256 }
  0x63   : > { %v6964_v12 = vld [vmem:[%s8659_s1 + $0x98] sm:$0xff]   ;;  %v6967_v15 = vld [vmem:[%s8659_s1 + $0xa0] sm:$0xff]   ;;  %v6969_v17 = vld [vmem:[%s8659_s1 + $0x28] sm:$0xff]   ;;  %vm1035_vm8 = vsmask.f32 7938  ;;  %vm2156_vm10 = vcmask 1041408  }
  0x64   : > { %v6970_v18 = vld [vmem:[%s8659_s1 + $0xa8] sm:$0xff]   ;;  %v6971_v19 = vld [vmem:[%s8659_s1 + $0x70] sm:$0xff]   ;;  %v6974_v24 = vld [vmem:[%s8659_s1 + $0x78] sm:$0xff]   ;;  %vm2157_vm11 = vsmask.f32 1280  ;;  %vm623_vm14 = vcmask 1046528  }
  0x65   : > { %5886 = vmatpush3.bf16.msra.mxu0 %v6957_v5  ;;  %6438 = vmatpush3.bf16.msra.mxu1 %v6958_v6  ;;  %s7683_s21 = scalar_lea.vmem %s8692_s16, %s5882_s25  ;;  %v6972_v20 = vld [vmem:[%s8659_s1 + $0x30] sm:$0xff]   ;;  %v6975_v27 = vld [vmem:[%s8659_s1 + $0x38] sm:$0xff]   ;;  %v6981_v49 = vld [vmem:[%s8661_s3 + $0x80] sm:$0xff]   ;;  %vm606_vm15 = vsmask.f32 7424  ;;  %s7999_s12 = sshll.u32 %s8705_s22, 3 }
  0x66   : > { %5887 = vmatprep.subr.bf16.mxu0 %v6959_v7  ;;  %6439 = vmatprep.subr.bf16.mxu1 %v7407_v0  ;;  %v6973_v21 = vld [vmem:[%s8659_s1 + $0xb0] sm:$0xff]   ;;  %v587_v22 = vld [vmem:[%s7683_s21 + $0x4] sm:$0xf]  ;;  %v591_v23 = vld [vmem:[%s7683_s21] sm:$0xc]  ;;  %s576_s20 = scalar_lea.vmem %s8672_s14, %s7999_s12  ;;  %s580_s25 = scalar_lea.vmem %s8673_s15, %s7999_s12 }
  0x67   : > { %v5483_v25 = vcombine.low %v591_v23, %v587_v22  ;;  %v6977_v26 = vld [vmem:[%s7683_s21 + $0x8] ss:$0 sps:$4 sm:$0x77]   ;;  %v593_v28 = vld [vmem:[%s7683_s21] sm:$0x8]  ;;  %v6978_v33 = vld [vmem:[%s8659_s1 + $0xb8] sm:$0xff]  }
  0x68   : > { %v671_v31 = vshrl.u32 %v6977_v26, 16  ;;  %v674_v32 = vshll.u32 %v6977_v26, 16  ;;  %v6979_v34 = vld [vmem:[%s7683_s21 + $0x8] ss:$0 sps:$4 sm:$0x33]   ;;  %v7707_v36 = vcombine.low %v593_v28, %v587_v22  ;;  %v685_v37 = vrot.slane %v6977_v26, 3  ;;  %vm7737_vm6 = vmand %vm1018_vm4, %vm1019_vm5 }
  0x69   : > { %5888 = vmatpush3.bf16.msra.mxu0 %v6960_v8  ;;  %6440 = vmatpush3.bf16.msra.mxu1 %v6961_v9  ;;  %v663_v29 = vshrl.u32 %v5483_v25, 16  ;;  %v666_v30 = vshll.u32 %v5483_v25, 16  ;;  %v654_v35 = vrot.slane %v5483_v25, 2  ;;  %v655_v42 = vrot.slane %v6979_v34, 2  ;;  %v6982_v50 = vld [vmem:[%s8661_s3 + $0x40] sm:$0xff]   ;;  %v6984_v54 = vld [vmem:[%s8661_s3 + $0x88] sm:$0xff]   ;;  %vm1036_vm9 = vmand %vm1034_vm7, %vm1035_vm8 }
  0x6a   : > { %5889 = vmatprep.subr.bf16.mxu0 %v6962_v10  ;;  %6441 = vmatprep.subr.bf16.mxu1 %v7407_v0  ;;  %v673_v40 = vrot.slane %v671_v31, 2  ;;  %v676_v41 = vrot.slane %v674_v32, 3  ;;  %v684_v43 = vrot.slane %v7707_v36, 3  ;;  %v6983_v51 = vld [vmem:[%s8661_s3] sm:$0xff]   ;;  %v6985_v56 = vld [vmem:[%s8661_s3 + $0x48] sm:$0xff]   ;;  %v6987_v58 = vld [vmem:[%s8661_s3 + $0x90] sm:$0xff]  }
  0x6b   : > { %v665_v38 = vrot.slane %v663_v29, 2  ;;  %v668_v39 = vrot.slane %v666_v30, 3  ;;  %v7712_v46 = vsel %vm653_vm2, %v654_v35, %v655_v42  ;;  %v1021_v53 = vld [vmem:[#allocation2] sm:$0x1]  ;;  %v6986_v57 = vld [vmem:[%s8661_s3 + $0x8] sm:$0xff]   ;;  %v6988_v59 = vld [vmem:[%s8661_s3 + $0x50] sm:$0xff]  }
  0x6c   : > { %v677_v45 = vor.u32 %v676_v41, %v673_v40  ;;  %v7718_v48 = vsel %vm683_vm3, %v684_v43, %v685_v37  ;;  %v1022_v55 = vsel %vm7737_vm6, 0, %v1021_v53  ;;  %v6989_v60 = vld [vmem:[%s8661_s3 + $0x10] sm:$0xff]   ;;  %v6990_v61 = vld [vmem:[%s8661_s3 + $0x98] sm:$0xff]   ;;  %v6993_v1 = vld [vmem:[%s8661_s3 + $0xa0] sm:$0xff]   ;;  %vm8678_vm5 = vsmask.f32 4352 }
  0x6d   : > { %5890 = vmatpush3.bf16.msra.mxu0 %v6963_v11  ;;  %6442 = vmatpush3.bf16.msra.mxu1 %v6964_v12  ;;  %v669_v44 = vor.u32 %v668_v39, %v665_v38  ;;  %1023 = vst [vmem:[#allocation2] sm:$0x1] %v1022_v55  ;;  %v6991_v62 = vld [vmem:[%s8661_s3 + $0x58] sm:$0xff]   ;;  %v6994_v2 = vld [vmem:[%s8661_s3 + $0x60] sm:$0xff]   ;;  %v6996_v4 = vld [vmem:[%s8661_s3 + $0xa8] sm:$0xff]   ;;  %vm2172_vm7 = vcmask 1047553  }
  0x6e   : > { %5891 = vmatprep.subr.bf16.mxu0 %v6965_v13  ;;  %6443 = vmatprep.subr.bf16.mxu1 %v7407_v0  ;;  %v6992_v63 = vld [vmem:[%s8661_s3 + $0x18] sm:$0xff]   ;;  %v6995_v3 = vld [vmem:[%s8661_s3 + $0x20] sm:$0xff]   ;;  %v6997_v5 = vld [vmem:[%s8661_s3 + $0x68] sm:$0xff]   ;;  %v7409_v13 = vmov 0.0|0.0   ;;  %s8699_s28 = sld [smem:[#allocation13_spill]]  ;;  %s8701_s23 = sld [smem:[#allocation14_spill]] }
  0x6f   : > { %v7715_v47 = vsel %vm661_vm1, %v669_v44, %v677_v45  ;;  %v6998_v6 = vld [vmem:[%s8661_s3 + $0x28] sm:$0xff]   ;;  %v6999_v7 = vld [vmem:[%s8661_s3 + $0xb0] sm:$0xff]   ;;  %v7002_v10 = vld [vmem:[%s8661_s3 + $0xb8] sm:$0xff]   ;;  %s8702_s24 = sld [smem:[#allocation15_spill]] }
  0x70   : > { %966 = vmatprep.mubr.bf16.mxu0 %v7715_v47  ;;  %v7000_v8 = vld [vmem:[%s8661_s3 + $0x70] sm:$0xff]   ;;  %v7003_v11 = vld [vmem:[%s8661_s3 + $0x78] sm:$0xff]   ;;  %vm1043_vm12 = vmand %vm1018_vm4, %vm1035_vm8  ;;  %vm631_vm4 = vsmask.f32 6400  ;;  %vm2173_vm8 = vsmask.f32 7942 }
  0x71   : > { %5892 = vmatpush3.bf16.msra.mxu0 %v6966_v14  ;;  %6444 = vmatpush3.bf16.msra.mxu1 %v6967_v15  ;;  %v7001_v9 = vld [vmem:[%s8661_s3 + $0x30] sm:$0xff]   ;;  %v7004_v12 = vld [vmem:[%s8661_s3 + $0x38] sm:$0xff]   ;;  %v5490_v14 = vld [vmem:[%s8660_s2] ss:$0 sm:$0xff] }
  0x72   : > { %5893 = vmatprep.subr.bf16.mxu0 %v6968_v16  ;;  %6445 = vmatprep.subr.bf16.mxu1 %v7407_v0  ;;  %vm7820_vm13 = vmand %vm2156_vm10, %vm2157_vm11  ;;  %v5541_v52 = vld [vmem:[%s8671_s13 + $0x88] sm:$0xff]  ;;  %vm2181_vm10 = vcmask 1042433  }
  0x73   : > { %vm2182_vm11 = vmand %vm2181_vm10, %vm2173_vm8  ;;  %vm4045_vm10 = vcmask 1044482  }
  0x74   : > { %v1037_v37 = vld [vmem:[#allocation2] sm:$0xff] }
  0x75   : > { %5894 = vmatpush3.bf16.msra.mxu0 %v6969_v17  ;;  %6446 = vmatpush3.bf16.msra.mxu1 %v6970_v18  ;;  %s584_s17 = scalar_lea.vmem %s8702_s24, %s7999_s12 }
  0x76   : > { %5895 = vmatprep.subr.bf16.mxu0 %v6971_v19  ;;  %6447 = vmatprep.subr.bf16.mxu1 %v7407_v0 }
  0x79   : > { %5896 = vmatpush3.bf16.msra.mxu0 %v6972_v20  ;;  %6448 = vmatpush3.bf16.msra.mxu1 %v6973_v21 }
  0x7a   : > { %5897 = vmatprep.subr.bf16.mxu0 %v6974_v24  ;;  %6449 = vmatprep.subr.bf16.mxu1 %v7407_v0 }
  0x7d   : > { %5898 = vmatpush3.bf16.msra.mxu0 %v6975_v27  ;;  %6450 = vmatpush3.bf16.msra.mxu1 %v6978_v33  ;;  %v1040_v33 = vld [vmem:[#allocation2 + $0x8] sm:$0x1] }
  0x7e   : > { %6455 = vmatprep.subr.bf16.mxu1 %v7407_v0  ;;  %5914 = vmatprep.subr.bf16.mxu0 %v6982_v50 }
  0x80   : > { %967 = vmatmul.mubr.bf16.vlgmr.msra.gmra.mrb[0].mxu0 %v7712_v46  ;;  %6452 = vmatmul.mubr.bf16.vlgmr.msra.gmra.mrb[0].mxu1 %v7718_v48 }
  0x81   : > { %6471 = vmatprep.mubr.msk.bf16.mxu1 %vm7408_vm0, %v7407_v0  ;;  %6456 = vmatpush3.bf16.msra.mxu1 %v6981_v49 }
  0x82   : > { %6457 = vmatprep.subr.bf16.mxu1 %v7407_v0  ;;  %5915 = vmatpush3.bf16.msra.mxu0 %v6983_v51  ;;  %v5540_v51 = vld [vmem:[%s8671_s13 + $0x80] sm:$0xff] }
  0x83   : > { %5916 = vmatprep.subr.bf16.mxu0 %v6985_v56  ;;  %v6790_v55 = vpack.c.bf16 %v5541_v52, %v5540_v51  ;;  %v7005_v52 = vld [vmem:[#allocation4 + $0x40] sm:$0xff]  }
  0x85   : > { %6458 = vmatpush3.bf16.msra.mxu1 %v6984_v54 }
  0x86   : > { %6459 = vmatprep.subr.bf16.mxu1 %v7407_v0  ;;  %5917 = vmatpush3.bf16.msra.mxu0 %v6986_v57 }
  0x87   : > { %5918 = vmatprep.subr.bf16.mxu0 %v6988_v59 }
  0x89   : > { %6460 = vmatpush3.bf16.msra.mxu1 %v6987_v58 }
  0x8a   : > { %6461 = vmatprep.subr.bf16.mxu1 %v7407_v0  ;;  %5919 = vmatpush3.bf16.msra.mxu0 %v6989_v60  ;;  %v1359_v60 = vld [vmem:[%s8671_s13] sm:$0xff] }
  0x8b   : > { %5920 = vmatprep.subr.bf16.mxu0 %v6991_v62  ;;  %v5542_v62 = vld [vmem:[%s8671_s13 + $0x90] sm:$0xff] }
  0x8d   : > { %6462 = vmatpush3.bf16.msra.mxu1 %v6990_v61  ;;  %v1360_v61 = vld [vmem:[%s8671_s13 + $0x8] sm:$0xff] }
  0x8e   : > { %6463 = vmatprep.subr.bf16.mxu1 %v7407_v0  ;;  %5921 = vmatpush3.bf16.msra.mxu0 %v6992_v63  ;;  %v5543_v63 = vld [vmem:[%s8671_s13 + $0x98] sm:$0xff] }
  0x8f   : > { %5922 = vmatprep.subr.bf16.mxu0 %v6994_v2 }
  0x91   : > { %6464 = vmatpush3.bf16.msra.mxu1 %v6993_v1 }
  0x92   : > { %6465 = vmatprep.subr.bf16.mxu1 %v7407_v0  ;;  %5923 = vmatpush3.bf16.msra.mxu0 %v6995_v3 }
  0x93   : > { %5924 = vmatprep.subr.bf16.mxu0 %v6997_v5 }
  0x95   : > { %6466 = vmatpush3.bf16.msra.mxu1 %v6996_v4  ;;  %v6766_v4 = vpack.c.bf16 %v1360_v61, %v1359_v60 }
  0x96   : > { %6467 = vmatprep.subr.bf16.mxu1 %v7407_v0  ;;  %5925 = vmatpush3.bf16.msra.mxu0 %v6998_v6  ;;  %v1361_v6 = vld [vmem:[%s8671_s13 + $0x10] sm:$0xff] }
  0x97   : > { %5926 = vmatprep.subr.bf16.mxu0 %v7000_v8  ;;  %v6793_v8 = vpack.c.bf16 %v5543_v63, %v5542_v62  ;;  %v589_v63 = vld [vmem:[%s7683_s21] sm:$0xe] }
  0x99   : > { %6468 = vmatpush3.bf16.msra.mxu1 %v6999_v7  ;;  %v1362_v7 = vld [vmem:[%s8671_s13 + $0x18] sm:$0xff] }
  0x9a   : > { %6469 = vmatprep.subr.bf16.mxu1 %v7407_v0  ;;  %5927 = vmatpush3.bf16.msra.mxu0 %v7001_v9  ;;  %v6769_v9 = vpack.c.bf16 %v1362_v7, %v1361_v6 }
  0x9b   : > { %5928 = vmatprep.subr.bf16.mxu0 %v7003_v11  ;;  %v1364_v11 = vld [vmem:[%s8671_s13 + $0x28] sm:$0xff] }
  0x9d   : > { %6470 = vmatpush3.bf16.msra.mxu1 %v7002_v10  ;;  %v1363_v10 = vld [vmem:[%s8671_s13 + $0x20] sm:$0xff] }
  0x9e   : > { %5929 = vmatpush3.bf16.msra.mxu0 %v7004_v12  ;;  %6789 = vmatprep.subr.bf16.mxu1 %v7409_v13  ;;  %v6772_v12 = vpack.c.bf16 %v1364_v11, %v1363_v10 }
  0x9f   : > { %6765 = vmatprep.subr.bf16.mxu0 %v7409_v13 }
 0x153   : > { %v5899_v15 = vpop.f32.mrb[0].mxu0  ;;  %v1009_v17 = vpop.f32.mrb[0].mxu1 }
 0x154   : > { %v5900_v16 = vpop.f32.mrb[1].mxu0  ;;  %v6453_v20 = vpop.f32.mrb[1].mxu1 }
 0x155   : > { %v5901_v18 = vadd.f32 %v5900_v16, %v5899_v15  ;;  %v5902_v19 = vpop.f32.mrb[2].mxu0  ;;  %v1012_v22 = vpop.f32.mrb[2].mxu1  ;;  %v5545_v15 = vld [vmem:[%s8671_s13 + $0xa8] sm:$0xff]  ;;  %v5546_v20 = vld [vmem:[%s8671_s13 + $0xb0] sm:$0xff] }
 0x156   : > { %v5903_v21 = vpop.f32.mrb[3].mxu0  ;;  %v6454_v25 = vpop.f32.mrb[3].mxu1 }
 0x157   : > { %v969_v23 = vadd.f32 %v5901_v18, %v5490_v14  ;;  %v5904_v24 = vadd.f32 %v5903_v21, %v5902_v19  ;;  %v1366_v18 = vld [vmem:[%s8671_s13 + $0x38] sm:$0xff] }
 0x158   : > { %v5547_v21 = vld [vmem:[%s8671_s13 + $0xb8] sm:$0xff] }
 0x159   : > { %v1010_v26 = vadd.f32 %v1009_v17, %v969_v23  ;;  %v972_v27 = vadd.f32 %v5904_v24, %v5490_v14  ;;  %v5544_v14 = vld [vmem:[%s8671_s13 + $0xa0] sm:$0xff]  ;;  %v1365_v17 = vld [vmem:[%s8671_s13 + $0x30] sm:$0xff]  ;;  %v1368_v24 = vld [vmem:[%s8671_s13 + $0x48] sm:$0xff] }
 0x15a   : > { %v6796_v16 = vpack.c.bf16 %v5545_v15, %v5544_v14  ;;  %v6775_v19 = vpack.c.bf16 %v1366_v18, %v1365_v17  ;;  %v1367_v23 = vld [vmem:[%s8671_s13 + $0x40] sm:$0xff]  ;;  %v7299_v14 = vld [vmem:[%s7683_s21 + $0x8] ss:$0 sps:$4 sm:$0x33]  }
 0x15b   : > { %v1013_v28 = vadd.f32 %v1012_v22, %v972_v27  ;;  %v1016_v29 = vmax.f32 %v1010_v26, 0.0  ;;  %v6799_v22 = vpack.c.bf16 %v5547_v21, %v5546_v20  ;;  %v6778_v25 = vpack.c.bf16 %v1368_v24, %v1367_v23  ;;  %v5548_v26 = vld [vmem:[%s8671_s13 + $0xc0] sm:$0xff]  ;;  %v5549_v27 = vld [vmem:[%s8671_s13 + $0xc8] sm:$0xff] }
 0x15c   : > { %v641_v15 = vshrl.u32 %v7299_v14, 16  ;;  %v7006_v21 = vld [vmem:[#allocation4] sm:$0xff]  }
 0x15d   : > { %v1017_v30 = vmax.f32 %v1013_v28, 0.0  ;;  %v6802_v28 = vpack.c.bf16 %v5549_v27, %v5548_v26 }
 0x15f   : > { %v1024_v31 = vpack.c.bf16 %v1017_v30, %v1016_v29  ;;  %v1369_v29 = vld [vmem:[%s8671_s13 + $0x50] sm:$0xff]  ;;  %v1370_v30 = vld [vmem:[%s8671_s13 + $0x58] sm:$0xff] }
 0x161   : > { %v1026_v32 = vshrl.u32 %v1024_v31, 16  ;;  %v1029_v35 = vshll.u32 %v1024_v31, 16  ;;  %v6781_v31 = vpack.c.bf16 %v1370_v30, %v1369_v29  ;;  %v7011_v29 = vld [vmem:[#allocation4 + $0xc8] sm:$0xff]  }
 0x163   : > { %v1028_v34 = vrot.slane %v1026_v32, 7  ;;  %v5550_v32 = vld [vmem:[%s8671_s13 + $0xd0] sm:$0xff] }
 0x165   : > { %v1031_v38 = vor.u32 %v1029_v35, %v1028_v34  ;;  %v1041_v39 = vsel %vm7737_vm6, %v1028_v34, %v1040_v33  ;;  %v5551_v33 = vld [vmem:[%s8671_s13 + $0xd8] sm:$0xff]  ;;  %v1371_v35 = vld [vmem:[%s8671_s13 + $0x60] sm:$0xff]  ;;  %vm1533_vm6 = vcmask 523264  }
 0x166   : > { %1042 = vst [vmem:[#allocation2 + $0x8] sm:$0x1] %v1041_v39  ;;  %v6805_v34 = vpack.c.bf16 %v5551_v33, %v5550_v32  ;;  %v5552_v39 = vld [vmem:[%s8671_s13 + $0xe0] sm:$0xff]  ;;  %v7012_v32 = vld [vmem:[#allocation4 + $0x88] sm:$0xff]   ;;  %v7013_v33 = vld [vmem:[#allocation4 + $0x50] sm:$0xff]  }
 0x167   : > { %v1038_v40 = vsel %vm1036_vm9, %v1031_v38, %v1037_v37  ;;  %v1372_v37 = vld [vmem:[%s8671_s13 + $0x68] sm:$0xff]  ;;  %vm2174_vm9 = vmand %vm2172_vm7, %vm2173_vm8  ;;  %vm4036_vm7 = vcmask 1047554   ;;  %vm4037_vm8 = vsmask.f32 7946 }
 0x168   : > { %1039 = vst [vmem:[#allocation2] sm:$0xff] %v1038_v40  ;;  %v1054_v50 = vshll.u32 %v1038_v40, 16  ;;  %v1052_v58 = vshrl.u32 %v1038_v40, 16  ;;  %v6784_v38 = vpack.c.bf16 %v1372_v37, %v1371_v35  ;;  %v7014_v35 = vld [vmem:[#allocation4 + $0x10] sm:$0xff]  }
 0x169   : > { %v7016_v37 = vld [vmem:[#allocation4 + $0x90] sm:$0xff]  }
 0x16a   : > { %v1056_v53 = vrot.slane %v1054_v50, 1 }
 0x16c   : > { %v1057_v2 = vor.u32 %v1056_v53, %v1052_v58  ;;  %v7007_v53 = vld [vmem:[#allocation4 + $0xc0] sm:$0xff]  }
 0x16d   : > { %v1044_v41 = vld [vmem:[#allocation2 + $0x8] sm:$0x1] }
 0x16e   : > { %v1045_v43 = vsel %vm1043_vm12, 0, %v1044_v41  ;;  %v1373_v41 = vld [vmem:[%s8671_s13 + $0x70] sm:$0xff]  ;;  %vm4021_vm12 = vsmask.f32 2304 }
 0x16f   : > { %1046 = vst [vmem:[#allocation2 + $0x8] sm:$0x1] %v1045_v43  ;;  %v1050_v44 = vld [vmem:[#allocation2] sm:$0xfe] }
 0x170   : > { %v2159_v45 = vld [vmem:[#allocation2] sm:$0x3]  ;;  %v1066_v56 = vrot.slane %v1050_v44, 1  ;;  %v1374_v44 = vld [vmem:[%s8671_s13 + $0x78] sm:$0xff] }
 0x171   : > { %v2160_v49 = vsel %vm7820_vm13, 0, %v2159_v45  ;;  %v5554_v45 = vld [vmem:[%s8671_s13 + $0xf0] sm:$0xff]  ;;  %v6787_v50 = vpack.c.bf16 %v1374_v44, %v1373_v41  ;;  %v7020_v41 = vld [vmem:[#allocation4 + $0x98] sm:$0xff]   ;;  %v7023_v44 = vld [vmem:[#allocation4 + $0xe0] sm:$0xff]  }
 0x172   : > { %2161 = vst [vmem:[#allocation2] sm:$0x3] %v2160_v49  ;;  %v5555_v49 = vld [vmem:[%s8671_s13 + $0xf8] sm:$0xff] }
 0x173   : > { %v6811_v51 = vpack.c.bf16 %v5555_v49, %v5554_v45  ;;  %v7022_v45 = vld [vmem:[#allocation4 + $0x20] sm:$0xff]  }
 0x174   : > { %v7024_v49 = vld [vmem:[#allocation4 + $0xa0] sm:$0xff]  }
 0x176   : > { %v1049_v54 = vld [vmem:[#allocation2 + $0x8] sm:$0x1] }
 0x177   : > { %v1067_v57 = vrot.slane %v1049_v54, 1  ;;  %v1059_v59 = vshll.u32 %v1049_v54, 16 }
 0x179   : > { %v1068_v1 = vsel %vm623_vm14, %v1066_v56, %v1067_v57  ;;  %v1061_v3 = vrot.slane %v1059_v59, 1  ;;  %v5515_v59 = vld [vmem:[%s8662_s4] ss:$0 sm:$0xff] }
 0x17a   : > { %6472 = vmatmul.mubr.bf16.vlgmr.msra.gmra.mrb[4].mxu1 %v1068_v1 }
 0x17b   : > { %v1062_v5 = vsel %vm606_vm15, %v1057_v2, %v1061_v3  ;;  %6791 = vmatpush3.bf16.msra.mxu1 %v6790_v55  ;;  %6542 = vmatprep.mubr.msk.f32.mxu1 %vm7408_vm0, %v7407_v0 }
 0x17c   : > { %1301 = vmatprep.mubr.bf16.mxu0 %v1062_v5  ;;  %6792 = vmatprep.subr.bf16.mxu1 %v7409_v13 }
 0x17d   : > { %1302 = vmatmul.mubr.bf16.vlgmr.msra.gmra.mrb[4].mxu0 %v1038_v40  ;;  %v5553_v40 = vld [vmem:[%s8671_s13 + $0xe8] sm:$0xff] }
 0x17e   : > { %6767 = vmatpush3.bf16.msra.mxu0 %v6766_v4  ;;  %6507 = vmatprep.mubr.msk.f32.mxu0 %vm7408_vm0, %v7407_v0  ;;  %v6808_v43 = vpack.c.bf16 %v5553_v40, %v5552_v39  ;;  %v7947_v4 = vld [vmem:[%s7683_s21 + $0x4] sm:$0xf]  ;;  %v7019_v39 = vld [vmem:[#allocation4 + $0xd8] sm:$0xff]  }
 0x17f   : > { %6768 = vmatprep.subr.bf16.mxu0 %v7409_v13  ;;  %6794 = vmatpush3.bf16.msra.mxu1 %v6793_v8  ;;  %v7950_v5 = vcombine.low %v589_v63, %v7947_v4  ;;  %v7018_v40 = vld [vmem:[#allocation4 + $0x18] sm:$0xff]   ;;  %v7032_v63 = vld [vmem:[#allocation4 + $0xb0] sm:$0xff]  }
 0x180   : > { %6795 = vmatprep.subr.bf16.mxu1 %v7409_v13 }
 0x181   : > { %v633_v10 = vshrl.u32 %v7950_v5, 16 }
 0x182   : > { %6770 = vmatpush3.bf16.msra.mxu0 %v6769_v9 }
 0x183   : > { %6771 = vmatprep.subr.bf16.mxu0 %v7409_v13  ;;  %6797 = vmatpush3.bf16.msra.mxu1 %v6796_v16  ;;  %v644_v16 = vshll.u32 %v7299_v14, 16  ;;  %v635_v17 = vrot.slane %v633_v10, 1  ;;  %v7034_v10 = vld [vmem:[#allocation4 + $0x38] sm:$0xff]   ;;  %v7039_v14 = vld [vmem:[#allocation4 + $0x140] sm:$0xff]  }
 0x184   : > { %6798 = vmatprep.subr.bf16.mxu1 %v7409_v13 }
 0x185   : > { %v646_v20 = vrot.slane %v644_v16, 2 }
 0x186   : > { %6773 = vmatpush3.bf16.msra.mxu0 %v6772_v12  ;;  %v636_v12 = vshll.u32 %v7950_v5, 16 }
 0x187   : > { %6774 = vmatprep.subr.bf16.mxu0 %v7409_v13  ;;  %6800 = vmatpush3.bf16.msra.mxu1 %v6799_v22  ;;  %v7008_v22 = vld [vmem:[#allocation4 + $0x80] sm:$0xff]  }
 0x188   : > { %6801 = vmatprep.subr.bf16.mxu1 %v7409_v13  ;;  %v638_v18 = vrot.slane %v636_v12, 2 }
 0x18a   : > { %6776 = vmatpush3.bf16.msra.mxu0 %v6775_v19  ;;  %v643_v19 = vrot.slane %v641_v15, 1  ;;  %v639_v23 = vor.u32 %v638_v18, %v635_v17  ;;  %v7040_v18 = vld [vmem:[#allocation4 + $0x100] sm:$0xff]  }
 0x18b   : > { %6777 = vmatprep.subr.bf16.mxu0 %v7409_v13  ;;  %6803 = vmatpush3.bf16.msra.mxu1 %v6802_v28  ;;  %v7009_v28 = vld [vmem:[#allocation4 + $0x48] sm:$0xff]  }
 0x18c   : > { %6804 = vmatprep.subr.bf16.mxu1 %v7409_v13  ;;  %v647_v24 = vor.u32 %v646_v20, %v643_v19  ;;  %v7041_v19 = vld [vmem:[#allocation4 + $0x180] sm:$0xff]   ;;  %v7042_v20 = vld [vmem:[#allocation4 + $0x148] sm:$0xff]  }
 0x18e   : > { %6779 = vmatpush3.bf16.msra.mxu0 %v6778_v25  ;;  %v7956_v30 = vsel %vm631_vm4, %v639_v23, %v647_v24  ;;  %v7045_v23 = vld [vmem:[#allocation4 + $0x150] sm:$0xff]  }
 0x18f   : > { %6780 = vmatprep.subr.bf16.mxu0 %v7409_v13  ;;  %6806 = vmatpush3.bf16.msra.mxu1 %v6805_v34  ;;  %v7015_v34 = vld [vmem:[#allocation4 + $0xd0] sm:$0xff]  }
 0x190   : > { %6807 = vmatprep.subr.bf16.mxu1 %v7409_v13  ;;  %v7046_v24 = vld [vmem:[#allocation4 + $0x110] sm:$0xff]  }
 0x192   : > { %6782 = vmatpush3.bf16.msra.mxu0 %v6781_v31  ;;  %v7010_v31 = vld [vmem:[#allocation4 + $0x8] sm:$0xff]  }
 0x193   : > { %6783 = vmatprep.subr.bf16.mxu0 %v7409_v13  ;;  %6809 = vmatpush3.bf16.msra.mxu1 %v6808_v43  ;;  %v7021_v43 = vld [vmem:[#allocation4 + $0x60] sm:$0xff]  }
 0x194   : > { %6810 = vmatprep.subr.bf16.mxu1 %v7409_v13 }
 0x196   : > { %6785 = vmatpush3.bf16.msra.mxu0 %v6784_v38  ;;  %v7017_v38 = vld [vmem:[#allocation4 + $0x58] sm:$0xff]  }
 0x197   : > { %6786 = vmatprep.subr.bf16.mxu0 %v7409_v13  ;;  %6812 = vmatpush3.bf16.msra.mxu1 %v6811_v51  ;;  %v7025_v51 = vld [vmem:[#allocation4 + $0x68] sm:$0xff]  }
 0x198   : > { %6001 = vmatprep.subr.bf16.mxu1 %v7007_v53 }
 0x19a   : > { %6788 = vmatpush3.bf16.msra.mxu0 %v6787_v50  ;;  %v7961_v50 = vld [vmem:[%s7683_s21 + $0x8] sm:$0xf] }
 0x19b   : > { %5979 = vmatprep.subr.bf16.mxu0 %v7005_v52  ;;  %v7027_v52 = vld [vmem:[#allocation4 + $0xe8] sm:$0xff]   ;;  %v5486_v53 = vcombine.low %v7961_v50, %v7961_v50 }
 0x24d   : > { %v1344_v54 = vpop.f32.mrb[4].mxu1 }
 0x24e   : > { %v6473_v55 = vpop.f32.mrb[5].mxu1 }
 0x24f   : > { %v1347_v56 = vpop.f32.mrb[6].mxu1  ;;  %v7028_v55 = vld [vmem:[#allocation4 + $0xa8] sm:$0xff]  }
 0x250   : > { %v5930_v57 = vpop.f32.mrb[4].mxu0  ;;  %v6474_v58 = vpop.f32.mrb[7].mxu1 }
 0x251   : > { %v5931_v60 = vpop.f32.mrb[5].mxu0  ;;  %v693_v58 = vshrl.u32 %v7707_v36, 16 }
 0x252   : > { %v5932_v61 = vadd.f32 %v5931_v60, %v5930_v57  ;;  %v5933_v62 = vpop.f32.mrb[6].mxu0  ;;  %v7031_v57 = vld [vmem:[#allocation4 + $0xf0] sm:$0xff]   ;;  %v701_v60 = vshrl.u32 %v5486_v53, 16 }
 0x253   : > { %v5934_v1 = vpop.f32.mrb[7].mxu0 }
 0x254   : > { %v1304_v2 = vadd.f32 %v5932_v61, %v5515_v59  ;;  %v5935_v3 = vadd.f32 %v5934_v1, %v5933_v62  ;;  %v704_v61 = vshll.u32 %v5486_v53, 16  ;;  %v7030_v62 = vld [vmem:[#allocation4 + $0x30] sm:$0xff]   ;;  %v7968_v1 = vld [vmem:[%s7683_s21 + $0x8] ss:$0 sps:$4 sm:$0x11]  }
 0x255   : > { %v625_v12 = vrot.slane %v7968_v1, 1  ;;  %v7069_v53 = vld [vmem:[#allocation6 + $0x50] sm:$0xff]  }
 0x256   : > { %v1345_v6 = vadd.f32 %v1344_v54, %v1304_v2  ;;  %v1307_v7 = vadd.f32 %v5935_v3, %v5515_v59  ;;  %v7026_v54 = vld [vmem:[#allocation4 + $0x28] sm:$0xff]   ;;  %v696_v59 = vshll.u32 %v7707_v36, 16  ;;  %v7033_v2 = vld [vmem:[#allocation4 + $0x78] sm:$0xff]  }
 0x257   : > { %v7035_v3 = vld [vmem:[#allocation4 + $0xf8] sm:$0xff]  }
 0x258   : > { %v1351_v8 = vmax.f32 %v1345_v6, 0.0  ;;  %v1348_v9 = vadd.f32 %v1347_v56, %v1307_v7  ;;  %v7029_v56 = vld [vmem:[#allocation4 + $0x70] sm:$0xff]   ;;  %v695_v6 = vrot.slane %v693_v58, 3  ;;  %v698_v7 = vrot.slane %v696_v59, 4  ;;  %v7037_v36 = vld [vmem:[#allocation4 + $0xb8] sm:$0xff]   ;;  %v7076_v58 = vld [vmem:[#allocation6 + $0x88] sm:$0xff]  }
 0x259   : > { %v7077_v59 = vld [vmem:[#allocation6 + $0x60] sm:$0xff]  }
 0x25a   : > { %1353 = vst [vmem:[#allocation3] sm:$0xff] %v1351_v8  ;;  %v1352_v11 = vmax.f32 %v1348_v9, 0.0  ;;  %v703_v8 = vrot.slane %v701_v60, 3  ;;  %v706_v9 = vrot.slane %v704_v61, 4  ;;  %v699_v15 = vor.u32 %v698_v7, %v695_v6  ;;  %v7078_v60 = vld [vmem:[#allocation6 + $0x20] sm:$0xff]   ;;  %v7079_v61 = vld [vmem:[#allocation6 + $0xd0] sm:$0xff]  }
 0x25b   : > { %v7084_v6 = vld [vmem:[#allocation6 + $0x98] sm:$0xff]   ;;  %v7085_v7 = vld [vmem:[#allocation6 + $0x70] sm:$0xff]  }
 0x25c   : > { %1354 = vst [vmem:[#allocation3 + $0x8] sm:$0xff] %v1352_v11  ;;  %v624_v11 = vrot.slane %v7950_v5, 1  ;;  %v707_v16 = vor.u32 %v706_v9, %v703_v8  ;;  %v7086_v8 = vld [vmem:[#allocation6 + $0x30] sm:$0xff]   ;;  %v7087_v9 = vld [vmem:[#allocation6 + $0xe0] sm:$0xff]  }
 0x25e   : > { %v7973_v17 = vsel %vm623_vm14, %v624_v11, %v625_v12  ;;  %v7979_v5 = vsel %vm8678_vm5, %v699_v15, %v707_v16  ;;  %v7090_v11 = vld [vmem:[#allocation6 + $0x38] sm:$0xff]   ;;  %v7091_v12 = vld [vmem:[#allocation6 + $0xe8] sm:$0xff]   ;;  %v7093_v15 = vld [vmem:[#allocation6 + $0x140] sm:$0xff]   ;;  %vm4020_vm5 = vcmask 1042432  }
 0x25f   : > { %v7094_v16 = vld [vmem:[#allocation6 + $0xf0] sm:$0xff]  }
 0x263   : > { %v1355_v25 = vld [vmem:[#allocation3] ss:$2 sm:$0xff]  ;;  %v1357_v26 = vld [vmem:[#allocation3 + $0x1] ss:$2 sm:$0xff] }
 0x264   : > { %v1358_v27 = vmax.f32 %v1355_v25, %v1357_v26  ;;  %v7047_v25 = vld [vmem:[#allocation4 + $0x190] sm:$0xff]   ;;  %v7048_v26 = vld [vmem:[#allocation4 + $0x158] sm:$0xff]  }
 0x266   : > { %6508 = vmatmul.mubr.f32.vlgmr.msra.gmra.mrb[8].mxu0 %v1358_v27  ;;  %6543 = vmatmul.mubr.f32.vlgmr.msra.gmra.mrb[8].mxu1 %v1358_v27  ;;  %v7049_v27 = vld [vmem:[#allocation4 + $0x118] sm:$0xff]  }
 0x267   : > { %5980 = vmatpush3.bf16.msra.mxu0 %v7006_v21  ;;  %6002 = vmatpush3.bf16.msra.mxu1 %v7008_v22  ;;  %v7043_v21 = vld [vmem:[#allocation4 + $0x108] sm:$0xff]  }
 0x268   : > { %5981 = vmatprep.subr.bf16.mxu0 %v7009_v28  ;;  %6003 = vmatprep.subr.bf16.mxu1 %v7011_v29  ;;  %v7044_v22 = vld [vmem:[#allocation4 + $0x188] sm:$0xff]   ;;  %v7050_v28 = vld [vmem:[#allocation4 + $0x198] sm:$0xff]   ;;  %v7051_v29 = vld [vmem:[#allocation4 + $0x160] sm:$0xff]  }
 0x269   : > { %2022 = vmatprep.mubr.bf16.mxu0 %v7956_v30  ;;  %2063 = vmatprep.mubr.bf16.mxu1 %v7715_v47 }
 0x26b   : > { %5982 = vmatpush3.bf16.msra.mxu0 %v7010_v31  ;;  %6004 = vmatpush3.bf16.msra.mxu1 %v7012_v32  ;;  %v7052_v31 = vld [vmem:[#allocation4 + $0x120] sm:$0xff]  }
 0x26c   : > { %5983 = vmatprep.subr.bf16.mxu0 %v7013_v33  ;;  %6005 = vmatprep.subr.bf16.mxu1 %v7015_v34  ;;  %v7053_v32 = vld [vmem:[#allocation4 + $0x1a0] sm:$0xff]   ;;  %v7054_v33 = vld [vmem:[#allocation4 + $0x168] sm:$0xff]  }
 0x26d   : > { %v7055_v34 = vld [vmem:[#allocation4 + $0x128] sm:$0xff]  }
 0x26f   : > { %5984 = vmatpush3.bf16.msra.mxu0 %v7014_v35  ;;  %6006 = vmatpush3.bf16.msra.mxu1 %v7016_v37  ;;  %v7056_v35 = vld [vmem:[#allocation4 + $0x1a8] sm:$0xff]   ;;  %v7057_v37 = vld [vmem:[#allocation4 + $0x170] sm:$0xff]  }
 0x270   : > { %5985 = vmatprep.subr.bf16.mxu0 %v7017_v38  ;;  %6007 = vmatprep.subr.bf16.mxu1 %v7019_v39  ;;  %v7058_v38 = vld [vmem:[#allocation4 + $0x130] sm:$0xff]  }
 0x271   : > { %v7059_v39 = vld [vmem:[#allocation4 + $0x1b0] sm:$0xff]  }
 0x273   : > { %5986 = vmatpush3.bf16.msra.mxu0 %v7018_v40  ;;  %6008 = vmatpush3.bf16.msra.mxu1 %v7020_v41  ;;  %v7060_v40 = vld [vmem:[#allocation4 + $0x178] sm:$0xff]  }
 0x274   : > { %5987 = vmatprep.subr.bf16.mxu0 %v7021_v43  ;;  %6009 = vmatprep.subr.bf16.mxu1 %v7023_v44  ;;  %v7061_v41 = vld [vmem:[#allocation4 + $0x138] sm:$0xff]   ;;  %v7993_v44 = vcombine.low %v7947_v4, %v7961_v50  ;;  %v7072_v4 = vld [vmem:[#allocation6 + $0x80] sm:$0xff]  }
 0x275   : > { %v7063_v43 = vld [vmem:[#allocation4 + $0x1b8] sm:$0xff]  }
 0x276   : > { %v7073_v50 = vld [vmem:[#allocation6 + $0x58] sm:$0xff]  }
 0x277   : > { %5988 = vmatpush3.bf16.msra.mxu0 %v7022_v45  ;;  %6010 = vmatpush3.bf16.msra.mxu1 %v7024_v49  ;;  %v7065_v45 = vld [vmem:[#allocation6 + $0x40] sm:$0xff]  }
 0x278   : > { %5989 = vmatprep.subr.bf16.mxu0 %v7025_v51  ;;  %6011 = vmatprep.subr.bf16.mxu1 %v7027_v52  ;;  %v7066_v49 = vld [vmem:[#allocation6] sm:$0xff]   ;;  %v7067_v51 = vld [vmem:[#allocation6 + $0x48] sm:$0xff]  }
 0x279   : > { %v7068_v52 = vld [vmem:[#allocation6 + $0x8] sm:$0xff]  }
 0x27b   : > { %5990 = vmatpush3.bf16.msra.mxu0 %v7026_v54  ;;  %6012 = vmatpush3.bf16.msra.mxu1 %v7028_v55  ;;  %v7070_v54 = vld [vmem:[#allocation6 + $0x10] sm:$0xff]   ;;  %v7071_v55 = vld [vmem:[#allocation6 + $0xc0] sm:$0xff]  }
 0x27c   : > { %5991 = vmatprep.subr.bf16.mxu0 %v7029_v56  ;;  %6013 = vmatprep.subr.bf16.mxu1 %v7031_v57  ;;  %v7074_v56 = vld [vmem:[#allocation6 + $0x18] sm:$0xff]   ;;  %v7075_v57 = vld [vmem:[#allocation6 + $0xc8] sm:$0xff]  }
 0x27f   : > { %5992 = vmatpush3.bf16.msra.mxu0 %v7030_v62  ;;  %6014 = vmatpush3.bf16.msra.mxu1 %v7032_v63  ;;  %v7080_v62 = vld [vmem:[#allocation6 + $0x90] sm:$0xff]   ;;  %v7081_v63 = vld [vmem:[#allocation6 + $0x68] sm:$0xff]  }
 0x280   : > { %5993 = vmatprep.subr.bf16.mxu0 %v7033_v2  ;;  %6015 = vmatprep.subr.bf16.mxu1 %v7035_v3  ;;  %v7082_v2 = vld [vmem:[#allocation6 + $0x28] sm:$0xff]   ;;  %v7083_v3 = vld [vmem:[#allocation6 + $0xd8] sm:$0xff]  }
 0x283   : > { %5994 = vmatpush3.bf16.msra.mxu0 %v7034_v10  ;;  %6016 = vmatpush3.bf16.msra.mxu1 %v7037_v36  ;;  %v7088_v10 = vld [vmem:[#allocation6 + $0xa0] sm:$0xff]   ;;  %v7089_v36 = vld [vmem:[#allocation6 + $0x78] sm:$0xff]  }
 0x284   : > { %6023 = vmatprep.subr.bf16.mxu0 %v7039_v14  ;;  %6545 = vmatprep.subr.bf16.mxu1 %v7407_v0  ;;  %v7092_v14 = vld [vmem:[#allocation6 + $0xa8] sm:$0xff]  }
 0x286   : > { %2023 = vmatmul.mubr.bf16.vlgmr.msra.gmra.mrb[12].mxu0 %v7973_v17  ;;  %2064 = vmatmul.mubr.bf16.vlgmr.msra.gmra.mrb[12].mxu1 %v7712_v46 }
 0x287   : > { %6024 = vmatpush3.bf16.msra.mxu0 %v7040_v18  ;;  %6546 = vmatpush3.bf16.msra.mxu1 %v7041_v19  ;;  %v7096_v18 = vld [vmem:[#allocation6 + $0xb0] sm:$0xff]   ;;  %v7098_v19 = vld [vmem:[#allocation6 + $0xf8] sm:$0xff]  }
 0x288   : > { %6025 = vmatprep.subr.bf16.mxu0 %v7042_v20  ;;  %6547 = vmatprep.subr.bf16.mxu1 %v7407_v0  ;;  %v7100_v20 = vld [vmem:[#allocation6 + $0xb8] sm:$0xff]  }
 0x289   : > { %2104 = vmatprep.mubr.bf16.mxu0 %v7979_v5  ;;  %6561 = vmatprep.mubr.msk.bf16.mxu1 %vm7408_vm0, %v7407_v0 }
 0x28b   : > { %6026 = vmatpush3.bf16.msra.mxu0 %v7043_v21  ;;  %6548 = vmatpush3.bf16.msra.mxu1 %v7044_v22 }
 0x28c   : > { %6027 = vmatprep.subr.bf16.mxu0 %v7045_v23  ;;  %6549 = vmatprep.subr.bf16.mxu1 %v7407_v0 }
 0x28f   : > { %6028 = vmatpush3.bf16.msra.mxu0 %v7046_v24  ;;  %6550 = vmatpush3.bf16.msra.mxu1 %v7047_v25 }
 0x290   : > { %6029 = vmatprep.subr.bf16.mxu0 %v7048_v26  ;;  %6551 = vmatprep.subr.bf16.mxu1 %v7407_v0 }
 0x293   : > { %6030 = vmatpush3.bf16.msra.mxu0 %v7049_v27  ;;  %6552 = vmatpush3.bf16.msra.mxu1 %v7050_v28  ;;  %v5556_v28 = vld [vmem:[%s8664_s6] ss:$0 sm:$0xff] }
 0x294   : > { %6031 = vmatprep.subr.bf16.mxu0 %v7051_v29  ;;  %6553 = vmatprep.subr.bf16.mxu1 %v7407_v0 }
 0x297   : > { %6032 = vmatpush3.bf16.msra.mxu0 %v7052_v31  ;;  %6554 = vmatpush3.bf16.msra.mxu1 %v7053_v32 }
 0x298   : > { %6033 = vmatprep.subr.bf16.mxu0 %v7054_v33  ;;  %6555 = vmatprep.subr.bf16.mxu1 %v7407_v0 }
 0x29b   : > { %6034 = vmatpush3.bf16.msra.mxu0 %v7055_v34  ;;  %6556 = vmatpush3.bf16.msra.mxu1 %v7056_v35 }
 0x29c   : > { %6035 = vmatprep.subr.bf16.mxu0 %v7057_v37  ;;  %6557 = vmatprep.subr.bf16.mxu1 %v7407_v0 }
 0x29f   : > { %6036 = vmatpush3.bf16.msra.mxu0 %v7058_v38  ;;  %6558 = vmatpush3.bf16.msra.mxu1 %v7059_v39 }
 0x2a0   : > { %6037 = vmatprep.subr.bf16.mxu0 %v7060_v40  ;;  %6559 = vmatprep.subr.bf16.mxu1 %v7407_v0 }
 0x2a3   : > { %6038 = vmatpush3.bf16.msra.mxu0 %v7061_v41  ;;  %6560 = vmatpush3.bf16.msra.mxu1 %v7063_v43 }
 0x2a4   : > { %6054 = vmatprep.subr.bf16.mxu0 %v7065_v45  ;;  %6076 = vmatprep.subr.bf16.mxu1 %v7071_v55 }
 0x2a6   : > { %2105 = vmatmul.mubr.bf16.vlgmr.msra.gmra.mrb[16].mxu0 %v7718_v48  ;;  %6562 = vmatmul.mubr.bf16.vlgmr.msra.gmra.mrb[16].mxu1 %v7993_v44 }
 0x2a7   : > { %6055 = vmatpush3.bf16.msra.mxu0 %v7066_v49  ;;  %6077 = vmatpush3.bf16.msra.mxu1 %v7072_v4 }
 0x2a8   : > { %6056 = vmatprep.subr.bf16.mxu0 %v7067_v51  ;;  %6078 = vmatprep.subr.bf16.mxu1 %v7075_v57 }
 0x2ab   : > { %6057 = vmatpush3.bf16.msra.mxu0 %v7068_v52  ;;  %6079 = vmatpush3.bf16.msra.mxu1 %v7076_v58 }
 0x2ac   : > { %6058 = vmatprep.subr.bf16.mxu0 %v7069_v53  ;;  %6080 = vmatprep.subr.bf16.mxu1 %v7079_v61 }
 0x2af   : > { %6059 = vmatpush3.bf16.msra.mxu0 %v7070_v54  ;;  %6081 = vmatpush3.bf16.msra.mxu1 %v7080_v62 }
 0x2b0   : > { %6060 = vmatprep.subr.bf16.mxu0 %v7073_v50  ;;  %6082 = vmatprep.subr.bf16.mxu1 %v7083_v3 }
 0x2b3   : > { %6061 = vmatpush3.bf16.msra.mxu0 %v7074_v56  ;;  %6083 = vmatpush3.bf16.msra.mxu1 %v7084_v6 }
 0x2b4   : > { %6062 = vmatprep.subr.bf16.mxu0 %v7077_v59  ;;  %6084 = vmatprep.subr.bf16.mxu1 %v7087_v9 }
 0x2b7   : > { %6063 = vmatpush3.bf16.msra.mxu0 %v7078_v60  ;;  %6085 = vmatpush3.bf16.msra.mxu1 %v7088_v10 }
 0x2b8   : > { %6064 = vmatprep.subr.bf16.mxu0 %v7081_v63  ;;  %6086 = vmatprep.subr.bf16.mxu1 %v7091_v12 }
 0x2bb   : > { %6065 = vmatpush3.bf16.msra.mxu0 %v7082_v2  ;;  %6087 = vmatpush3.bf16.msra.mxu1 %v7092_v14 }
 0x2bc   : > { %6066 = vmatprep.subr.bf16.mxu0 %v7085_v7  ;;  %6088 = vmatprep.subr.bf16.mxu1 %v7094_v16 }
 0x2bf   : > { %6067 = vmatpush3.bf16.msra.mxu0 %v7086_v8  ;;  %6089 = vmatpush3.bf16.msra.mxu1 %v7096_v18 }
 0x2c0   : > { %6068 = vmatprep.subr.bf16.mxu0 %v7089_v36  ;;  %6090 = vmatprep.subr.bf16.mxu1 %v7098_v19  ;;  %v2175_v36 = vld [vmem:[#allocation2] sm:$0xfe] }
 0x2c3   : > { %6069 = vmatpush3.bf16.msra.mxu0 %v7090_v11  ;;  %6091 = vmatpush3.bf16.msra.mxu1 %v7100_v20  ;;  %v2178_v11 = vld [vmem:[#allocation2 + $0x8] sm:$0x3] }
 0x2c4   : > { %6098 = vmatprep.subr.bf16.mxu0 %v7093_v15  ;;  %6565 = vmatprep.subr.bf16.mxu1 %v7407_v0 }
 0x339   : > { %v1441_v21 = vpop.f32.mrb[8].mxu0  ;;  %v1528_v22 = vpop.f32.mrb[8].mxu1 }
 0x33a   : > { %v1532_v23 = vmax.f32 %v1441_v21, %v1528_v22  ;;  %v6509_v24 = vpop.f32.mrb[9].mxu0  ;;  %v6544_v25 = vpop.f32.mrb[9].mxu1 }
 0x33c   : > { %1534 = vst.msk [vmem:[%s576_s20] sm:$0xff] %vm1533_vm6, %v1532_v23 }
 0x359   : > { %v5995_v26 = vpop.f32.mrb[12].mxu0  ;;  %v6017_v27 = vpop.f32.mrb[12].mxu1 }
 0x35a   : > { %v5996_v29 = vpop.f32.mrb[13].mxu0  ;;  %v6018_v31 = vpop.f32.mrb[13].mxu1 }
 0x35b   : > { %v5997_v32 = vadd.f32 %v5996_v29, %v5995_v26  ;;  %v5998_v33 = vpop.f32.mrb[14].mxu0  ;;  %v6019_v34 = vadd.f32 %v6018_v31, %v6017_v27  ;;  %v6020_v35 = vpop.f32.mrb[14].mxu1 }
 0x35c   : > { %v5999_v37 = vpop.f32.mrb[15].mxu0  ;;  %v6021_v38 = vpop.f32.mrb[15].mxu1 }
 0x35d   : > { %v2025_v39 = vadd.f32 %v5997_v32, %v5556_v28  ;;  %v6000_v40 = vadd.f32 %v5999_v37, %v5998_v33  ;;  %v6022_v41 = vadd.f32 %v6021_v38, %v6020_v35  ;;  %v7097_v38 = vld [vmem:[#allocation6 + $0x148] sm:$0xff]  }
 0x35f   : > { %v2028_v43 = vadd.f32 %v6000_v40, %v5556_v28  ;;  %v2066_v45 = vadd.f32 %v6019_v34, %v2025_v39  ;;  %v7095_v34 = vld [vmem:[#allocation6 + $0x100] sm:$0xff]  }
 0x361   : > { %v2069_v49 = vadd.f32 %v6022_v41, %v2028_v43 }
 0x379   : > { %v6039_v51 = vpop.f32.mrb[16].mxu0  ;;  %v2147_v52 = vpop.f32.mrb[16].mxu1 }
 0x37a   : > { %v6040_v53 = vpop.f32.mrb[17].mxu0  ;;  %v6563_v54 = vpop.f32.mrb[17].mxu1 }
 0x37b   : > { %v6041_v55 = vadd.f32 %v6040_v53, %v6039_v51  ;;  %v6042_v4 = vpop.f32.mrb[18].mxu0  ;;  %v2150_v50 = vpop.f32.mrb[18].mxu1  ;;  %v7099_v51 = vld [vmem:[#allocation6 + $0x108] sm:$0xff]  }
 0x37c   : > { %v6043_v56 = vpop.f32.mrb[19].mxu0  ;;  %v6564_v57 = vpop.f32.mrb[19].mxu1 }
 0x37d   : > { %v2107_v58 = vadd.f32 %v6041_v55, %v2066_v45  ;;  %v6044_v59 = vadd.f32 %v6043_v56, %v6042_v4  ;;  %v7101_v4 = vld [vmem:[#allocation6 + $0x150] sm:$0xff]  }
 0x37f   : > { %v2148_v60 = vadd.f32 %v2147_v52, %v2107_v58  ;;  %v2110_v61 = vadd.f32 %v6044_v59, %v2069_v49 }
 0x381   : > { %v2151_v62 = vadd.f32 %v2150_v50, %v2110_v61  ;;  %v2154_v63 = vmax.f32 %v2148_v60, 0.0 }
 0x383   : > { %v2155_v2 = vmax.f32 %v2151_v62, 0.0 }
 0x385   : > { %v2162_v3 = vpack.c.bf16 %v2155_v2, %v2154_v63  ;;  %v7102_v63 = vld [vmem:[#allocation6 + $0x110] sm:$0xff]  }
 0x387   : > { %v2164_v6 = vshrl.u32 %v2162_v3, 16  ;;  %v2167_v7 = vshll.u32 %v2162_v3, 16 }
 0x389   : > { %v2166_v8 = vrot.slane %v2164_v6, 6  ;;  %v2169_v9 = vrot.slane %v2167_v7, 7  ;;  %v7103_v6 = vld [vmem:[#allocation6 + $0x180] sm:$0xff]   ;;  %v7104_v7 = vld [vmem:[#allocation6 + $0x158] sm:$0xff]  }
 0x38b   : > { %v2170_v10 = vor.u32 %v2169_v9, %v2166_v8 }
 0x38d   : > { %v2176_v12 = vsel %vm2174_vm9, %v2170_v10, %v2175_v36  ;;  %v2179_v14 = vsel %vm7820_vm13, %v2170_v10, %v2178_v11  ;;  %vm8014_vm13 = vmand %vm4020_vm5, %vm4021_vm12  ;;  %v7105_v36 = vld [vmem:[#allocation6 + $0x118] sm:$0xff]   ;;  %v7106_v11 = vld [vmem:[#allocation6 + $0x188] sm:$0xff]  }
 0x38e   : > { %2177 = vst [vmem:[#allocation2] sm:$0xfe] %v2176_v12  ;;  %2180 = vst [vmem:[#allocation2 + $0x8] sm:$0x3] %v2179_v14  ;;  %v7107_v12 = vld [vmem:[#allocation6 + $0x160] sm:$0xff]  }
 0x38f   : > { %v7108_v14 = vld [vmem:[#allocation6 + $0x120] sm:$0xff]   ;;  %vm4038_vm9 = vmand %vm4036_vm7, %vm4037_vm8 }
 0x395   : > { %v2183_v15 = vld [vmem:[#allocation2 + $0x8] sm:$0x6]  ;;  %v2187_v16 = vld [vmem:[#allocation2] sm:$0xff]  ;;  %v2188_v18 = vld [vmem:[#allocation2 + $0x8] sm:$0x1] }
 0x396   : > { %v2184_v19 = vsel %vm2182_vm11, 0, %v2183_v15  ;;  %v2197_v20 = vshll.u32 %v2187_v16, 16  ;;  %v2202_v21 = vshll.u32 %v2188_v18, 16  ;;  %v2189_v22 = vld [vmem:[#allocation2] sm:$0xfe]  ;;  %v2195_v24 = vshrl.u32 %v2187_v16, 16  ;;  %vm4046_vm11 = vmand %vm4045_vm10, %vm4037_vm8 }
 0x397   : > { %2185 = vst [vmem:[#allocation2 + $0x8] sm:$0x6] %v2184_v19  ;;  %v8011_v23 = vld [vmem:[#allocation2] sm:$0xfc]  ;;  %v2214_v26 = vshrl.u32 %v2189_v22, 16  ;;  %v2217_v27 = vshll.u32 %v2189_v22, 16 }
 0x398   : > { %v2199_v25 = vrot.slane %v2197_v20, 1  ;;  %v4023_v28 = vld [vmem:[#allocation2] sm:$0x7]  ;;  %v2204_v31 = vrot.slane %v2202_v21, 1  ;;  %v2238_v32 = vshrl.u32 %v8011_v23, 16  ;;  %v2241_v33 = vshll.u32 %v8011_v23, 16 }
 0x399   : > { %v4024_v35 = vsel %vm8014_vm13, 0, %v4023_v28  ;;  %v2216_v39 = vrot.slane %v2214_v26, 1  ;;  %v2219_v40 = vrot.slane %v2217_v27, 2  ;;  %v2209_v59 = vrot.slane %v2189_v22, 1  ;;  %v7109_v15 = vld [vmem:[#allocation6 + $0x190] sm:$0xff]   ;;  %v7112_v19 = vld [vmem:[#allocation6 + $0x198] sm:$0xff]  }
 0x39a   : > { %v2200_v29 = vor.u32 %v2199_v25, %v2195_v24  ;;  %4025 = vst [vmem:[#allocation2] sm:$0x7] %v4024_v35  ;;  %v2240_v45 = vrot.slane %v2238_v32, 2  ;;  %v2243_v49 = vrot.slane %v2241_v33, 3  ;;  %v2210_v60 = vrot.slane %v2188_v18, 1  ;;  %v7111_v18 = vld [vmem:[#allocation6 + $0x128] sm:$0xff]  }
 0x39b   : > { %v2220_v61 = vor.u32 %v2219_v40, %v2216_v39  ;;  %v7113_v20 = vld [vmem:[#allocation6 + $0x170] sm:$0xff]   ;;  %v7115_v22 = vld [vmem:[#allocation6 + $0x1a0] sm:$0xff]   ;;  %v7116_v24 = vld [vmem:[#allocation6 + $0x178] sm:$0xff]   ;;  %v2233_v28 = vrot.slane %v8011_v23, 2 }
 0x39c   : > { %v2205_v37 = vsel %vm606_vm15, %v2200_v29, %v2204_v31  ;;  %v2244_v2 = vor.u32 %v2243_v49, %v2240_v45  ;;  %v2211_v10 = vsel %vm623_vm14, %v2209_v59, %v2210_v60  ;;  %v7114_v21 = vld [vmem:[#allocation6 + $0x130] sm:$0xff]   ;;  %v7117_v25 = vld [vmem:[#allocation6 + $0x138] sm:$0xff]   ;;  %v7118_v26 = vld [vmem:[#allocation6 + $0x1a8] sm:$0xff]  }
 0x39d   : > { %2748 = vmatprep.mubr.bf16.mxu0 %v2205_v37  ;;  %v7119_v29 = vld [vmem:[#allocation6 + $0x1b0] sm:$0xff]   ;;  %v7120_v32 = vld [vmem:[#allocation6 + $0x1b8] sm:$0xff]   ;;  %v2193_v33 = vld [vmem:[#allocation2] sm:$0xf8] }
 0x39e   : > { %2749 = vmatmul.mubr.bf16.vlgmr.msra.gmra.mrb[20].mxu0 %v2187_v16  ;;  %v8023_v41 = vld [vmem:[#allocation2 + $0x8] sm:$0x3]  ;;  %v2257_v23 = vrot.slane %v2193_v33, 3  ;;  %v2887_v37 = vld [vmem:[%s8671_s13] sm:$0xff]  ;;  %v2890_v45 = vld [vmem:[%s8671_s13 + $0x18] sm:$0xff] }
 0x39f   : > { %v8025_v43 = vld [vmem:[#allocation2 + $0x8] sm:$0x7]  ;;  %6099 = vmatpush3.bf16.msra.mxu0 %v7095_v34  ;;  %v2222_v52 = vshrl.u32 %v8023_v41, 16  ;;  %v2225_v53 = vshll.u32 %v8023_v41, 16  ;;  %v2234_v27 = vrot.slane %v8023_v41, 2  ;;  %v5670_v39 = vld [vmem:[%s8671_s13 + $0x80] sm:$0xff] }
 0x3a0   : > { %v2246_v54 = vshrl.u32 %v8025_v43, 16  ;;  %v2249_v55 = vshll.u32 %v8025_v43, 16  ;;  %6100 = vmatprep.subr.bf16.mxu0 %v7097_v38  ;;  %v7110_v16 = vld [vmem:[#allocation6 + $0x168] sm:$0xff]   ;;  %v2258_v34 = vrot.slane %v8025_v43, 3  ;;  %v2889_v43 = vld [vmem:[%s8671_s13 + $0x10] sm:$0xff]  ;;  %v2894_v60 = vld [vmem:[%s8671_s13 + $0x38] sm:$0xff] }
 0x3a1   : > { %v2224_v50 = vrot.slane %v2222_v52, 1  ;;  %v2227_v56 = vrot.slane %v2225_v53, 2  ;;  %v2235_v31 = vsel %vm653_vm2, %v2233_v28, %v2234_v27  ;;  %v2888_v38 = vld [vmem:[%s8671_s13 + $0x8] sm:$0xff]  ;;  %v5673_v52 = vld [vmem:[%s8671_s13 + $0x98] sm:$0xff]  ;;  %v6817_v53 = vpack.c.bf16 %v2890_v45, %v2889_v43  ;;  %v2893_v59 = vld [vmem:[%s8671_s13 + $0x30] sm:$0xff] }
 0x3a2   : > { %v2248_v57 = vrot.slane %v2246_v54, 2  ;;  %v2251_v58 = vrot.slane %v2249_v55, 3  ;;  %v2259_v35 = vsel %vm683_vm3, %v2257_v23, %v2258_v34  ;;  %v6814_v40 = vpack.c.bf16 %v2888_v38, %v2887_v37  ;;  %v5671_v41 = vld [vmem:[%s8671_s13 + $0x88] sm:$0xff]  ;;  %v2891_v55 = vld [vmem:[%s8671_s13 + $0x20] sm:$0xff]  ;;  %v5684_v27 = vld [vmem:[%s8671_s13 + $0xf0] sm:$0xff] }
 0x3a3   : > { %6101 = vmatpush3.bf16.msra.mxu0 %v7099_v51  ;;  %v2228_v62 = vor.u32 %v2227_v56, %v2224_v50  ;;  %v6838_v49 = vpack.c.bf16 %v5671_v41, %v5670_v39  ;;  %v5672_v51 = vld [vmem:[%s8671_s13 + $0x90] sm:$0xff]  ;;  %v5674_v56 = vld [vmem:[%s8671_s13 + $0xa0] sm:$0xff]  ;;  %v5685_v28 = vld [vmem:[%s8671_s13 + $0xf8] sm:$0xff] }
 0x3a4   : > { %v2252_v3 = vor.u32 %v2251_v58, %v2248_v57  ;;  %6102 = vmatprep.subr.bf16.mxu0 %v7101_v4  ;;  %v6841_v54 = vpack.c.bf16 %v5673_v52, %v5672_v51  ;;  %v2892_v4 = vld [vmem:[%s8671_s13 + $0x28] sm:$0xff]  ;;  %v7123_v33 = vld [vmem:[%s8667_s9 + $0xc0] sm:$0xff]  }
 0x3a5   : > { %v2229_v8 = vsel %vm631_vm4, %v2220_v61, %v2228_v62  ;;  %v6820_v50 = vpack.c.bf16 %v2892_v4, %v2891_v55  ;;  %v5675_v57 = vld [vmem:[%s8671_s13 + $0xa8] sm:$0xff]  ;;  %v5676_v61 = vld [vmem:[%s8671_s13 + $0xb0] sm:$0xff]  ;;  %v6823_v62 = vpack.c.bf16 %v2894_v60, %v2893_v59 }
 0x3a6   : > { %v2253_v9 = vsel %vm661_vm1, %v2244_v2, %v2252_v3  ;;  %2789 = vmatprep.mubr.bf16.mxu1 %v2229_v8  ;;  %v6844_v58 = vpack.c.bf16 %v5675_v57, %v5674_v56  ;;  %v2895_v3 = vld [vmem:[%s8671_s13 + $0x40] sm:$0xff] }
 0x3a7   : > { %2830 = vmatprep.mubr.bf16.mxu0 %v2253_v9  ;;  %6103 = vmatpush3.bf16.msra.mxu0 %v7102_v63  ;;  %v5677_v63 = vld [vmem:[%s8671_s13 + $0xb8] sm:$0xff]  ;;  %v5678_v8 = vld [vmem:[%s8671_s13 + $0xc0] sm:$0xff]  ;;  %v5679_v9 = vld [vmem:[%s8671_s13 + $0xc8] sm:$0xff] }
 0x3a8   : > { %2790 = vmatmul.mubr.bf16.vlgmr.msra.gmra.mrb[20].mxu1 %v2211_v10  ;;  %6104 = vmatprep.subr.bf16.mxu0 %v7104_v7  ;;  %v6847_v2 = vpack.c.bf16 %v5677_v63, %v5676_v61  ;;  %v6850_v10 = vpack.c.bf16 %v5679_v9, %v5678_v8  ;;  %v586_v63 = vld [vmem:[%s7683_s21] sm:$0xf] }
 0x3a9   : > { %6566 = vmatpush3.bf16.msra.mxu1 %v7103_v6  ;;  %6581 = vmatprep.mubr.msk.bf16.mxu1 %vm7408_vm0, %v7407_v0  ;;  %v2896_v6 = vld [vmem:[%s8671_s13 + $0x48] sm:$0xff] }
 0x3aa   : > { %6567 = vmatprep.subr.bf16.mxu1 %v7407_v0  ;;  %v6826_v7 = vpack.c.bf16 %v2896_v6, %v2895_v3 }
 0x3ab   : > { %6105 = vmatpush3.bf16.msra.mxu0 %v7105_v36  ;;  %v2897_v36 = vld [vmem:[%s8671_s13 + $0x50] sm:$0xff] }
 0x3ac   : > { %6106 = vmatprep.subr.bf16.mxu0 %v7107_v12 }
 0x3ad   : > { %6568 = vmatpush3.bf16.msra.mxu1 %v7106_v11  ;;  %v2898_v11 = vld [vmem:[%s8671_s13 + $0x58] sm:$0xff] }
 0x3ae   : > { %6569 = vmatprep.subr.bf16.mxu1 %v7407_v0  ;;  %v6829_v12 = vpack.c.bf16 %v2898_v11, %v2897_v36 }
 0x3af   : > { %6107 = vmatpush3.bf16.msra.mxu0 %v7108_v14  ;;  %v5680_v14 = vld [vmem:[%s8671_s13 + $0xd0] sm:$0xff] }
 0x3b0   : > { %6108 = vmatprep.subr.bf16.mxu0 %v7110_v16 }
 0x3b1   : > { %6570 = vmatpush3.bf16.msra.mxu1 %v7109_v15  ;;  %v5681_v15 = vld [vmem:[%s8671_s13 + $0xd8] sm:$0xff] }
 0x3b2   : > { %6571 = vmatprep.subr.bf16.mxu1 %v7407_v0  ;;  %v6853_v16 = vpack.c.bf16 %v5681_v15, %v5680_v14 }
 0x3b3   : > { %6109 = vmatpush3.bf16.msra.mxu0 %v7111_v18  ;;  %v2899_v18 = vld [vmem:[%s8671_s13 + $0x60] sm:$0xff] }
 0x3b4   : > { %6110 = vmatprep.subr.bf16.mxu0 %v7113_v20  ;;  %v5682_v20 = vld [vmem:[%s8671_s13 + $0xe0] sm:$0xff] }
 0x3b5   : > { %6572 = vmatpush3.bf16.msra.mxu1 %v7112_v19  ;;  %v2900_v19 = vld [vmem:[%s8671_s13 + $0x68] sm:$0xff] }
 0x3b6   : > { %6573 = vmatprep.subr.bf16.mxu1 %v7407_v0 }
 0x3b7   : > { %6111 = vmatpush3.bf16.msra.mxu0 %v7114_v21  ;;  %v6832_v21 = vpack.c.bf16 %v2900_v19, %v2899_v18  ;;  %v615_v18 = vshll.u32 %v7968_v1, 16  ;;  %v7122_v19 = vld [vmem:[%s8667_s9] sm:$0xff]   ;;  %v7127_v1 = vld [vmem:[%s8667_s9 + $0xc8] sm:$0xff]  }
 0x3b8   : > { %6112 = vmatprep.subr.bf16.mxu0 %v7116_v24 }
 0x3b9   : > { %6574 = vmatpush3.bf16.msra.mxu1 %v7115_v22  ;;  %v5683_v22 = vld [vmem:[%s8671_s13 + $0xe8] sm:$0xff] }
 0x3ba   : > { %6575 = vmatprep.subr.bf16.mxu1 %v7407_v0  ;;  %v6856_v24 = vpack.c.bf16 %v5683_v22, %v5682_v20 }
 0x3bb   : > { %6113 = vmatpush3.bf16.msra.mxu0 %v7117_v25  ;;  %v2901_v25 = vld [vmem:[%s8671_s13 + $0x70] sm:$0xff] }
 0x3bc   : > { %6813 = vmatprep.subr.bf16.mxu0 %v7409_v13 }
 0x3bd   : > { %6576 = vmatpush3.bf16.msra.mxu1 %v7118_v26  ;;  %v2902_v26 = vld [vmem:[%s8671_s13 + $0x78] sm:$0xff] }
 0x3be   : > { %6577 = vmatprep.subr.bf16.mxu1 %v7407_v0  ;;  %2831 = vmatmul.mubr.bf16.vlgmr.msra.gmra.mrb[24].mxu0 %v2235_v31  ;;  %v6859_v31 = vpack.c.bf16 %v5685_v28, %v5684_v27  ;;  %v7125_v27 = vld [vmem:[%s8667_s9 + $0x48] sm:$0xff]  }
 0x3bf   : > { %6617 = vmatprep.mubr.msk.f32.mxu0 %vm7408_vm0, %v7407_v0  ;;  %6815 = vmatpush3.bf16.msra.mxu0 %v6814_v40  ;;  %v5613_v40 = vld [vmem:[%s8666_s8] ss:$0 sm:$0xff] }
 0x3c0   : > { %6816 = vmatprep.subr.bf16.mxu0 %v7409_v13 }
 0x3c1   : > { %6578 = vmatpush3.bf16.msra.mxu1 %v7119_v29  ;;  %v6835_v29 = vpack.c.bf16 %v2902_v26, %v2901_v25  ;;  %v7124_v25 = vld [vmem:[%s8667_s9 + $0x80] sm:$0xff]  }
 0x3c2   : > { %6579 = vmatprep.subr.bf16.mxu1 %v7407_v0 }
 0x3c3   : > { %6818 = vmatpush3.bf16.msra.mxu0 %v6817_v53 }
 0x3c4   : > { %6819 = vmatprep.subr.bf16.mxu0 %v7409_v13 }
 0x3c5   : > { %6580 = vmatpush3.bf16.msra.mxu1 %v7120_v32  ;;  %v7121_v32 = vld [vmem:[%s8667_s9 + $0x40] sm:$0xff]  }
 0x3c6   : > { %6837 = vmatprep.subr.bf16.mxu1 %v7409_v13 }
 0x3c7   : > { %6821 = vmatpush3.bf16.msra.mxu0 %v6820_v50 }
 0x3c8   : > { %6582 = vmatmul.mubr.bf16.vlgmr.msra.gmra.mrb[24].mxu1 %v2259_v35  ;;  %6822 = vmatprep.subr.bf16.mxu0 %v7409_v13 }
 0x3c9   : > { %6652 = vmatprep.mubr.msk.f32.mxu1 %vm7408_vm0, %v7407_v0  ;;  %6839 = vmatpush3.bf16.msra.mxu1 %v6838_v49 }
 0x3ca   : > { %6840 = vmatprep.subr.bf16.mxu1 %v7409_v13 }
 0x3cb   : > { %6824 = vmatpush3.bf16.msra.mxu0 %v6823_v62 }
 0x3cc   : > { %6825 = vmatprep.subr.bf16.mxu0 %v7409_v13 }
 0x3cd   : > { %6842 = vmatpush3.bf16.msra.mxu1 %v6841_v54 }
 0x3ce   : > { %6843 = vmatprep.subr.bf16.mxu1 %v7409_v13 }
 0x3cf   : > { %6827 = vmatpush3.bf16.msra.mxu0 %v6826_v7  ;;  %v7300_v7 = vld [vmem:[%s7683_s21 + $0x4] sm:$0xf] }
 0x3d0   : > { %6828 = vmatprep.subr.bf16.mxu0 %v7409_v13  ;;  %v8175_v8 = vcombine.low %v586_v63, %v7300_v7  ;;  %v7157_v63 = vld [vmem:[%s8667_s9 + $0x148] sm:$0xff]   ;;  %v7161_v7 = vld [vmem:[%s8667_s9 + $0x150] sm:$0xff]  }
 0x3d1   : > { %6845 = vmatpush3.bf16.msra.mxu1 %v6844_v58 }
 0x3d2   : > { %6846 = vmatprep.subr.bf16.mxu1 %v7409_v13  ;;  %v610_v14 = vshll.u32 %v8175_v8, 16  ;;  %v608_v15 = vshrl.u32 %v8175_v8, 16 }
 0x3d3   : > { %6830 = vmatpush3.bf16.msra.mxu0 %v6829_v12 }
 0x3d4   : > { %6831 = vmatprep.subr.bf16.mxu0 %v7409_v13 }
 0x3d5   : > { %6848 = vmatpush3.bf16.msra.mxu1 %v6847_v2 }
 0x3d6   : > { %6849 = vmatprep.subr.bf16.mxu1 %v7409_v13 }
 0x3d7   : > { %6833 = vmatpush3.bf16.msra.mxu0 %v6832_v21  ;;  %v617_v21 = vrot.slane %v615_v18, 1  ;;  %v7175_v18 = vld [vmem:[%s8667_s9 + $0x1e8] sm:$0xff]  }
 0x3d8   : > { %6834 = vmatprep.subr.bf16.mxu0 %v7409_v13 }
 0x3d9   : > { %6851 = vmatpush3.bf16.msra.mxu1 %v6850_v10 }
 0x3da   : > { %6852 = vmatprep.subr.bf16.mxu1 %v7409_v13 }
 0x3db   : > { %6836 = vmatpush3.bf16.msra.mxu0 %v6835_v29  ;;  %v7126_v29 = vld [vmem:[%s8667_s9 + $0x8] sm:$0xff]  }
 0x3dc   : > { %6163 = vmatprep.subr.bf16.mxu0 %v7121_v32  ;;  %v7129_v32 = vld [vmem:[%s8667_s9 + $0x50] sm:$0xff]  }
 0x3dd   : > { %6854 = vmatpush3.bf16.msra.mxu1 %v6853_v16  ;;  %v612_v16 = vrot.slane %v610_v14, 1  ;;  %v7170_v14 = vld [vmem:[%s8667_s9 + $0x120] sm:$0xff]  }
 0x3de   : > { %6855 = vmatprep.subr.bf16.mxu1 %v7409_v13 }
 0x3df   : > { %v613_v20 = vor.u32 %v612_v16, %v608_v15  ;;  %v7172_v15 = vld [vmem:[%s8667_s9 + $0x1a0] sm:$0xff]   ;;  %v7173_v16 = vld [vmem:[%s8667_s9 + $0x168] sm:$0xff]  }
 0x3e1   : > { %6857 = vmatpush3.bf16.msra.mxu1 %v6856_v24  ;;  %v618_v28 = vsel %vm606_vm15, %v613_v20, %v617_v21  ;;  %v7176_v20 = vld [vmem:[%s8667_s9 + $0x1a8] sm:$0xff]   ;;  %v7177_v21 = vld [vmem:[%s8667_s9 + $0x170] sm:$0xff]  }
 0x3e2   : > { %6858 = vmatprep.subr.bf16.mxu1 %v7409_v13 }
 0x3e5   : > { %6860 = vmatpush3.bf16.msra.mxu1 %v6859_v31  ;;  %v7128_v31 = vld [vmem:[%s8667_s9 + $0x88] sm:$0xff]  }
 0x3e6   : > { %6185 = vmatprep.subr.bf16.mxu1 %v7123_v33  ;;  %v7131_v33 = vld [vmem:[%s8667_s9 + $0xd0] sm:$0xff]  }
 0x471   : > { %v6070_v34 = vpop.f32.mrb[20].mxu0 }
 0x472   : > { %v6071_v23 = vpop.f32.mrb[21].mxu0 }
 0x473   : > { %v6072_v35 = vadd.f32 %v6071_v23, %v6070_v34  ;;  %v6073_v37 = vpop.f32.mrb[22].mxu0  ;;  %v7130_v34 = vld [vmem:[%s8667_s9 + $0x10] sm:$0xff]  }
 0x474   : > { %v6074_v38 = vpop.f32.mrb[23].mxu0  ;;  %v7132_v23 = vld [vmem:[%s8667_s9 + $0x90] sm:$0xff]  }
 0x475   : > { %v6075_v39 = vadd.f32 %v6074_v38, %v6073_v37  ;;  %v2751_v45 = vadd.f32 %v6072_v35, %v5613_v40  ;;  %v7133_v35 = vld [vmem:[%s8667_s9 + $0x58] sm:$0xff]  }
 0x476   : > { %v7134_v37 = vld [vmem:[%s8667_s9 + $0x18] sm:$0xff]  }
 0x477   : > { %v2754_v53 = vadd.f32 %v6075_v39, %v5613_v40  ;;  %v7136_v38 = vld [vmem:[%s8667_s9 + $0x98] sm:$0xff]   ;;  %v7137_v39 = vld [vmem:[%s8667_s9 + $0x60] sm:$0xff]  }
 0x478   : > { %v7139_v40 = vld [vmem:[%s8667_s9 + $0xe0] sm:$0xff]  }
 0x47b   : > { %v6092_v41 = vpop.f32.mrb[20].mxu1 }
 0x47c   : > { %v6093_v43 = vpop.f32.mrb[21].mxu1 }
 0x47d   : > { %v6094_v49 = vadd.f32 %v6093_v43, %v6092_v41  ;;  %v6095_v51 = vpop.f32.mrb[22].mxu1  ;;  %v7138_v41 = vld [vmem:[%s8667_s9 + $0x20] sm:$0xff]  }
 0x47e   : > { %v6096_v52 = vpop.f32.mrb[23].mxu1  ;;  %v7140_v43 = vld [vmem:[%s8667_s9 + $0xa0] sm:$0xff]  }
 0x47f   : > { %v2792_v54 = vadd.f32 %v6094_v49, %v2751_v45  ;;  %v6097_v55 = vadd.f32 %v6096_v52, %v6095_v51  ;;  %v7141_v45 = vld [vmem:[%s8667_s9 + $0x68] sm:$0xff]  }
 0x480   : > { %v7143_v49 = vld [vmem:[%s8667_s9 + $0xe8] sm:$0xff]  }
 0x481   : > { %v2795_v4 = vadd.f32 %v6097_v55, %v2754_v53  ;;  %v7142_v51 = vld [vmem:[%s8667_s9 + $0x28] sm:$0xff]   ;;  %v7145_v53 = vld [vmem:[%s8667_s9 + $0x70] sm:$0xff]  }
 0x482   : > { %v7144_v52 = vld [vmem:[%s8667_s9 + $0xa8] sm:$0xff]   ;;  %v7146_v55 = vld [vmem:[%s8667_s9 + $0x30] sm:$0xff]  }
 0x491   : > { %v6114_v50 = vpop.f32.mrb[24].mxu0 }
 0x492   : > { %v6115_v56 = vpop.f32.mrb[25].mxu0 }
 0x493   : > { %v6116_v57 = vadd.f32 %v6115_v56, %v6114_v50  ;;  %v6117_v58 = vpop.f32.mrb[26].mxu0  ;;  %v7149_v50 = vld [vmem:[%s8667_s9 + $0x78] sm:$0xff]  }
 0x494   : > { %v6118_v59 = vpop.f32.mrb[27].mxu0  ;;  %v7151_v56 = vld [vmem:[%s8667_s9 + $0xf8] sm:$0xff]  }
 0x495   : > { %v6119_v60 = vadd.f32 %v6118_v59, %v6117_v58  ;;  %v2833_v61 = vadd.f32 %v6116_v57, %v2792_v54  ;;  %v7147_v54 = vld [vmem:[%s8667_s9 + $0xf0] sm:$0xff]   ;;  %v7150_v57 = vld [vmem:[%s8667_s9 + $0x38] sm:$0xff]   ;;  %v7153_v59 = vld [vmem:[%s8667_s9 + $0x140] sm:$0xff]  }
 0x496   : > { %v7152_v58 = vld [vmem:[%s8667_s9 + $0xb8] sm:$0xff]  }
 0x497   : > { %v2836_v62 = vadd.f32 %v6119_v60, %v2795_v4  ;;  %v7148_v4 = vld [vmem:[%s8667_s9 + $0xb0] sm:$0xff]   ;;  %v7155_v60 = vld [vmem:[%s8667_s9 + $0x1c0] sm:$0xff]  }
 0x49b   : > { %v2873_v2 = vpop.f32.mrb[24].mxu1 }
 0x49c   : > { %v2874_v3 = vadd.f32 %v2873_v2, %v2833_v61  ;;  %v6583_v6 = vpop.f32.mrb[25].mxu1  ;;  %v7154_v61 = vld [vmem:[%s8667_s9 + $0x100] sm:$0xff]   ;;  %v7159_v2 = vld [vmem:[%s8667_s9 + $0x1c8] sm:$0xff]  }
 0x49d   : > { %v2876_v9 = vpop.f32.mrb[26].mxu1  ;;  %v7160_v6 = vld [vmem:[%s8667_s9 + $0x188] sm:$0xff]  }
 0x49e   : > { %v2880_v10 = vmax.f32 %v2874_v3, 0.0  ;;  %v2877_v36 = vadd.f32 %v2876_v9, %v2836_v62  ;;  %v6584_v11 = vpop.f32.mrb[27].mxu1  ;;  %v7156_v62 = vld [vmem:[%s8667_s9 + $0x180] sm:$0xff]   ;;  %v7158_v3 = vld [vmem:[%s8667_s9 + $0x108] sm:$0xff]   ;;  %v7164_v9 = vld [vmem:[%s8667_s9 + $0x190] sm:$0xff]  }
 0x49f   : > { %v7169_v11 = vld [vmem:[%s8667_s9 + $0x160] sm:$0xff]  }
 0x4a0   : > { %2882 = vst [vmem:[#allocation3] sm:$0xff] %v2880_v10  ;;  %v2881_v12 = vmax.f32 %v2877_v36, 0.0  ;;  %v7165_v10 = vld [vmem:[%s8667_s9 + $0x158] sm:$0xff]  }
 0x4a1   : > { %v7168_v36 = vld [vmem:[%s8667_s9 + $0x198] sm:$0xff]  }
 0x4a2   : > { %2883 = vst [vmem:[#allocation3 + $0x8] sm:$0xff] %v2881_v12  ;;  %v7171_v12 = vld [vmem:[%s8667_s9 + $0x1e0] sm:$0xff]  }
 0x4a9   : > { %v2884_v22 = vld [vmem:[#allocation3] ss:$2 sm:$0xff]  ;;  %v2885_v24 = vld [vmem:[#allocation3 + $0x1] ss:$2 sm:$0xff] }
 0x4aa   : > { %v2886_v26 = vmax.f32 %v2884_v22, %v2885_v24  ;;  %v7179_v22 = vld [vmem:[%s8667_s9 + $0x1f0] sm:$0xff]   ;;  %v8355_v24 = vld [vmem:[%s7683_s21 + $0xc] ss:$0 sps:$4 sm:$0x11]  }
 0x4ac   : > { %6618 = vmatmul.mubr.f32.vlgmr.msra.gmra.mrb[10].mxu0 %v2886_v26  ;;  %6653 = vmatmul.mubr.f32.vlgmr.msra.gmra.mrb[10].mxu1 %v2886_v26  ;;  %v7178_v26 = vld [vmem:[%s8667_s9 + $0x130] sm:$0xff]  }
 0x4ad   : > { %6164 = vmatpush3.bf16.msra.mxu0 %v7122_v19  ;;  %6186 = vmatpush3.bf16.msra.mxu1 %v7124_v25  ;;  %v7174_v19 = vld [vmem:[%s8667_s9 + $0x128] sm:$0xff]   ;;  %v718_v25 = vshll.u32 %v7993_v44, 16 }
 0x4ae   : > { %6165 = vmatprep.subr.bf16.mxu0 %v7125_v27  ;;  %6187 = vmatprep.subr.bf16.mxu1 %v7127_v1  ;;  %v7180_v27 = vld [vmem:[%s8667_s9 + $0x1b0] sm:$0xff]   ;;  %v7181_v1 = vld [vmem:[%s8667_s9 + $0x178] sm:$0xff]  }
 0x4af   : > { %3804 = vmatprep.mubr.bf16.mxu0 %v618_v28  ;;  %3845 = vmatprep.mubr.bf16.mxu1 %v7956_v30  ;;  %v7135_v30 = vld [vmem:[%s8667_s9 + $0xd8] sm:$0xff]  }
 0x4b0   : > { %v7183_v28 = vld [vmem:[%s8667_s9 + $0x1f8] sm:$0xff]  }
 0x4b1   : > { %6166 = vmatpush3.bf16.msra.mxu0 %v7126_v29  ;;  %6188 = vmatpush3.bf16.msra.mxu1 %v7128_v31  ;;  %v716_v29 = vshrl.u32 %v7993_v44, 16  ;;  %v720_v31 = vrot.slane %v718_v25, 1  ;;  %v7228_v25 = vld [vmem:[#allocation8 + $0x20] sm:$0xff]  }
 0x4b2   : > { %6167 = vmatprep.subr.bf16.mxu0 %v7129_v32  ;;  %6189 = vmatprep.subr.bf16.mxu1 %v7131_v33  ;;  %v723_v32 = vshll.u32 %v8355_v24, 16  ;;  %v7182_v33 = vld [vmem:[%s8667_s9 + $0x138] sm:$0xff]  }
 0x4b5   : > { %6168 = vmatpush3.bf16.msra.mxu0 %v7130_v34  ;;  %6190 = vmatpush3.bf16.msra.mxu1 %v7132_v23  ;;  %v7184_v34 = vld [vmem:[%s8667_s9 + $0x1b8] sm:$0xff]   ;;  %v7185_v23 = vld [vmem:[%s8667_s9 + $0x240] sm:$0xff]  }
 0x4b6   : > { %6169 = vmatprep.subr.bf16.mxu0 %v7133_v35  ;;  %6191 = vmatprep.subr.bf16.mxu1 %v7135_v30  ;;  %v721_v35 = vor.u32 %v720_v31, %v716_v29  ;;  %v725_v30 = vrot.slane %v723_v32, 1  ;;  %v7233_v29 = vld [vmem:[#allocation8 + $0xa8] sm:$0xff]   ;;  %v7234_v31 = vld [vmem:[#allocation8 + $0x70] sm:$0xff]  }
 0x4b7   : > { %v7235_v32 = vld [vmem:[#allocation8 + $0xf0] sm:$0xff]  }
 0x4b9   : > { %6170 = vmatpush3.bf16.msra.mxu0 %v7134_v37  ;;  %6192 = vmatpush3.bf16.msra.mxu1 %v7136_v38  ;;  %v7186_v37 = vld [vmem:[%s8667_s9 + $0x200] sm:$0xff]  }
 0x4ba   : > { %6171 = vmatprep.subr.bf16.mxu0 %v7137_v39  ;;  %6193 = vmatprep.subr.bf16.mxu1 %v7139_v40  ;;  %v7187_v38 = vld [vmem:[%s8667_s9 + $0x280] sm:$0xff]   ;;  %v7188_v39 = vld [vmem:[%s8667_s9 + $0x248] sm:$0xff]   ;;  %v726_v40 = vsel %vm606_vm15, %v721_v35, %v725_v30  ;;  %v7239_v35 = vld [vmem:[#allocation8 + $0xf8] sm:$0xff]  }
 0x4bd   : > { %6172 = vmatpush3.bf16.msra.mxu0 %v7138_v41  ;;  %6194 = vmatpush3.bf16.msra.mxu1 %v7140_v43  ;;  %v7189_v41 = vld [vmem:[%s8667_s9 + $0x208] sm:$0xff]  }
 0x4be   : > { %6173 = vmatprep.subr.bf16.mxu0 %v7141_v45  ;;  %6195 = vmatprep.subr.bf16.mxu1 %v7143_v49  ;;  %v7190_v43 = vld [vmem:[%s8667_s9 + $0x288] sm:$0xff]   ;;  %v7193_v45 = vld [vmem:[%s8667_s9 + $0x290] sm:$0xff]   ;;  %v7194_v49 = vld [vmem:[%s8667_s9 + $0x258] sm:$0xff]  }
 0x4c1   : > { %6174 = vmatpush3.bf16.msra.mxu0 %v7142_v51  ;;  %6196 = vmatpush3.bf16.msra.mxu1 %v7144_v52  ;;  %v7195_v51 = vld [vmem:[%s8667_s9 + $0x218] sm:$0xff]  }
 0x4c2   : > { %6175 = vmatprep.subr.bf16.mxu0 %v7145_v53  ;;  %6197 = vmatprep.subr.bf16.mxu1 %v7147_v54  ;;  %v7196_v52 = vld [vmem:[%s8667_s9 + $0x298] sm:$0xff]   ;;  %v7197_v53 = vld [vmem:[%s8667_s9 + $0x260] sm:$0xff]  }
 0x4c3   : > { %v7198_v54 = vld [vmem:[%s8667_s9 + $0x220] sm:$0xff]  }
 0x4c5   : > { %6176 = vmatpush3.bf16.msra.mxu0 %v7146_v55  ;;  %6198 = vmatpush3.bf16.msra.mxu1 %v7148_v4  ;;  %v7199_v55 = vld [vmem:[%s8667_s9 + $0x2a0] sm:$0xff]   ;;  %v7200_v4 = vld [vmem:[%s8667_s9 + $0x268] sm:$0xff]  }
 0x4c6   : > { %6177 = vmatprep.subr.bf16.mxu0 %v7149_v50  ;;  %6199 = vmatprep.subr.bf16.mxu1 %v7151_v56  ;;  %v7201_v50 = vld [vmem:[%s8667_s9 + $0x228] sm:$0xff]  }
 0x4c7   : > { %v7202_v56 = vld [vmem:[%s8667_s9 + $0x2a8] sm:$0xff]  }
 0x4c9   : > { %6178 = vmatpush3.bf16.msra.mxu0 %v7150_v57  ;;  %6200 = vmatpush3.bf16.msra.mxu1 %v7152_v58  ;;  %v7203_v57 = vld [vmem:[%s8667_s9 + $0x270] sm:$0xff]   ;;  %v596_v58 = vld [vmem:[%s7683_s21 + $0x4] sm:$0xe] }
 0x4ca   : > { %6207 = vmatprep.subr.bf16.mxu0 %v7153_v59  ;;  %6229 = vmatprep.subr.bf16.mxu1 %v7155_v60  ;;  %v7204_v59 = vld [vmem:[%s8667_s9 + $0x230] sm:$0xff]  }
 0x4cb   : > { %v7205_v60 = vld [vmem:[%s8667_s9 + $0x2b0] sm:$0xff]  }
 0x4cc   : > { %3805 = vmatmul.mubr.bf16.vlgmr.msra.gmra.mrb[28].mxu0 %v8175_v8  ;;  %3846 = vmatmul.mubr.bf16.vlgmr.msra.gmra.mrb[28].mxu1 %v7973_v17  ;;  %v7163_v17 = vld [vmem:[%s8667_s9 + $0x1d0] sm:$0xff]  }
 0x4cd   : > { %6208 = vmatpush3.bf16.msra.mxu0 %v7154_v61  ;;  %6230 = vmatpush3.bf16.msra.mxu1 %v7156_v62  ;;  %v7162_v8 = vld [vmem:[%s8667_s9 + $0x110] sm:$0xff]   ;;  %v7301_v61 = vld [vmem:[%s7683_s21 + $0x8] sm:$0xf] }
 0x4ce   : > { %6209 = vmatprep.subr.bf16.mxu0 %v7157_v63  ;;  %6231 = vmatprep.subr.bf16.mxu1 %v7159_v2  ;;  %v5489_v62 = vcombine.low %v596_v58, %v7301_v61  ;;  %v7206_v63 = vld [vmem:[%s8667_s9 + $0x278] sm:$0xff]  }
 0x4cf   : > { %3886 = vmatprep.mubr.bf16.mxu0 %v7715_v47  ;;  %3927 = vmatprep.mubr.bf16.mxu1 %v7979_v5  ;;  %v7167_v47 = vld [vmem:[%s8667_s9 + $0x1d8] sm:$0xff]  }
 0x4d0   : > { %v7166_v5 = vld [vmem:[%s8667_s9 + $0x118] sm:$0xff]  }
 0x4d1   : > { %6210 = vmatpush3.bf16.msra.mxu0 %v7158_v3  ;;  %6232 = vmatpush3.bf16.msra.mxu1 %v7160_v6  ;;  %v7207_v2 = vld [vmem:[%s8667_s9 + $0x238] sm:$0xff]   ;;  %v731_v6 = vrot.slane %v5489_v62, 1 }
 0x4d2   : > { %6211 = vmatprep.subr.bf16.mxu0 %v7161_v7  ;;  %6233 = vmatprep.subr.bf16.mxu1 %v7163_v17  ;;  %v7209_v3 = vld [vmem:[%s8667_s9 + $0x2b8] sm:$0xff]   ;;  %v732_v7 = vrot.slane %v8355_v24, 1  ;;  %v7227_v24 = vld [vmem:[#allocation8 + $0xe0] sm:$0xff]  }
 0x4d4   : > { %v733_v17 = vsel %vm623_vm14, %v731_v6, %v732_v7 }
 0x4d5   : > { %6212 = vmatpush3.bf16.msra.mxu0 %v7162_v8  ;;  %6234 = vmatpush3.bf16.msra.mxu1 %v7164_v9  ;;  %v7210_v8 = vld [vmem:[#allocation8 + $0x40] sm:$0xff]  }
 0x4d6   : > { %6213 = vmatprep.subr.bf16.mxu0 %v7165_v10  ;;  %6235 = vmatprep.subr.bf16.mxu1 %v7167_v47  ;;  %v7211_v9 = vld [vmem:[#allocation8 + $0xc0] sm:$0xff]  }
 0x4d7   : > { %v7212_v10 = vld [vmem:[#allocation8] sm:$0xff]  }
 0x4d8   : > { %v7213_v47 = vld [vmem:[#allocation8 + $0x80] sm:$0xff]  }
 0x4d9   : > { %6214 = vmatpush3.bf16.msra.mxu0 %v7166_v5  ;;  %6236 = vmatpush3.bf16.msra.mxu1 %v7168_v36  ;;  %v7214_v5 = vld [vmem:[#allocation8 + $0x48] sm:$0xff]  }
 0x4da   : > { %6215 = vmatprep.subr.bf16.mxu0 %v7169_v11  ;;  %6237 = vmatprep.subr.bf16.mxu1 %v7171_v12  ;;  %v7215_v36 = vld [vmem:[#allocation8 + $0xc8] sm:$0xff]  }
 0x4db   : > { %v7216_v11 = vld [vmem:[#allocation8 + $0x8] sm:$0xff]  }
 0x4dc   : > { %v7217_v12 = vld [vmem:[#allocation8 + $0x88] sm:$0xff]  }
 0x4dd   : > { %6216 = vmatpush3.bf16.msra.mxu0 %v7170_v14  ;;  %6238 = vmatpush3.bf16.msra.mxu1 %v7172_v15  ;;  %v7218_v14 = vld [vmem:[#allocation8 + $0x50] sm:$0xff]  }
 0x4de   : > { %6217 = vmatprep.subr.bf16.mxu0 %v7173_v16  ;;  %6239 = vmatprep.subr.bf16.mxu1 %v7175_v18  ;;  %v7219_v15 = vld [vmem:[#allocation8 + $0xd0] sm:$0xff]   ;;  %v7222_v18 = vld [vmem:[#allocation8 + $0x58] sm:$0xff]  }
 0x4df   : > { %v7221_v16 = vld [vmem:[#allocation8 + $0x90] sm:$0xff]  }
 0x4e1   : > { %6218 = vmatpush3.bf16.msra.mxu0 %v7174_v19  ;;  %6240 = vmatpush3.bf16.msra.mxu1 %v7176_v20  ;;  %v7223_v19 = vld [vmem:[#allocation8 + $0xd8] sm:$0xff]  }
 0x4e2   : > { %6219 = vmatprep.subr.bf16.mxu0 %v7177_v21  ;;  %6241 = vmatprep.subr.bf16.mxu1 %v7179_v22  ;;  %v7224_v20 = vld [vmem:[#allocation8 + $0x18] sm:$0xff]   ;;  %v7226_v22 = vld [vmem:[#allocation8 + $0x60] sm:$0xff]  }
 0x4e3   : > { %v7225_v21 = vld [vmem:[#allocation8 + $0x98] sm:$0xff]  }
 0x4e5   : > { %6220 = vmatpush3.bf16.msra.mxu0 %v7178_v26  ;;  %6242 = vmatpush3.bf16.msra.mxu1 %v7180_v27  ;;  %v7229_v26 = vld [vmem:[#allocation8 + $0xa0] sm:$0xff]   ;;  %v7230_v27 = vld [vmem:[#allocation8 + $0x68] sm:$0xff]  }
 0x4e6   : > { %6221 = vmatprep.subr.bf16.mxu0 %v7181_v1  ;;  %6243 = vmatprep.subr.bf16.mxu1 %v7183_v28  ;;  %v7231_v1 = vld [vmem:[#allocation8 + $0xe8] sm:$0xff]  }
 0x4e7   : > { %v7232_v28 = vld [vmem:[#allocation8 + $0x28] sm:$0xff]  }
 0x4e9   : > { %6222 = vmatpush3.bf16.msra.mxu0 %v7182_v33  ;;  %6244 = vmatpush3.bf16.msra.mxu1 %v7184_v34  ;;  %v7236_v33 = vld [vmem:[#allocation8 + $0x30] sm:$0xff]  }
 0x4ea   : > { %6251 = vmatprep.subr.bf16.mxu0 %v7185_v23  ;;  %6655 = vmatprep.subr.bf16.mxu1 %v7407_v0  ;;  %v7237_v34 = vld [vmem:[#allocation8 + $0xb0] sm:$0xff]   ;;  %v7238_v23 = vld [vmem:[#allocation8 + $0x78] sm:$0xff]  }
 0x4ec   : > { %3887 = vmatmul.mubr.bf16.vlgmr.msra.gmra.mrb[32].mxu0 %v7712_v46  ;;  %3928 = vmatmul.mubr.bf16.vlgmr.msra.gmra.mrb[32].mxu1 %v7718_v48  ;;  %v7191_v46 = vld [vmem:[%s8667_s9 + $0x250] sm:$0xff]  }
 0x4ed   : > { %6252 = vmatpush3.bf16.msra.mxu0 %v7186_v37  ;;  %6656 = vmatpush3.bf16.msra.mxu1 %v7187_v38  ;;  %v7192_v48 = vld [vmem:[%s8667_s9 + $0x210] sm:$0xff]   ;;  %v7240_v38 = vld [vmem:[#allocation8 + $0x38] sm:$0xff]  }
 0x4ee   : > { %6253 = vmatprep.subr.bf16.mxu0 %v7188_v39  ;;  %6657 = vmatprep.subr.bf16.mxu1 %v7407_v0  ;;  %v7241_v39 = vld [vmem:[#allocation8 + $0xb8] sm:$0xff]  }
 0x4ef   : > { %3968 = vmatprep.mubr.bf16.mxu0 %v726_v40  ;;  %6671 = vmatprep.mubr.msk.bf16.mxu1 %vm7408_vm0, %v7407_v0 }
 0x4f1   : > { %6254 = vmatpush3.bf16.msra.mxu0 %v7189_v41  ;;  %6658 = vmatpush3.bf16.msra.mxu1 %v7190_v43 }
 0x4f2   : > { %6255 = vmatprep.subr.bf16.mxu0 %v7191_v46  ;;  %6659 = vmatprep.subr.bf16.mxu1 %v7407_v0  ;;  %v7242_v46 = vld [vmem:[#allocation8 + $0x140] sm:$0xff]  }
 0x4f5   : > { %6256 = vmatpush3.bf16.msra.mxu0 %v7192_v48  ;;  %6660 = vmatpush3.bf16.msra.mxu1 %v7193_v45  ;;  %v7243_v48 = vld [vmem:[#allocation8 + $0x1c0] sm:$0xff]  }
 0x4f6   : > { %6257 = vmatprep.subr.bf16.mxu0 %v7194_v49  ;;  %6661 = vmatprep.subr.bf16.mxu1 %v7407_v0 }
 0x4f9   : > { %6258 = vmatpush3.bf16.msra.mxu0 %v7195_v51  ;;  %6662 = vmatpush3.bf16.msra.mxu1 %v7196_v52  ;;  %v5686_v51 = vld [vmem:[%s8699_s28] ss:$0 sm:$0xff] }
 0x4fa   : > { %6259 = vmatprep.subr.bf16.mxu0 %v7197_v53  ;;  %6663 = vmatprep.subr.bf16.mxu1 %v7407_v0 }
 0x4fd   : > { %6260 = vmatpush3.bf16.msra.mxu0 %v7198_v54  ;;  %6664 = vmatpush3.bf16.msra.mxu1 %v7199_v55 }
 0x4fe   : > { %6261 = vmatprep.subr.bf16.mxu0 %v7200_v4  ;;  %6665 = vmatprep.subr.bf16.mxu1 %v7407_v0 }
 0x501   : > { %6262 = vmatpush3.bf16.msra.mxu0 %v7201_v50  ;;  %6666 = vmatpush3.bf16.msra.mxu1 %v7202_v56 }
 0x502   : > { %6263 = vmatprep.subr.bf16.mxu0 %v7203_v57  ;;  %6667 = vmatprep.subr.bf16.mxu1 %v7407_v0 }
 0x505   : > { %6264 = vmatpush3.bf16.msra.mxu0 %v7204_v59  ;;  %6668 = vmatpush3.bf16.msra.mxu1 %v7205_v60 }
 0x506   : > { %6265 = vmatprep.subr.bf16.mxu0 %v7206_v63  ;;  %6669 = vmatprep.subr.bf16.mxu1 %v7407_v0 }
 0x509   : > { %6266 = vmatpush3.bf16.msra.mxu0 %v7207_v2  ;;  %6670 = vmatpush3.bf16.msra.mxu1 %v7209_v3 }
 0x50a   : > { %6282 = vmatprep.subr.bf16.mxu0 %v7210_v8  ;;  %6304 = vmatprep.subr.bf16.mxu1 %v7211_v9 }
 0x50c   : > { %3969 = vmatmul.mubr.bf16.vlgmr.msra.gmra.mrb[36].mxu0 %v7993_v44  ;;  %6672 = vmatmul.mubr.bf16.vlgmr.msra.gmra.mrb[36].mxu1 %v733_v17  ;;  %v7220_v44 = vld [vmem:[#allocation8 + $0x10] sm:$0xff]  }
 0x50d   : > { %6283 = vmatpush3.bf16.msra.mxu0 %v7212_v10  ;;  %6305 = vmatpush3.bf16.msra.mxu1 %v7213_v47 }
 0x50e   : > { %6284 = vmatprep.subr.bf16.mxu0 %v7214_v5  ;;  %6306 = vmatprep.subr.bf16.mxu1 %v7215_v36 }
 0x511   : > { %6285 = vmatpush3.bf16.msra.mxu0 %v7216_v11  ;;  %6307 = vmatpush3.bf16.msra.mxu1 %v7217_v12 }
 0x512   : > { %6286 = vmatprep.subr.bf16.mxu0 %v7218_v14  ;;  %6308 = vmatprep.subr.bf16.mxu1 %v7219_v15 }
 0x515   : > { %6287 = vmatpush3.bf16.msra.mxu0 %v7220_v44  ;;  %6309 = vmatpush3.bf16.msra.mxu1 %v7221_v16 }
 0x516   : > { %6288 = vmatprep.subr.bf16.mxu0 %v7222_v18  ;;  %6310 = vmatprep.subr.bf16.mxu1 %v7223_v19 }
 0x519   : > { %6289 = vmatpush3.bf16.msra.mxu0 %v7224_v20  ;;  %6311 = vmatpush3.bf16.msra.mxu1 %v7225_v21 }
 0x51a   : > { %6290 = vmatprep.subr.bf16.mxu0 %v7226_v22  ;;  %6312 = vmatprep.subr.bf16.mxu1 %v7227_v24 }
 0x51d   : > { %6291 = vmatpush3.bf16.msra.mxu0 %v7228_v25  ;;  %6313 = vmatpush3.bf16.msra.mxu1 %v7229_v26 }
 0x51e   : > { %6292 = vmatprep.subr.bf16.mxu0 %v7230_v27  ;;  %6314 = vmatprep.subr.bf16.mxu1 %v7231_v1 }
 0x521   : > { %6293 = vmatpush3.bf16.msra.mxu0 %v7232_v28  ;;  %6315 = vmatpush3.bf16.msra.mxu1 %v7233_v29 }
 0x522   : > { %6294 = vmatprep.subr.bf16.mxu0 %v7234_v31  ;;  %6316 = vmatprep.subr.bf16.mxu1 %v7235_v32 }
 0x525   : > { %6295 = vmatpush3.bf16.msra.mxu0 %v7236_v33  ;;  %6317 = vmatpush3.bf16.msra.mxu1 %v7237_v34 }
 0x526   : > { %6296 = vmatprep.subr.bf16.mxu0 %v7238_v23  ;;  %6318 = vmatprep.subr.bf16.mxu1 %v7239_v35 }
 0x529   : > { %6297 = vmatpush3.bf16.msra.mxu0 %v7240_v38  ;;  %6319 = vmatpush3.bf16.msra.mxu1 %v7241_v39  ;;  %v4039_v39 = vld [vmem:[#allocation2] sm:$0xfc] }
 0x52a   : > { %6326 = vmatprep.subr.bf16.mxu0 %v7242_v46  ;;  %6348 = vmatprep.subr.bf16.mxu1 %v7243_v48 }
 0x57f   : > { %v2969_v30 = vpop.f32.mrb[10].mxu0  ;;  %v3055_v37 = vpop.f32.mrb[10].mxu1 }
 0x580   : > { %v3059_v40 = vmax.f32 %v2969_v30, %v3055_v37  ;;  %v6619_v41 = vpop.f32.mrb[11].mxu0  ;;  %v6654_v43 = vpop.f32.mrb[11].mxu1 }
 0x582   : > { %3060 = vst.msk [vmem:[%s580_s25] sm:$0xff] %vm1533_vm6, %v3059_v40  ;;  %v4042_v40 = vld [vmem:[#allocation2 + $0x8] sm:$0x7] }
 0x59f   : > { %v6179_v45 = vpop.f32.mrb[28].mxu0  ;;  %v6201_v49 = vpop.f32.mrb[28].mxu1 }
 0x5a0   : > { %v6180_v52 = vpop.f32.mrb[29].mxu0  ;;  %v6202_v53 = vpop.f32.mrb[29].mxu1 }
 0x5a1   : > { %v6181_v54 = vadd.f32 %v6180_v52, %v6179_v45  ;;  %v6182_v55 = vpop.f32.mrb[30].mxu0  ;;  %v6203_v4 = vadd.f32 %v6202_v53, %v6201_v49  ;;  %v6204_v50 = vpop.f32.mrb[30].mxu1 }
 0x5a2   : > { %v6183_v56 = vpop.f32.mrb[31].mxu0  ;;  %v6205_v57 = vpop.f32.mrb[31].mxu1 }
 0x5a3   : > { %v3807_v58 = vadd.f32 %v6181_v54, %v5686_v51  ;;  %v6184_v59 = vadd.f32 %v6183_v56, %v6182_v55  ;;  %v6206_v60 = vadd.f32 %v6205_v57, %v6204_v50 }
 0x5a5   : > { %v3810_v61 = vadd.f32 %v6184_v59, %v5686_v51  ;;  %v3848_v62 = vadd.f32 %v6203_v4, %v3807_v58 }
 0x5a7   : > { %v3851_v63 = vadd.f32 %v6206_v60, %v3810_v61 }
 0x5bf   : > { %v6223_v2 = vpop.f32.mrb[32].mxu0  ;;  %v6245_v3 = vpop.f32.mrb[32].mxu1 }
 0x5c0   : > { %v6224_v6 = vpop.f32.mrb[33].mxu0  ;;  %v6246_v7 = vpop.f32.mrb[33].mxu1 }
 0x5c1   : > { %v6225_v17 = vadd.f32 %v6224_v6, %v6223_v2  ;;  %v6226_v8 = vpop.f32.mrb[34].mxu0  ;;  %v6247_v9 = vadd.f32 %v6246_v7, %v6245_v3  ;;  %v6248_v10 = vpop.f32.mrb[34].mxu1 }
 0x5c2   : > { %v6227_v47 = vpop.f32.mrb[35].mxu0  ;;  %v6249_v5 = vpop.f32.mrb[35].mxu1 }
 0x5c3   : > { %v3889_v36 = vadd.f32 %v6225_v17, %v3848_v62  ;;  %v6228_v11 = vadd.f32 %v6227_v47, %v6226_v8  ;;  %v6250_v12 = vadd.f32 %v6249_v5, %v6248_v10 }
 0x5c5   : > { %v3892_v14 = vadd.f32 %v6228_v11, %v3851_v63  ;;  %v3930_v15 = vadd.f32 %v6247_v9, %v3889_v36  ;;  %v7244_v9 = vld [vmem:[#allocation8 + $0x100] sm:$0xff]   ;;  %v7246_v36 = vld [vmem:[#allocation8 + $0x148] sm:$0xff]  }
 0x5c7   : > { %v3933_v44 = vadd.f32 %v6250_v12, %v3892_v14  ;;  %v7245_v14 = vld [vmem:[#allocation8 + $0x180] sm:$0xff]  }
 0x5df   : > { %v6267_v16 = vpop.f32.mrb[36].mxu0  ;;  %v4011_v18 = vpop.f32.mrb[36].mxu1 }
 0x5e0   : > { %v6268_v19 = vpop.f32.mrb[37].mxu0  ;;  %v6673_v20 = vpop.f32.mrb[37].mxu1 }
 0x5e1   : > { %v6269_v21 = vadd.f32 %v6268_v19, %v6267_v16  ;;  %v6270_v22 = vpop.f32.mrb[38].mxu0  ;;  %v4014_v24 = vpop.f32.mrb[38].mxu1  ;;  %v7247_v16 = vld [vmem:[#allocation8 + $0x1c8] sm:$0xff]  }
 0x5e2   : > { %v6271_v25 = vpop.f32.mrb[39].mxu0  ;;  %v6674_v26 = vpop.f32.mrb[39].mxu1 }
 0x5e3   : > { %v3971_v27 = vadd.f32 %v6269_v21, %v3930_v15  ;;  %v6272_v1 = vadd.f32 %v6271_v25, %v6270_v22  ;;  %v7248_v21 = vld [vmem:[#allocation8 + $0x108] sm:$0xff]  }
 0x5e5   : > { %v4012_v28 = vadd.f32 %v4011_v18, %v3971_v27  ;;  %v3974_v29 = vadd.f32 %v6272_v1, %v3933_v44  ;;  %v7250_v27 = vld [vmem:[#allocation8 + $0x150] sm:$0xff]  }
 0x5e7   : > { %v4015_v31 = vadd.f32 %v4014_v24, %v3974_v29  ;;  %v4018_v32 = vmax.f32 %v4012_v28, 0.0 }
 0x5e9   : > { %v4019_v33 = vmax.f32 %v4015_v31, 0.0  ;;  %v7249_v31 = vld [vmem:[#allocation8 + $0x188] sm:$0xff]  }
 0x5eb   : > { %v4026_v34 = vpack.c.bf16 %v4019_v33, %v4018_v32 }
 0x5ed   : > { %v4028_v23 = vshrl.u32 %v4026_v34, 16  ;;  %v4031_v35 = vshll.u32 %v4026_v34, 16 }
 0x5ef   : > { %v4030_v30 = vrot.slane %v4028_v23, 5  ;;  %v4033_v37 = vrot.slane %v4031_v35, 6  ;;  %v7251_v23 = vld [vmem:[#allocation8 + $0x1d0] sm:$0xff]  }
 0x5f1   : > { %v4034_v38 = vor.u32 %v4033_v37, %v4030_v30  ;;  %v7252_v30 = vld [vmem:[#allocation8 + $0x110] sm:$0xff]  }
 0x5f3   : > { %v4040_v41 = vsel %vm4038_vm9, %v4034_v38, %v4039_v39  ;;  %v4043_v43 = vsel %vm8014_vm13, %v4034_v38, %v4042_v40 }
 0x5f4   : > { %4044 = vst [vmem:[#allocation2 + $0x8] sm:$0x7] %v4043_v43  ;;  %4041 = vst [vmem:[#allocation2] sm:$0xfc] %v4040_v41  ;;  %v7254_v41 = vld [vmem:[#allocation8 + $0x158] sm:$0xff]  }
 0x5fb   : > { %v4047_v46 = vld [vmem:[#allocation2 + $0x8] sm:$0x1c]  ;;  %v4051_v48 = vld [vmem:[#allocation2] sm:$0xff]  ;;  %v4052_v45 = vld [vmem:[#allocation2 + $0x8] sm:$0x1] }
 0x5fc   : > { %v4048_v49 = vsel %vm4046_vm11, 0, %v4047_v46  ;;  %v4065_v51 = vshll.u32 %v4051_v48, 16  ;;  %v4070_v52 = vshll.u32 %v4052_v45, 16  ;;  %v4053_v53 = vld [vmem:[#allocation2] sm:$0xfe]  ;;  %v4063_v54 = vshrl.u32 %v4051_v48, 16 }
 0x5fd   : > { %4049 = vst [vmem:[#allocation2 + $0x8] sm:$0x1c] %v4048_v49  ;;  %v8478_v55 = vld [vmem:[#allocation2 + $0x8] sm:$0x3]  ;;  %v4082_v4 = vshrl.u32 %v4053_v53, 16  ;;  %v4085_v50 = vshll.u32 %v4053_v53, 16 }
 0x5fe   : > { %v4067_v56 = vrot.slane %v4065_v51, 1  ;;  %v4090_v42 = vshrl.u32 %v8478_v55, 16  ;;  %v4093_v57 = vshll.u32 %v8478_v55, 16  ;;  %v4077_v58 = vrot.slane %v4053_v53, 1  ;;  %v8482_v59 = vld [vmem:[#allocation2] sm:$0xfc] }
 0x5ff   : > { %v4072_v60 = vrot.slane %v4070_v52, 1  ;;  %v4084_v61 = vrot.slane %v4082_v4, 1  ;;  %v4087_v62 = vrot.slane %v4085_v50, 2  ;;  %v4078_v63 = vrot.slane %v4052_v45, 1  ;;  %v8484_v2 = vld [vmem:[#allocation2] sm:$0xf8] }
 0x600   : > { %v4068_v3 = vor.u32 %v4067_v56, %v4063_v54  ;;  %v4092_v6 = vrot.slane %v4090_v42, 1  ;;  %v4095_v7 = vrot.slane %v4093_v57, 2  ;;  %v4106_v17 = vshrl.u32 %v8482_v59, 16  ;;  %v7253_v46 = vld [vmem:[#allocation8 + $0x190] sm:$0xff]   ;;  %v7255_v45 = vld [vmem:[#allocation8 + $0x1d8] sm:$0xff]   ;;  %v7258_v51 = vld [vmem:[#allocation8 + $0x160] sm:$0xff]  }
 0x601   : > { %v4088_v8 = vor.u32 %v4087_v62, %v4084_v61  ;;  %v4109_v10 = vshll.u32 %v8482_v59, 16  ;;  %v4130_v11 = vshrl.u32 %v8484_v2, 16  ;;  %v4133_v12 = vshll.u32 %v8484_v2, 16  ;;  %v7256_v49 = vld [vmem:[#allocation8 + $0x118] sm:$0xff]   ;;  %v7259_v53 = vld [vmem:[#allocation8 + $0x1e0] sm:$0xff]   ;;  %v7262_v4 = vld [vmem:[#allocation8 + $0x168] sm:$0xff]  }
 0x602   : > { %v4073_v47 = vsel %vm606_vm15, %v4068_v3, %v4072_v60  ;;  %v4096_v5 = vor.u32 %v4095_v7, %v4092_v6  ;;  %v4079_v44 = vsel %vm623_vm14, %v4077_v58, %v4078_v63  ;;  %v4108_v19 = vrot.slane %v4106_v17, 2  ;;  %v7257_v52 = vld [vmem:[#allocation8 + $0x198] sm:$0xff]   ;;  %v7260_v54 = vld [vmem:[#allocation8 + $0x120] sm:$0xff]   ;;  %v7263_v56 = vld [vmem:[#allocation8 + $0x1e8] sm:$0xff]  }
 0x603   : > { %4922 = vmatprep.mubr.bf16.mxu0 %v4073_v47  ;;  %v4111_v22 = vrot.slane %v4109_v10, 3  ;;  %v4132_v1 = vrot.slane %v4130_v11, 3  ;;  %v4135_v28 = vrot.slane %v4133_v12, 4  ;;  %vm8700_vm14 = vsmask.f32 4352  ;;  %v7261_v50 = vld [vmem:[#allocation8 + $0x1a0] sm:$0xff]  }
 0x604   : > { %v4097_v15 = vsel %vm631_vm4, %v4088_v8, %v4096_v5  ;;  %4923 = vmatmul.mubr.bf16.vlgmr.msra.gmra.mrb[40].mxu0 %v4051_v48  ;;  %v8493_v18 = vld [vmem:[#allocation2 + $0x8] sm:$0x7]  ;;  %v7266_v58 = vld [vmem:[#allocation8 + $0x170] sm:$0xff]   ;;  %v8505_v61 = vld [vmem:[#allocation2] sm:$0xf0] }
 0x605   : > { %v8495_v20 = vld [vmem:[#allocation2 + $0x8] sm:$0xf]  ;;  %4963 = vmatprep.mubr.bf16.mxu1 %v4097_v15  ;;  %6327 = vmatpush3.bf16.msra.mxu0 %v7244_v9  ;;  %v4114_v24 = vshrl.u32 %v8493_v18, 16  ;;  %v4117_v25 = vshll.u32 %v8493_v18, 16  ;;  %v4112_v37 = vor.u32 %v4111_v22, %v4108_v19  ;;  %v4136_v39 = vor.u32 %v4135_v28, %v4132_v1  ;;  %v7267_v62 = vld [vmem:[#allocation8 + $0x1f0] sm:$0xff]   ;;  %v7270_v7 = vld [vmem:[#allocation8 + $0x178] sm:$0xff]  }
 0x606   : > { %v4138_v26 = vshrl.u32 %v8495_v20, 16  ;;  %4964 = vmatmul.mubr.bf16.vlgmr.msra.gmra.mrb[40].mxu1 %v4079_v44  ;;  %6328 = vmatprep.subr.bf16.mxu0 %v7246_v36  ;;  %v4141_v29 = vshll.u32 %v8495_v20, 16  ;;  %v7264_v42 = vld [vmem:[#allocation8 + $0x128] sm:$0xff]   ;;  %v7268_v6 = vld [vmem:[#allocation8 + $0x130] sm:$0xff]   ;;  %v4156_v17 = vshrl.u32 %v8505_v61, 16  ;;  %v4159_v8 = vshll.u32 %v8505_v61, 16 }
 0x607   : > { %6349 = vmatpush3.bf16.msra.mxu1 %v7245_v14  ;;  %v4116_v32 = vrot.slane %v4114_v24, 2  ;;  %v4119_v33 = vrot.slane %v4117_v25, 3  ;;  %v8503_v57 = vld [vmem:[#allocation2 + $0x8] sm:$0x1f]  ;;  %v7269_v9 = vld [vmem:[#allocation8 + $0x1b0] sm:$0xff]   ;;  %v7271_v10 = vld [vmem:[#allocation8 + $0x1f8] sm:$0xff]  }
 0x608   : > { %v4140_v34 = vrot.slane %v4138_v26, 3  ;;  %6350 = vmatprep.subr.bf16.mxu1 %v7247_v16  ;;  %v4143_v35 = vrot.slane %v4141_v29, 4  ;;  %v7265_v60 = vld [vmem:[#allocation8 + $0x1a8] sm:$0xff]   ;;  %v4164_v63 = vshrl.u32 %v8503_v57, 16  ;;  %v4167_v3 = vshll.u32 %v8503_v57, 16  ;;  %v7272_v36 = vld [vmem:[#allocation8 + $0x138] sm:$0xff]  }
 0x609   : > { %6329 = vmatpush3.bf16.msra.mxu0 %v7248_v21  ;;  %v4120_v38 = vor.u32 %v4119_v33, %v4116_v32  ;;  %v7274_v11 = vld [vmem:[#allocation8 + $0x240] sm:$0xff]   ;;  %v4158_v12 = vrot.slane %v4156_v17, 4  ;;  %v4161_v14 = vrot.slane %v4159_v8, 5  ;;  %v7273_v15 = vld [vmem:[#allocation8 + $0x1b8] sm:$0xff]   ;;  %v4101_v44 = vrot.slane %v8482_v59, 2  ;;  %v7277_v25 = vld [vmem:[#allocation8 + $0x248] sm:$0xff]  }
 0x60a   : > { %6330 = vmatprep.subr.bf16.mxu0 %v7250_v27  ;;  %v4144_v40 = vor.u32 %v4143_v35, %v4140_v34  ;;  %v4166_v47 = vrot.slane %v4164_v63, 4  ;;  %v4169_v5 = vrot.slane %v4167_v3, 5  ;;  %v4102_v16 = vrot.slane %v8478_v55, 2  ;;  %v7275_v22 = vld [vmem:[#allocation8 + $0x200] sm:$0xff]   ;;  %v7280_v28 = vld [vmem:[#allocation8 + $0x250] sm:$0xff]   ;;  %v7279_v29 = vld [vmem:[#allocation8 + $0x288] sm:$0xff]  }
 0x60b   : > { %6351 = vmatpush3.bf16.msra.mxu1 %v7249_v31  ;;  %v4121_v43 = vsel %vm661_vm1, %v4112_v37, %v4120_v38  ;;  %v4126_v21 = vrot.slane %v8493_v18, 3  ;;  %vm4154_vm1 = vsmask.f32 3328  ;;  %v4162_v24 = vor.u32 %v4161_v14, %v4158_v12  ;;  %v7276_v1 = vld [vmem:[#allocation8 + $0x280] sm:$0xff]   ;;  %v7278_v18 = vld [vmem:[#allocation8 + $0x208] sm:$0xff]   ;;  %v7283_v31 = vld [vmem:[#allocation8 + $0x258] sm:$0xff]  }
 0x60c   : > { %6352 = vmatprep.subr.bf16.mxu1 %v7251_v23  ;;  %5004 = vmatprep.mubr.bf16.mxu0 %v4121_v43  ;;  %v4145_v48 = vsel %vm8700_vm14, %v4136_v39, %v4144_v40  ;;  %v4170_v19 = vor.u32 %v4169_v5, %v4166_v47  ;;  %v4103_v26 = vsel %vm653_vm2, %v4101_v44, %v4102_v16  ;;  %v4125_v27 = vrot.slane %v8484_v2, 3  ;;  %v7281_v2 = vld [vmem:[#allocation8 + $0x210] sm:$0xff]   ;;  %v7284_v33 = vld [vmem:[#allocation8 + $0x218] sm:$0xff]   ;;  %v7286_v34 = vld [vmem:[#allocation8 + $0x260] sm:$0xff]  }
 0x60d   : > { %6331 = vmatpush3.bf16.msra.mxu0 %v7252_v30  ;;  %5045 = vmatprep.mubr.bf16.mxu1 %v4145_v48  ;;  %v7282_v32 = vld [vmem:[#allocation8 + $0x290] sm:$0xff]   ;;  %v7285_v23 = vld [vmem:[#allocation8 + $0x298] sm:$0xff]   ;;  %v7287_v35 = vld [vmem:[#allocation8 + $0x220] sm:$0xff]   ;;  %vm4149_vm2 = vcmask 1043456  }
 0x60e   : > { %6332 = vmatprep.subr.bf16.mxu0 %v7254_v41  ;;  %v4171_v55 = vsel %vm4154_vm1, %v4162_v24, %v4170_v19  ;;  %v4127_v59 = vsel %vm683_vm3, %v4125_v27, %v4126_v21  ;;  %v7289_v30 = vld [vmem:[#allocation8 + $0x268] sm:$0xff]   ;;  %v7288_v37 = vld [vmem:[#allocation8 + $0x2a0] sm:$0xff]   ;;  %v7292_v39 = vld [vmem:[#allocation8 + $0x270] sm:$0xff]  }
 0x60f   : > { %6353 = vmatpush3.bf16.msra.mxu1 %v7253_v46  ;;  %v7290_v38 = vld [vmem:[#allocation8 + $0x228] sm:$0xff]   ;;  %v7293_v41 = vld [vmem:[#allocation8 + $0x230] sm:$0xff]   ;;  %v7295_v43 = vld [vmem:[#allocation8 + $0x278] sm:$0xff]  }
 0x610   : > { %6354 = vmatprep.subr.bf16.mxu1 %v7255_v45  ;;  %v7291_v40 = vld [vmem:[#allocation8 + $0x2a8] sm:$0xff]   ;;  %v7294_v46 = vld [vmem:[#allocation8 + $0x2b0] sm:$0xff]   ;;  %v7296_v48 = vld [vmem:[#allocation8 + $0x238] sm:$0xff]  }
 0x611   : > { %6333 = vmatpush3.bf16.msra.mxu0 %v7256_v49  ;;  %v7297_v45 = vld [vmem:[#allocation8 + $0x2b8] sm:$0xff]   ;;  %v4151_v49 = vrot.slane %v8495_v20, 4  ;;  %v5143_v20 = vld [vmem:[%s8671_s13] sm:$0xff]  ;;  %v5148_v17 = vld [vmem:[%s8671_s13 + $0x28] sm:$0xff] }
 0x612   : > { %6334 = vmatprep.subr.bf16.mxu0 %v7258_v51  ;;  %v4061_v51 = vld [vmem:[#allocation2] sm:$0xe0]  ;;  %v5867_v63 = vld [vmem:[%s8671_s13 + $0x98] sm:$0xff]  ;;  %v5149_v5 = vld [vmem:[%s8671_s13 + $0x30] sm:$0xff] }
 0x613   : > { %6355 = vmatpush3.bf16.msra.mxu1 %v7257_v52  ;;  %v4150_v52 = vrot.slane %v8505_v61, 4  ;;  %v5868_v8 = vld [vmem:[%s8671_s13 + $0xa0] sm:$0xff]  ;;  %v5871_v14 = vld [vmem:[%s8671_s13 + $0xb8] sm:$0xff]  ;;  %v5152_v44 = vld [vmem:[%s8671_s13 + $0x48] sm:$0xff] }
 0x614   : > { %6356 = vmatprep.subr.bf16.mxu1 %v7259_v53  ;;  %v4176_v53 = vrot.slane %v8503_v57, 5  ;;  %v5872_v19 = vld [vmem:[%s8671_s13 + $0xc0] sm:$0xff]  ;;  %v5873_v21 = vld [vmem:[%s8671_s13 + $0xc8] sm:$0xff]  ;;  %v5874_v27 = vld [vmem:[%s8671_s13 + $0xd0] sm:$0xff] }
 0x615   : > { %6335 = vmatpush3.bf16.msra.mxu0 %v7260_v54  ;;  %v4152_v54 = vsel %vm4149_vm2, %v4150_v52, %v4151_v49  ;;  %v6898_v24 = vpack.c.bf16 %v5873_v21, %v5872_v19 }
 0x616   : > { %6336 = vmatprep.subr.bf16.mxu0 %v7262_v4  ;;  %v4175_v4 = vrot.slane %v4061_v51, 5 }
 0x617   : > { %6357 = vmatpush3.bf16.msra.mxu1 %v7261_v50 }
 0x618   : > { %6358 = vmatprep.subr.bf16.mxu1 %v7263_v56  ;;  %v4177_v50 = vsel %vm4020_vm5, %v4175_v4, %v4176_v53  ;;  %v5144_v56 = vld [vmem:[%s8671_s13 + $0x8] sm:$0xff] }
 0x619   : > { %6337 = vmatpush3.bf16.msra.mxu0 %v7264_v42  ;;  %v5864_v42 = vld [vmem:[%s8671_s13 + $0x80] sm:$0xff]  ;;  %v6862_v57 = vpack.c.bf16 %v5144_v56, %v5143_v20 }
 0x61a   : > { %6338 = vmatprep.subr.bf16.mxu0 %v7266_v58  ;;  %v5865_v58 = vld [vmem:[%s8671_s13 + $0x88] sm:$0xff] }
 0x61b   : > { %6359 = vmatpush3.bf16.msra.mxu1 %v7265_v60  ;;  %v5146_v60 = vld [vmem:[%s8671_s13 + $0x18] sm:$0xff]  ;;  %v6886_v61 = vpack.c.bf16 %v5865_v58, %v5864_v42 }
 0x61c   : > { %6360 = vmatprep.subr.bf16.mxu1 %v7267_v62  ;;  %v5866_v62 = vld [vmem:[%s8671_s13 + $0x90] sm:$0xff] }
 0x61d   : > { %6339 = vmatpush3.bf16.msra.mxu0 %v7268_v6  ;;  %v6889_v6 = vpack.c.bf16 %v5867_v63, %v5866_v62 }
 0x61e   : > { %6340 = vmatprep.subr.bf16.mxu0 %v7270_v7  ;;  %v5147_v7 = vld [vmem:[%s8671_s13 + $0x20] sm:$0xff] }
 0x61f   : > { %6361 = vmatpush3.bf16.msra.mxu1 %v7269_v9  ;;  %v5869_v9 = vld [vmem:[%s8671_s13 + $0xa8] sm:$0xff] }
 0x620   : > { %6362 = vmatprep.subr.bf16.mxu1 %v7271_v10  ;;  %v6868_v10 = vpack.c.bf16 %v5148_v17, %v5147_v7  ;;  %v6892_v47 = vpack.c.bf16 %v5869_v9, %v5868_v8 }
 0x621   : > { %6341 = vmatpush3.bf16.msra.mxu0 %v7272_v36  ;;  %v5150_v36 = vld [vmem:[%s8671_s13 + $0x38] sm:$0xff] }
 0x622   : > { %6370 = vmatprep.subr.bf16.mxu0 %v7274_v11  ;;  %v5870_v11 = vld [vmem:[%s8671_s13 + $0xb0] sm:$0xff]  ;;  %v6871_v12 = vpack.c.bf16 %v5150_v36, %v5149_v5 }
 0x623   : > { %6363 = vmatpush3.bf16.msra.mxu1 %v7273_v15  ;;  %v5151_v15 = vld [vmem:[%s8671_s13 + $0x40] sm:$0xff]  ;;  %v6895_v16 = vpack.c.bf16 %v5871_v14, %v5870_v11 }
 0x624   : > { %5005 = vmatmul.mubr.bf16.vlgmr.msra.gmra.mrb[44].mxu0 %v4103_v26  ;;  %6675 = vmatprep.subr.bf16.mxu1 %v7407_v0  ;;  %v5154_v26 = vld [vmem:[%s8671_s13 + $0x58] sm:$0xff] }
 0x625   : > { %6371 = vmatpush3.bf16.msra.mxu0 %v7275_v22  ;;  %5086 = vmatprep.mubr.bf16.mxu0 %v4171_v55  ;;  %v6874_v22 = vpack.c.bf16 %v5152_v44, %v5151_v15 }
 0x626   : > { %5046 = vmatmul.mubr.bf16.vlgmr.msra.gmra.mrb[44].mxu1 %v4127_v59  ;;  %6372 = vmatprep.subr.bf16.mxu0 %v7277_v25  ;;  %v5153_v25 = vld [vmem:[%s8671_s13 + $0x50] sm:$0xff] }
 0x627   : > { %6676 = vmatpush3.bf16.msra.mxu1 %v7276_v1  ;;  %6691 = vmatprep.mubr.msk.bf16.mxu1 %vm7408_vm0, %v7407_v0  ;;  %v5875_v1 = vld [vmem:[%s8671_s13 + $0xd8] sm:$0xff]  ;;  %v6877_v55 = vpack.c.bf16 %v5154_v26, %v5153_v25 }
 0x628   : > { %6677 = vmatprep.subr.bf16.mxu1 %v7407_v0  ;;  %v6901_v59 = vpack.c.bf16 %v5875_v1, %v5874_v27 }
 0x629   : > { %6373 = vmatpush3.bf16.msra.mxu0 %v7278_v18  ;;  %v5155_v18 = vld [vmem:[%s8671_s13 + $0x60] sm:$0xff] }
 0x62a   : > { %6374 = vmatprep.subr.bf16.mxu0 %v7280_v28  ;;  %v5156_v28 = vld [vmem:[%s8671_s13 + $0x68] sm:$0xff] }
 0x62b   : > { %6678 = vmatpush3.bf16.msra.mxu1 %v7279_v29  ;;  %v5876_v29 = vld [vmem:[%s8671_s13 + $0xe0] sm:$0xff] }
 0x62c   : > { %6679 = vmatprep.subr.bf16.mxu1 %v7407_v0 }
 0x62d   : > { %6375 = vmatpush3.bf16.msra.mxu0 %v7281_v2  ;;  %v5877_v2 = vld [vmem:[%s8671_s13 + $0xe8] sm:$0xff] }
 0x62e   : > { %6376 = vmatprep.subr.bf16.mxu0 %v7283_v31  ;;  %v6880_v31 = vpack.c.bf16 %v5156_v28, %v5155_v18 }
 0x62f   : > { %6680 = vmatpush3.bf16.msra.mxu1 %v7282_v32  ;;  %v6904_v32 = vpack.c.bf16 %v5877_v2, %v5876_v29 }
 0x630   : > { %6681 = vmatprep.subr.bf16.mxu1 %v7407_v0 }
 0x631   : > { %6377 = vmatpush3.bf16.msra.mxu0 %v7284_v33  ;;  %v5157_v33 = vld [vmem:[%s8671_s13 + $0x70] sm:$0xff] }
 0x632   : > { %6378 = vmatprep.subr.bf16.mxu0 %v7286_v34  ;;  %v5158_v34 = vld [vmem:[%s8671_s13 + $0x78] sm:$0xff] }
 0x633   : > { %6682 = vmatpush3.bf16.msra.mxu1 %v7285_v23  ;;  %v5878_v23 = vld [vmem:[%s8671_s13 + $0xf0] sm:$0xff] }
 0x634   : > { %6683 = vmatprep.subr.bf16.mxu1 %v7407_v0 }
 0x635   : > { %6379 = vmatpush3.bf16.msra.mxu0 %v7287_v35  ;;  %v5879_v35 = vld [vmem:[%s8671_s13 + $0xf8] sm:$0xff] }
 0x636   : > { %6380 = vmatprep.subr.bf16.mxu0 %v7289_v30  ;;  %v6883_v30 = vpack.c.bf16 %v5158_v34, %v5157_v33 }
 0x637   : > { %6684 = vmatpush3.bf16.msra.mxu1 %v7288_v37  ;;  %v6907_v37 = vpack.c.bf16 %v5879_v35, %v5878_v23 }
 0x638   : > { %6685 = vmatprep.subr.bf16.mxu1 %v7407_v0 }
 0x639   : > { %6381 = vmatpush3.bf16.msra.mxu0 %v7290_v38 }
 0x63a   : > { %6382 = vmatprep.subr.bf16.mxu0 %v7292_v39  ;;  %v5775_v39 = vld [vmem:[%s8701_s23] ss:$0 sm:$0xff] }
 0x63b   : > { %6686 = vmatpush3.bf16.msra.mxu1 %v7291_v40 }
 0x63c   : > { %6687 = vmatprep.subr.bf16.mxu1 %v7407_v0 }
 0x63d   : > { %6383 = vmatpush3.bf16.msra.mxu0 %v7293_v41 }
 0x63e   : > { %6384 = vmatprep.subr.bf16.mxu0 %v7295_v43 }
 0x63f   : > { %6688 = vmatpush3.bf16.msra.mxu1 %v7294_v46 }
 0x640   : > { %6689 = vmatprep.subr.bf16.mxu1 %v7407_v0 }
 0x641   : > { %6385 = vmatpush3.bf16.msra.mxu0 %v7296_v48 }
 0x642   : > { %6861 = vmatprep.subr.bf16.mxu0 %v7409_v13 }
 0x643   : > { %6690 = vmatpush3.bf16.msra.mxu1 %v7297_v45 }
 0x644   : > { %5087 = vmatmul.mubr.bf16.vlgmr.msra.gmra.mrb[48].mxu0 %v4152_v54  ;;  %6885 = vmatprep.subr.bf16.mxu1 %v7409_v13 }
 0x645   : > { %6727 = vmatprep.mubr.msk.f32.mxu0 %vm7408_vm0, %v7407_v0  ;;  %6863 = vmatpush3.bf16.msra.mxu0 %v6862_v57 }
 0x646   : > { %6692 = vmatmul.mubr.bf16.vlgmr.msra.gmra.mrb[48].mxu1 %v4177_v50  ;;  %6864 = vmatprep.subr.bf16.mxu0 %v7409_v13 }
 0x647   : > { %6762 = vmatprep.mubr.msk.f32.mxu1 %vm7408_vm0, %v7407_v0  ;;  %v5145_v0 = vld [vmem:[%s8671_s13 + $0x10] sm:$0xff]  ;;  %6887 = vmatpush3.bf16.msra.mxu1 %v6886_v61 }
 0x648   : > { %v6865_v3 = vpack.c.bf16 %v5146_v60, %v5145_v0  ;;  %6888 = vmatprep.subr.bf16.mxu1 %v7409_v13 }
 0x64a   : > { %6866 = vmatpush3.bf16.msra.mxu0 %v6865_v3 }
 0x64b   : > { %6890 = vmatpush3.bf16.msra.mxu1 %v6889_v6  ;;  %6867 = vmatprep.subr.bf16.mxu0 %v7409_v13 }
 0x64c   : > { %6891 = vmatprep.subr.bf16.mxu1 %v7409_v13 }
 0x64e   : > { %6869 = vmatpush3.bf16.msra.mxu0 %v6868_v10 }
 0x64f   : > { %6893 = vmatpush3.bf16.msra.mxu1 %v6892_v47  ;;  %6870 = vmatprep.subr.bf16.mxu0 %v7409_v13 }
 0x650   : > { %6894 = vmatprep.subr.bf16.mxu1 %v7409_v13 }
 0x652   : > { %6872 = vmatpush3.bf16.msra.mxu0 %v6871_v12 }
 0x653   : > { %6896 = vmatpush3.bf16.msra.mxu1 %v6895_v16  ;;  %6873 = vmatprep.subr.bf16.mxu0 %v7409_v13 }
 0x654   : > { %6897 = vmatprep.subr.bf16.mxu1 %v7409_v13 }
 0x656   : > { %6875 = vmatpush3.bf16.msra.mxu0 %v6874_v22 }
 0x657   : > { %6899 = vmatpush3.bf16.msra.mxu1 %v6898_v24  ;;  %6876 = vmatprep.subr.bf16.mxu0 %v7409_v13 }
 0x658   : > { %6900 = vmatprep.subr.bf16.mxu1 %v7409_v13 }
 0x65a   : > { %6878 = vmatpush3.bf16.msra.mxu0 %v6877_v55 }
 0x65b   : > { %6902 = vmatpush3.bf16.msra.mxu1 %v6901_v59  ;;  %6879 = vmatprep.subr.bf16.mxu0 %v7409_v13 }
 0x65c   : > { %6903 = vmatprep.subr.bf16.mxu1 %v7409_v13 }
 0x65e   : > { %6881 = vmatpush3.bf16.msra.mxu0 %v6880_v31 }
 0x65f   : > { %6905 = vmatpush3.bf16.msra.mxu1 %v6904_v32  ;;  %6882 = vmatprep.subr.bf16.mxu0 %v7409_v13 }
 0x660   : > { %6906 = vmatprep.subr.bf16.mxu1 %v7409_v13 }
 0x662   : > { %6884 = vmatpush3.bf16.msra.mxu0 %v6883_v30 }
 0x663   : > { %6908 = vmatpush3.bf16.msra.mxu1 %v6907_v37 }
 0x6d7   : > { %v6298_v38 = vpop.f32.mrb[40].mxu0 }
 0x6d8   : > { %v6299_v40 = vpop.f32.mrb[41].mxu0 }
 0x6d9   : > { %v6320_v41 = vpop.f32.mrb[40].mxu1  ;;  %v6300_v43 = vadd.f32 %v6299_v40, %v6298_v38  ;;  %v6301_v46 = vpop.f32.mrb[42].mxu0 }
 0x6da   : > { %v6321_v48 = vpop.f32.mrb[41].mxu1  ;;  %v6302_v45 = vpop.f32.mrb[43].mxu0 }
 0x6db   : > { %v4925_v49 = vadd.f32 %v6300_v43, %v5775_v39  ;;  %v6322_v51 = vadd.f32 %v6321_v48, %v6320_v41  ;;  %v6323_v52 = vpop.f32.mrb[42].mxu1  ;;  %v6303_v53 = vadd.f32 %v6302_v45, %v6301_v46 }
 0x6dc   : > { %v6324_v54 = vpop.f32.mrb[43].mxu1 }
 0x6dd   : > { %v4966_v4 = vadd.f32 %v6322_v51, %v4925_v49  ;;  %v4928_v13 = vadd.f32 %v6303_v53, %v5775_v39  ;;  %v6325_v50 = vadd.f32 %v6324_v54, %v6323_v52 }
 0x6df   : > { %v4969_v20 = vadd.f32 %v6325_v50, %v4928_v13 }
 0x6f7   : > { %v6342_v56 = vpop.f32.mrb[44].mxu0 }
 0x6f8   : > { %v6343_v42 = vpop.f32.mrb[45].mxu0 }
 0x6f9   : > { %v6364_v57 = vpop.f32.mrb[44].mxu1  ;;  %v6344_v58 = vadd.f32 %v6343_v42, %v6342_v56  ;;  %v6345_v0 = vpop.f32.mrb[46].mxu0 }
 0x6fa   : > { %v6365_v60 = vpop.f32.mrb[45].mxu1  ;;  %v6346_v61 = vpop.f32.mrb[47].mxu0 }
 0x6fb   : > { %v5007_v62 = vadd.f32 %v6344_v58, %v4966_v4  ;;  %v6366_v63 = vadd.f32 %v6365_v60, %v6364_v57  ;;  %v6367_v3 = vpop.f32.mrb[46].mxu1  ;;  %v6347_v6 = vadd.f32 %v6346_v61, %v6345_v0 }
 0x6fc   : > { %v6368_v7 = vpop.f32.mrb[47].mxu1 }
 0x6fd   : > { %v5048_v17 = vadd.f32 %v6366_v63, %v5007_v62  ;;  %v5010_v8 = vadd.f32 %v6347_v6, %v4969_v20  ;;  %v6369_v9 = vadd.f32 %v6368_v7, %v6367_v3 }
 0x6ff   : > { %v5051_v10 = vadd.f32 %v6369_v9, %v5010_v8 }
 0x717   : > { %v6386_v47 = vpop.f32.mrb[48].mxu0 }
 0x718   : > { %v6387_v5 = vpop.f32.mrb[49].mxu0 }
 0x719   : > { %v5129_v36 = vpop.f32.mrb[48].mxu1  ;;  %v6388_v11 = vadd.f32 %v6387_v5, %v6386_v47  ;;  %v6389_v12 = vpop.f32.mrb[50].mxu0 }
 0x71a   : > { %v6693_v14 = vpop.f32.mrb[49].mxu1  ;;  %v6390_v15 = vpop.f32.mrb[51].mxu0 }
 0x71b   : > { %v5089_v44 = vadd.f32 %v6388_v11, %v5048_v17  ;;  %v5132_v16 = vpop.f32.mrb[50].mxu1  ;;  %v6391_v19 = vadd.f32 %v6390_v15, %v6389_v12 }
 0x71c   : > { %v6694_v21 = vpop.f32.mrb[51].mxu1 }
 0x71d   : > { %v5130_v22 = vadd.f32 %v5129_v36, %v5089_v44  ;;  %v5092_v24 = vadd.f32 %v6391_v19, %v5051_v10 }
 0x71f   : > { %v5136_v25 = vmax.f32 %v5130_v22, 0.0  ;;  %v5133_v26 = vadd.f32 %v5132_v16, %v5092_v24 }
 0x721   : > { %5138 = vst [vmem:[#allocation3] sm:$0xff] %v5136_v25  ;;  %v5137_v27 = vmax.f32 %v5133_v26, 0.0 }
 0x723   : > { %5139 = vst [vmem:[#allocation3 + $0x8] sm:$0xff] %v5137_v27 }
 0x72a   : > { %v5140_v1 = vld [vmem:[#allocation3] ss:$2 sm:$0xff]  ;;  %v5141_v55 = vld [vmem:[#allocation3 + $0x1] ss:$2 sm:$0xff] }
 0x72b   : > { %v5142_v59 = vmax.f32 %v5140_v1, %v5141_v55 }
 0x72d   : > { %6728 = vmatmul.mubr.f32.vlgmr.msra.gmra.mrb[52].mxu0 %v5142_v59  ;;  %6763 = vmatmul.mubr.f32.vlgmr.msra.gmra.mrb[52].mxu1 %v5142_v59 }
 0x800   : > { %v5225_v18 = vpop.f32.mrb[52].mxu0  ;;  %v5311_v28 = vpop.f32.mrb[52].mxu1 }
 0x801   : > { %v5315_v29 = vmax.f32 %v5225_v18, %v5311_v28  ;;  %v6729_v2 = vpop.f32.mrb[53].mxu0  ;;  %v6764_v31 = vpop.f32.mrb[53].mxu1 }
 0x803   : > { %5316 = vst.msk [vmem:[%s584_s17] sm:$0xff] %vm1533_vm6, %v5315_v29 }
 0x804 PF: > { %s8703_s19 = sld [smem:[#allocation11_spill]] }
 0x80a   : > { %s29_s21 = sadd.s32 1, %s8703_s19  }
 0x80b   : > { %p26_p9 = scmp.ge.s32.totalorder %s29_s21, 4  }
 0x80d   :  { %28 = sbr.rel (!%p26_p9) target bundleno = 7 (0x7), region = 145 }
 0x814   :  { %5364 = vsyncpa [#allocation5], 1 }
 0x815   :  { %5366 = vsyncpa [#allocation5 + $0x1], 1 }
 0x816   :  { %5367 = vsyncpa [#allocation7], 1 }

</bundles_post_ra>
